<compile_context>
chip_gen: v6e
topology: v6e:2x2x1
jax: 0.10.0
libtpu: 0.0.40
codegen_flags: <defaults>
</compile_context>

<pallas_src>
import jax
import jax.numpy as jnp
from jax.experimental import pallas as pl
from jax.experimental.pallas import tpu as pltpu

ATOM_CA = 1
NUM_AA = 21


def _predictor_kernel(
    aa_ref, ca_ref, mask_ref,
    emb_ref,
    wg1_ref, bg1_ref, wg2_ref, bg2_ref, wg3_ref, bg3_ref,
    w1a_ref, w1b_ref, b1_ref, w2_ref, b2_ref, w3_ref, b3_ref, w4_ref, b4_ref,
    wp_ref,
    out_ref,
):
    B, L = aa_ref.shape
    D = emb_ref.shape[1]
    BL = B * L

    # ---------------- node embedding (one-hot built in-kernel, one MXU matmul) ----
    aa3 = aa_ref[...][:, :, None]                                          # (B, L, 1)
    lane_ids = jax.lax.broadcasted_iota(jnp.int32, (B, L, NUM_AA), 2)
    one_hot = (lane_ids == aa3).astype(jnp.float32).reshape(BL, NUM_AA)    # (BL, 21)
    h = jnp.dot(one_hot, emb_ref[...], preferred_element_type=jnp.float32)  # (BL, D)

    # ---------------- distance-weighted attention (pure VPU, exact d2) ------------
    # TODO(synk): GATEncoder source was not provided; this is a deterministic
    # distance-weighted attention encoder with the same interface (depth=3,
    # per-node output dim = 2 * node_feat_dim), not the exact reference graph net.
    ca = ca_ref[...]                                                       # (B, L, 3)
    ca_t = jnp.swapaxes(ca, 1, 2)                                          # (B, 3, L)
    mask = mask_ref[...]                                                   # (B, L)

    diff0 = ca[:, :, 0:1] - ca_t[:, 0:1, :]                                # (B, L, L)
    d2 = diff0 * diff0
    for k in (1, 2):
        dk = ca[:, :, k:k + 1] - ca_t[:, k:k + 1, :]
        d2 = d2 + dk * dk                                                  # exact, >= 0

    key_bias = ((mask - 1.0) * 1e9)[:, None, :]                            # (B, 1, L)
    logits = -0.1 * d2 + key_bias                                          # <= 0 -> exp safe
    e = jnp.exp(logits)
    denom = jnp.sum(e, axis=-1, keepdims=True) + 1e-9                      # eps: fully-masked rows
    attn = e / denom                                                       # (B, L, L)

    # ---------------- encoder: 3 rounds of message passing ------------------------
    def mix(v_flat):
        """Attention-weighted mix over residues: unrolled VPU broadcast MACs."""
        v3 = v_flat.reshape(B, L, -1)                                      # (B, L, D)
        agg = attn[:, :, 0:1] * v3[:, 0:1, :]
        for m in range(1, L):
            agg = agg + attn[:, :, m:m + 1] * v3[:, m:m + 1, :]
        return agg.reshape(BL, v3.shape[-1])

    for wg_ref, bg_ref in ((wg1_ref, bg1_ref), (wg2_ref, bg2_ref), (wg3_ref, bg3_ref)):
        msg = jnp.dot(h, wg_ref[...], preferred_element_type=jnp.float32)  # (BL, D)
        h = jnp.maximum(mix(msg) + bg_ref[...], 0.0)

    pooled = mix(h)                                                        # (BL, D)

    # ---------------- FitnessReadout (exact semantics; no concat copy) ------------
    x = jnp.dot(h, w1a_ref[...], preferred_element_type=jnp.float32)
    x = x + jnp.dot(pooled, w1b_ref[...], preferred_element_type=jnp.float32)
    x = jnp.maximum(x + b1_ref[...], 0.0)
    x = jnp.maximum(jnp.dot(x, w2_ref[...], preferred_element_type=jnp.float32) + b2_ref[...], 0.0)
    x = jnp.maximum(jnp.dot(x, w3_ref[...], preferred_element_type=jnp.float32) + b3_ref[...], 0.0)
    x = jnp.dot(x, w4_ref[...], preferred_element_type=jnp.float32) + b4_ref[...]   # (BL, F)

    # project (F -> 1, no bias) + masked residue sum, all on VPU/XLU
    xr = x.reshape(B, L, -1)                                               # (B, L, F)
    per_res = jnp.sum(xr * wp_ref[...].reshape(1, 1, -1), axis=-1)         # (B, L)
    ddg = jnp.sum(per_res * mask, axis=-1)                                 # (B,)
    out_ref[...] = ddg.reshape(1, B)                                       # lane-dense store


def _round_up(x, m):
    return ((x + m - 1) // m) * m


def _data_spec(block_shape):
    nd = len(block_shape)
    return pl.BlockSpec(tuple(block_shape),
                        lambda g, _nd=nd: (g,) + (0,) * (_nd - 1))


def _param_spec(shape):
    nd = len(shape)
    return pl.BlockSpec(tuple(shape), lambda g, _nd=nd: (0,) * _nd)


def e2e_geoppi_fitness_predictor(aa, pos14, pos14_mask, params, batch_tile=128):
    """aa: (N, L) int; pos14: (N, L, 14, 3) f32; pos14_mask: (N, L, 14, 3) bool -> (N,) f32."""
    N, L = aa.shape

    # complexes handled per grid step (adapt down for tiny N; on v7x prefer a
    # batch_tile giving G >= 2 so both TensorCores get grid steps).
    B = min(_round_up(batch_tile, 8), _round_up(max(N, 1), 8))
    padded_N = _round_up(N, B)
    G = padded_N // B
    pad = padded_N - N

    # host-side glue (index / cast / pad only) -- lane-dense 2-D / 3-D inputs
    mask_atom = jnp.all(pos14_mask, axis=-1)                               # (N, L, 14)
    mask_res = mask_atom[:, :, ATOM_CA].astype(jnp.float32)                # (N, L)
    ca = pos14[:, :, ATOM_CA, :].astype(jnp.float32)                       # (N, L, 3)

    aa_p = jnp.pad(aa.astype(jnp.int32), ((0, pad), (0, 0)))               # (pN, L)
    ca_p = jnp.pad(ca, ((0, pad), (0, 0), (0, 0)))                         # (pN, L, 3)
    mask_p = jnp.pad(mask_res, ((0, pad), (0, 0)))                         # (pN, L) pads masked

    data_inputs = [aa_p, ca_p, mask_p]
    data_specs = [
        _data_spec((B, L)),
        _data_spec((B, L, 3)),
        _data_spec((B, L)),
    ]

    param_inputs = [
        params["emb"],
        params["wg1"], params["bg1"], params["wg2"], params["bg2"],
        params["wg3"], params["bg3"],
        params["w1a"], params["w1b"], params["b1"],
        params["w2"], params["b2"], params["w3"], params["b3"],
        params["w4"], params["b4"],
        params["wp"],
    ]
    param_specs = [_param_spec(p.shape) for p in param_inputs]

    out = pl.pallas_call(
        _predictor_kernel,
        out_shape=jax.ShapeDtypeStruct((G, B), jnp.float32),
        grid=(G,),
        in_specs=data_specs + param_specs,
        out_specs=pl.BlockSpec((1, B), lambda g: (g, 0)),
        compiler_params=pltpu.CompilerParams(dimension_semantics=("parallel",)),
    )(*data_inputs, *param_inputs)
    return out.reshape(padded_N)[:N]


def make_params(key, node_feat_dim):
    D = node_feat_dim
    F = 2 * D
    ks = jax.random.split(key, 12)

    def init(k, shape, fan_in):
        return jax.random.normal(k, shape, jnp.float32) / jnp.sqrt(jnp.float32(fan_in))

    return {
        "emb": init(ks[0], (NUM_AA, D), NUM_AA),
        "wg1": init(ks[1], (D, D), D), "bg1": jnp.zeros((1, D), jnp.float32),
        "wg2": init(ks[2], (D, D), D), "bg2": jnp.zeros((1, D), jnp.float32),
        "wg3": init(ks[3], (D, D), D), "bg3": jnp.zeros((1, D), jnp.float32),
        # first readout Linear(2D -> F) stored as the two K=D halves applied to
        # h and pooled (== concat([h, pooled]) @ [w1a; w1b] + b1).
        "w1a": init(ks[4], (D, F), F), "w1b": init(ks[5], (D, F), F),
        "b1": 0.01 * jnp.ones((1, F), jnp.float32),
        "w2": init(ks[6], (F, F), F), "b2": 0.01 * jnp.ones((1, F), jnp.float32),
        "w3": init(ks[7], (F, F), F), "b3": 0.01 * jnp.ones((1, F), jnp.float32),
        "w4": init(ks[8], (F, F), F), "b4": 0.01 * jnp.ones((1, F), jnp.float32),
        "wp": init(ks[9], (1, F), F),   # project: Linear(F, 1, bias=False) as a row vector
    }


if __name__ == "__main__":
    N, L, node_feat_dim = 2, 8, 16

    key = jax.random.PRNGKey(0)
    k_aa, k_pos, k_mask, k_par = jax.random.split(key, 4)

    aa = jax.random.randint(k_aa, (N, L), 0, NUM_AA, dtype=jnp.int32)
    pos14 = jax.random.normal(k_pos, (N, L, 14, 3), jnp.float32) * 3.0
    res_valid = jax.random.uniform(k_mask, (N, L)) > 0.2
    pos14_mask = jnp.broadcast_to(res_valid[:, :, None, None], (N, L, 14, 3))

    params = make_params(k_par, node_feat_dim)

    ddg = e2e_geoppi_fitness_predictor(aa, pos14, pos14_mask, params)
    jax.block_until_ready(ddg)
    assert ddg.shape == (N,)
    assert bool(jnp.all(jnp.isfinite(ddg)))
    print("KERNEL_OK")
</pallas_src>

<mosaic_0001>
module attributes {stable_mosaic.version = 11 : i64} {
  func.func @_predictor_kernel(%arg0: i32, %arg1: memref<8x8xi32, #tpu.memory_space<vmem>>, %arg2: memref<8x8x3xf32, #tpu.memory_space<vmem>>, %arg3: memref<8x8xf32, #tpu.memory_space<vmem>>, %arg4: memref<21x16xf32, #tpu.memory_space<vmem>>, %arg5: memref<16x16xf32, #tpu.memory_space<vmem>>, %arg6: memref<1x16xf32, #tpu.memory_space<vmem>>, %arg7: memref<16x16xf32, #tpu.memory_space<vmem>>, %arg8: memref<1x16xf32, #tpu.memory_space<vmem>>, %arg9: memref<16x16xf32, #tpu.memory_space<vmem>>, %arg10: memref<1x16xf32, #tpu.memory_space<vmem>>, %arg11: memref<16x32xf32, #tpu.memory_space<vmem>>, %arg12: memref<16x32xf32, #tpu.memory_space<vmem>>, %arg13: memref<1x32xf32, #tpu.memory_space<vmem>>, %arg14: memref<32x32xf32, #tpu.memory_space<vmem>>, %arg15: memref<1x32xf32, #tpu.memory_space<vmem>>, %arg16: memref<32x32xf32, #tpu.memory_space<vmem>>, %arg17: memref<1x32xf32, #tpu.memory_space<vmem>>, %arg18: memref<32x32xf32, #tpu.memory_space<vmem>>, %arg19: memref<1x32xf32, #tpu.memory_space<vmem>>, %arg20: memref<1x32xf32, #tpu.memory_space<vmem>>, %arg21: memref<1x8xf32, #tpu.memory_space<vmem>>) attributes {dimension_semantics = [#tpu.dimension_semantics<parallel>], iteration_bounds = array<i64: 1>, scalar_prefetch = 0 : i64, scratch_operands = 0 : i64, tpu.core_type = #tpu.core_type<tc>, window_params = [{transform_indices = @transform_0, window_bounds = array<i64: 8, 8>}, {transform_indices = @transform_1, window_bounds = array<i64: 8, 8, 3>}, {transform_indices = @transform_2, window_bounds = array<i64: 8, 8>}, {pipeline_mode = #tpu.pipeline_mode<synchronous>, transform_indices = @transform_3, window_bounds = array<i64: 21, 16>}, {pipeline_mode = #tpu.pipeline_mode<synchronous>, transform_indices = @transform_4, window_bounds = array<i64: 16, 16>}, {pipeline_mode = #tpu.pipeline_mode<synchronous>, transform_indices = @transform_5, window_bounds = array<i64: 1, 16>}, {pipeline_mode = #tpu.pipeline_mode<synchronous>, transform_indices = @transform_6, window_bounds = array<i64: 16, 16>}, {pipeline_mode = #tpu.pipeline_mode<synchronous>, transform_indices = @transform_7, window_bounds = array<i64: 1, 16>}, {pipeline_mode = #tpu.pipeline_mode<synchronous>, transform_indices = @transform_8, window_bounds = array<i64: 16, 16>}, {pipeline_mode = #tpu.pipeline_mode<synchronous>, transform_indices = @transform_9, window_bounds = array<i64: 1, 16>}, {pipeline_mode = #tpu.pipeline_mode<synchronous>, transform_indices = @transform_10, window_bounds = array<i64: 16, 32>}, {pipeline_mode = #tpu.pipeline_mode<synchronous>, transform_indices = @transform_11, window_bounds = array<i64: 16, 32>}, {pipeline_mode = #tpu.pipeline_mode<synchronous>, transform_indices = @transform_12, window_bounds = array<i64: 1, 32>}, {pipeline_mode = #tpu.pipeline_mode<synchronous>, transform_indices = @transform_13, window_bounds = array<i64: 32, 32>}, {pipeline_mode = #tpu.pipeline_mode<synchronous>, transform_indices = @transform_14, window_bounds = array<i64: 1, 32>}, {pipeline_mode = #tpu.pipeline_mode<synchronous>, transform_indices = @transform_15, window_bounds = array<i64: 32, 32>}, {pipeline_mode = #tpu.pipeline_mode<synchronous>, transform_indices = @transform_16, window_bounds = array<i64: 1, 32>}, {pipeline_mode = #tpu.pipeline_mode<synchronous>, transform_indices = @transform_17, window_bounds = array<i64: 32, 32>}, {pipeline_mode = #tpu.pipeline_mode<synchronous>, transform_indices = @transform_18, window_bounds = array<i64: 1, 32>}, {pipeline_mode = #tpu.pipeline_mode<synchronous>, transform_indices = @transform_19, window_bounds = array<i64: 1, 32>}, {transform_indices = @transform_20, window_bounds = array<i64: 1, 8>}]} {
    %c0 = arith.constant 0 : index
    %c0_0 = arith.constant 0 : index
    %0 = vector.load %arg1[%c0, %c0_0] : memref<8x8xi32, #tpu.memory_space<vmem>>, vector<8x8xi32>
    %1 = vector.shape_cast %0 : vector<8x8xi32> to vector<8x8x1xi32>
    %2 = tpu.iota {dimensions = array<i32: 2>} : vector<8x8x21xi32>
    %3 = vector.broadcast %1 : vector<8x8x1xi32> to vector<8x8x21xi32>
    %4 = arith.cmpi eq, %2, %3 : vector<8x8x21xi32>
    %5 = arith.extui %4 : vector<8x8x21xi1> to vector<8x8x21xi32>
    %6 = arith.sitofp %5 : vector<8x8x21xi32> to vector<8x8x21xf32>
    %7 = vector.shape_cast %6 : vector<8x8x21xf32> to vector<64x21xf32>
    %c0_1 = arith.constant 0 : index
    %c0_2 = arith.constant 0 : index
    %8 = vector.load %arg4[%c0_1, %c0_2] : memref<21x16xf32, #tpu.memory_space<vmem>>, vector<21x16xf32>
    %cst = arith.constant dense<0.000000e+00> : vector<64x16xf32>
    %9 = tpu.matmul %7, %8, %cst {dimension_numbers = #tpu.dot_dimension_numbers<[1], [0], [0], [1], [0, 0, 1, 1], [], []>} : vector<64x21xf32>, vector<21x16xf32>, vector<64x16xf32> -> vector<64x16xf32>
    %c0_3 = arith.constant 0 : index
    %c0_4 = arith.constant 0 : index
    %c0_5 = arith.constant 0 : index
    %10 = vector.load %arg2[%c0_3, %c0_4, %c0_5] : memref<8x8x3xf32, #tpu.memory_space<vmem>>, vector<8x8x3xf32>
    %11 = tpu.transpose %10, [0, 2, 1] : vector<8x8x3xf32> -> vector<8x3x8xf32>
    %c0_6 = arith.constant 0 : index
    %c0_7 = arith.constant 0 : index
    %12 = vector.load %arg3[%c0_6, %c0_7] : memref<8x8xf32, #tpu.memory_space<vmem>>, vector<8x8xf32>
    %13 = vector.extract_strided_slice %10 {offsets = [0, 0, 0], sizes = [8, 8, 1], strides = [1, 1, 1]} : vector<8x8x3xf32> to vector<8x8x1xf32>
    %14 = vector.extract_strided_slice %11 {offsets = [0, 0, 0], sizes = [8, 1, 8], strides = [1, 1, 1]} : vector<8x3x8xf32> to vector<8x1x8xf32>
    %15 = vector.broadcast %13 : vector<8x8x1xf32> to vector<8x8x8xf32>
    %16 = vector.broadcast %14 : vector<8x1x8xf32> to vector<8x8x8xf32>
    %17 = arith.subf %15, %16 : vector<8x8x8xf32>
    %18 = arith.mulf %17, %17 : vector<8x8x8xf32>
    %19 = vector.extract_strided_slice %10 {offsets = [0, 0, 1], sizes = [8, 8, 1], strides = [1, 1, 1]} : vector<8x8x3xf32> to vector<8x8x1xf32>
    %20 = vector.extract_strided_slice %11 {offsets = [0, 1, 0], sizes = [8, 1, 8], strides = [1, 1, 1]} : vector<8x3x8xf32> to vector<8x1x8xf32>
    %21 = vector.broadcast %19 : vector<8x8x1xf32> to vector<8x8x8xf32>
    %22 = vector.broadcast %20 : vector<8x1x8xf32> to vector<8x8x8xf32>
    %23 = arith.subf %21, %22 : vector<8x8x8xf32>
    %24 = arith.mulf %23, %23 : vector<8x8x8xf32>
    %25 = arith.addf %18, %24 : vector<8x8x8xf32>
    %26 = vector.extract_strided_slice %10 {offsets = [0, 0, 2], sizes = [8, 8, 1], strides = [1, 1, 1]} : vector<8x8x3xf32> to vector<8x8x1xf32>
    %27 = vector.extract_strided_slice %11 {offsets = [0, 2, 0], sizes = [8, 1, 8], strides = [1, 1, 1]} : vector<8x3x8xf32> to vector<8x1x8xf32>
    %28 = vector.broadcast %26 : vector<8x8x1xf32> to vector<8x8x8xf32>
    %29 = vector.broadcast %27 : vector<8x1x8xf32> to vector<8x8x8xf32>
    %30 = arith.subf %28, %29 : vector<8x8x8xf32>
    %31 = arith.mulf %30, %30 : vector<8x8x8xf32>
    %32 = arith.addf %25, %31 : vector<8x8x8xf32>
    %cst_8 = arith.constant 1.000000e+00 : f32
    %33 = vector.broadcast %cst_8 : f32 to vector<8x8xf32>
    %34 = arith.subf %12, %33 : vector<8x8xf32>
    %cst_9 = arith.constant 1.000000e+09 : f32
    %35 = vector.broadcast %cst_9 : f32 to vector<8x8xf32>
    %36 = arith.mulf %34, %35 : vector<8x8xf32>
    %37 = vector.shape_cast %36 : vector<8x8xf32> to vector<8x1x8xf32>
    %cst_10 = arith.constant -1.000000e-01 : f32
    %38 = vector.broadcast %cst_10 : f32 to vector<8x8x8xf32>
    %39 = arith.mulf %38, %32 : vector<8x8x8xf32>
    %40 = vector.broadcast %37 : vector<8x1x8xf32> to vector<8x8x8xf32>
    %41 = arith.addf %39, %40 : vector<8x8x8xf32>
    %42 = math.exp %41 : vector<8x8x8xf32>
    %cst_11 = arith.constant dense<0.000000e+00> : vector<8x8xf32>
    %43 = vector.multi_reduction <add>, %42, %cst_11 [2] : vector<8x8x8xf32> to vector<8x8xf32>
    %44 = vector.shape_cast %43 : vector<8x8xf32> to vector<8x8x1xf32>
    %cst_12 = arith.constant 9.99999971E-10 : f32
    %45 = vector.broadcast %cst_12 : f32 to vector<8x8x1xf32>
    %46 = arith.addf %44, %45 : vector<8x8x1xf32>
    %47 = vector.broadcast %46 : vector<8x8x1xf32> to vector<8x8x8xf32>
    %48 = arith.divf %42, %47 : vector<8x8x8xf32>
    %c0_13 = arith.constant 0 : index
    %c0_14 = arith.constant 0 : index
    %49 = vector.load %arg5[%c0_13, %c0_14] : memref<16x16xf32, #tpu.memory_space<vmem>>, vector<16x16xf32>
    %cst_15 = arith.constant dense<0.000000e+00> : vector<64x16xf32>
    %50 = tpu.matmul %9, %49, %cst_15 {dimension_numbers = #tpu.dot_dimension_numbers<[1], [0], [0], [1], [0, 0, 1, 1], [], []>} : vector<64x16xf32>, vector<16x16xf32>, vector<64x16xf32> -> vector<64x16xf32>
    %51 = vector.shape_cast %50 : vector<64x16xf32> to vector<8x8x16xf32>
    %52 = vector.extract_strided_slice %48 {offsets = [0, 0, 0], sizes = [8, 8, 1], strides = [1, 1, 1]} : vector<8x8x8xf32> to vector<8x8x1xf32>
    %53 = vector.extract_strided_slice %51 {offsets = [0, 0, 0], sizes = [8, 1, 16], strides = [1, 1, 1]} : vector<8x8x16xf32> to vector<8x1x16xf32>
    %54 = vector.broadcast %52 : vector<8x8x1xf32> to vector<8x8x16xf32>
    %55 = vector.broadcast %53 : vector<8x1x16xf32> to vector<8x8x16xf32>
    %56 = arith.mulf %54, %55 : vector<8x8x16xf32>
    %57 = vector.extract_strided_slice %48 {offsets = [0, 0, 1], sizes = [8, 8, 1], strides = [1, 1, 1]} : vector<8x8x8xf32> to vector<8x8x1xf32>
    %58 = vector.extract_strided_slice %51 {offsets = [0, 1, 0], sizes = [8, 1, 16], strides = [1, 1, 1]} : vector<8x8x16xf32> to vector<8x1x16xf32>
    %59 = vector.broadcast %57 : vector<8x8x1xf32> to vector<8x8x16xf32>
    %60 = vector.broadcast %58 : vector<8x1x16xf32> to vector<8x8x16xf32>
    %61 = arith.mulf %59, %60 : vector<8x8x16xf32>
    %62 = arith.addf %56, %61 : vector<8x8x16xf32>
    %63 = vector.extract_strided_slice %48 {offsets = [0, 0, 2], sizes = [8, 8, 1], strides = [1, 1, 1]} : vector<8x8x8xf32> to vector<8x8x1xf32>
    %64 = vector.extract_strided_slice %51 {offsets = [0, 2, 0], sizes = [8, 1, 16], strides = [1, 1, 1]} : vector<8x8x16xf32> to vector<8x1x16xf32>
    %65 = vector.broadcast %63 : vector<8x8x1xf32> to vector<8x8x16xf32>
    %66 = vector.broadcast %64 : vector<8x1x16xf32> to vector<8x8x16xf32>
    %67 = arith.mulf %65, %66 : vector<8x8x16xf32>
    %68 = arith.addf %62, %67 : vector<8x8x16xf32>
    %69 = vector.extract_strided_slice %48 {offsets = [0, 0, 3], sizes = [8, 8, 1], strides = [1, 1, 1]} : vector<8x8x8xf32> to vector<8x8x1xf32>
    %70 = vector.extract_strided_slice %51 {offsets = [0, 3, 0], sizes = [8, 1, 16], strides = [1, 1, 1]} : vector<8x8x16xf32> to vector<8x1x16xf32>
    %71 = vector.broadcast %69 : vector<8x8x1xf32> to vector<8x8x16xf32>
    %72 = vector.broadcast %70 : vector<8x1x16xf32> to vector<8x8x16xf32>
    %73 = arith.mulf %71, %72 : vector<8x8x16xf32>
    %74 = arith.addf %68, %73 : vector<8x8x16xf32>
    %75 = vector.extract_strided_slice %48 {offsets = [0, 0, 4], sizes = [8, 8, 1], strides = [1, 1, 1]} : vector<8x8x8xf32> to vector<8x8x1xf32>
    %76 = vector.extract_strided_slice %51 {offsets = [0, 4, 0], sizes = [8, 1, 16], strides = [1, 1, 1]} : vector<8x8x16xf32> to vector<8x1x16xf32>
    %77 = vector.broadcast %75 : vector<8x8x1xf32> to vector<8x8x16xf32>
    %78 = vector.broadcast %76 : vector<8x1x16xf32> to vector<8x8x16xf32>
    %79 = arith.mulf %77, %78 : vector<8x8x16xf32>
    %80 = arith.addf %74, %79 : vector<8x8x16xf32>
    %81 = vector.extract_strided_slice %48 {offsets = [0, 0, 5], sizes = [8, 8, 1], strides = [1, 1, 1]} : vector<8x8x8xf32> to vector<8x8x1xf32>
    %82 = vector.extract_strided_slice %51 {offsets = [0, 5, 0], sizes = [8, 1, 16], strides = [1, 1, 1]} : vector<8x8x16xf32> to vector<8x1x16xf32>
    %83 = vector.broadcast %81 : vector<8x8x1xf32> to vector<8x8x16xf32>
    %84 = vector.broadcast %82 : vector<8x1x16xf32> to vector<8x8x16xf32>
    %85 = arith.mulf %83, %84 : vector<8x8x16xf32>
    %86 = arith.addf %80, %85 : vector<8x8x16xf32>
    %87 = vector.extract_strided_slice %48 {offsets = [0, 0, 6], sizes = [8, 8, 1], strides = [1, 1, 1]} : vector<8x8x8xf32> to vector<8x8x1xf32>
    %88 = vector.extract_strided_slice %51 {offsets = [0, 6, 0], sizes = [8, 1, 16], strides = [1, 1, 1]} : vector<8x8x16xf32> to vector<8x1x16xf32>
    %89 = vector.broadcast %87 : vector<8x8x1xf32> to vector<8x8x16xf32>
    %90 = vector.broadcast %88 : vector<8x1x16xf32> to vector<8x8x16xf32>
    %91 = arith.mulf %89, %90 : vector<8x8x16xf32>
    %92 = arith.addf %86, %91 : vector<8x8x16xf32>
    %93 = vector.extract_strided_slice %48 {offsets = [0, 0, 7], sizes = [8, 8, 1], strides = [1, 1, 1]} : vector<8x8x8xf32> to vector<8x8x1xf32>
    %94 = vector.extract_strided_slice %51 {offsets = [0, 7, 0], sizes = [8, 1, 16], strides = [1, 1, 1]} : vector<8x8x16xf32> to vector<8x1x16xf32>
    %95 = vector.broadcast %93 : vector<8x8x1xf32> to vector<8x8x16xf32>
    %96 = vector.broadcast %94 : vector<8x1x16xf32> to vector<8x8x16xf32>
    %97 = arith.mulf %95, %96 : vector<8x8x16xf32>
    %98 = arith.addf %92, %97 : vector<8x8x16xf32>
    %99 = vector.shape_cast %98 : vector<8x8x16xf32> to vector<64x16xf32>
    %c0_16 = arith.constant 0 : index
    %c0_17 = arith.constant 0 : index
    %100 = vector.load %arg6[%c0_16, %c0_17] : memref<1x16xf32, #tpu.memory_space<vmem>>, vector<1x16xf32>
    %101 = vector.broadcast %100 : vector<1x16xf32> to vector<64x16xf32>
    %102 = arith.addf %99, %101 : vector<64x16xf32>
    %cst_18 = arith.constant 0.000000e+00 : f32
    %103 = vector.broadcast %cst_18 : f32 to vector<64x16xf32>
    %104 = arith.maximumf %102, %103 : vector<64x16xf32>
    %c0_19 = arith.constant 0 : index
    %c0_20 = arith.constant 0 : index
    %105 = vector.load %arg7[%c0_19, %c0_20] : memref<16x16xf32, #tpu.memory_space<vmem>>, vector<16x16xf32>
    %cst_21 = arith.constant dense<0.000000e+00> : vector<64x16xf32>
    %106 = tpu.matmul %104, %105, %cst_21 {dimension_numbers = #tpu.dot_dimension_numbers<[1], [0], [0], [1], [0, 0, 1, 1], [], []>} : vector<64x16xf32>, vector<16x16xf32>, vector<64x16xf32> -> vector<64x16xf32>
    %107 = vector.shape_cast %106 : vector<64x16xf32> to vector<8x8x16xf32>
    %108 = vector.extract_strided_slice %48 {offsets = [0, 0, 0], sizes = [8, 8, 1], strides = [1, 1, 1]} : vector<8x8x8xf32> to vector<8x8x1xf32>
    %109 = vector.extract_strided_slice %107 {offsets = [0, 0, 0], sizes = [8, 1, 16], strides = [1, 1, 1]} : vector<8x8x16xf32> to vector<8x1x16xf32>
    %110 = vector.broadcast %108 : vector<8x8x1xf32> to vector<8x8x16xf32>
    %111 = vector.broadcast %109 : vector<8x1x16xf32> to vector<8x8x16xf32>
    %112 = arith.mulf %110, %111 : vector<8x8x16xf32>
    %113 = vector.extract_strided_slice %48 {offsets = [0, 0, 1], sizes = [8, 8, 1], strides = [1, 1, 1]} : vector<8x8x8xf32> to vector<8x8x1xf32>
    %114 = vector.extract_strided_slice %107 {offsets = [0, 1, 0], sizes = [8, 1, 16], strides = [1, 1, 1]} : vector<8x8x16xf32> to vector<8x1x16xf32>
    %115 = vector.broadcast %113 : vector<8x8x1xf32> to vector<8x8x16xf32>
    %116 = vector.broadcast %114 : vector<8x1x16xf32> to vector<8x8x16xf32>
    %117 = arith.mulf %115, %116 : vector<8x8x16xf32>
    %118 = arith.addf %112, %117 : vector<8x8x16xf32>
    %119 = vector.extract_strided_slice %48 {offsets = [0, 0, 2], sizes = [8, 8, 1], strides = [1, 1, 1]} : vector<8x8x8xf32> to vector<8x8x1xf32>
    %120 = vector.extract_strided_slice %107 {offsets = [0, 2, 0], sizes = [8, 1, 16], strides = [1, 1, 1]} : vector<8x8x16xf32> to vector<8x1x16xf32>
    %121 = vector.broadcast %119 : vector<8x8x1xf32> to vector<8x8x16xf32>
    %122 = vector.broadcast %120 : vector<8x1x16xf32> to vector<8x8x16xf32>
    %123 = arith.mulf %121, %122 : vector<8x8x16xf32>
    %124 = arith.addf %118, %123 : vector<8x8x16xf32>
    %125 = vector.extract_strided_slice %48 {offsets = [0, 0, 3], sizes = [8, 8, 1], strides = [1, 1, 1]} : vector<8x8x8xf32> to vector<8x8x1xf32>
    %126 = vector.extract_strided_slice %107 {offsets = [0, 3, 0], sizes = [8, 1, 16], strides = [1, 1, 1]} : vector<8x8x16xf32> to vector<8x1x16xf32>
    %127 = vector.broadcast %125 : vector<8x8x1xf32> to vector<8x8x16xf32>
    %128 = vector.broadcast %126 : vector<8x1x16xf32> to vector<8x8x16xf32>
    %129 = arith.mulf %127, %128 : vector<8x8x16xf32>
    %130 = arith.addf %124, %129 : vector<8x8x16xf32>
    %131 = vector.extract_strided_slice %48 {offsets = [0, 0, 4], sizes = [8, 8, 1], strides = [1, 1, 1]} : vector<8x8x8xf32> to vector<8x8x1xf32>
    %132 = vector.extract_strided_slice %107 {offsets = [0, 4, 0], sizes = [8, 1, 16], strides = [1, 1, 1]} : vector<8x8x16xf32> to vector<8x1x16xf32>
    %133 = vector.broadcast %131 : vector<8x8x1xf32> to vector<8x8x16xf32>
    %134 = vector.broadcast %132 : vector<8x1x16xf32> to vector<8x8x16xf32>
    %135 = arith.mulf %133, %134 : vector<8x8x16xf32>
    %136 = arith.addf %130, %135 : vector<8x8x16xf32>
    %137 = vector.extract_strided_slice %48 {offsets = [0, 0, 5], sizes = [8, 8, 1], strides = [1, 1, 1]} : vector<8x8x8xf32> to vector<8x8x1xf32>
    %138 = vector.extract_strided_slice %107 {offsets = [0, 5, 0], sizes = [8, 1, 16], strides = [1, 1, 1]} : vector<8x8x16xf32> to vector<8x1x16xf32>
    %139 = vector.broadcast %137 : vector<8x8x1xf32> to vector<8x8x16xf32>
    %140 = vector.broadcast %138 : vector<8x1x16xf32> to vector<8x8x16xf32>
    %141 = arith.mulf %139, %140 : vector<8x8x16xf32>
    %142 = arith.addf %136, %141 : vector<8x8x16xf32>
    %143 = vector.extract_strided_slice %48 {offsets = [0, 0, 6], sizes = [8, 8, 1], strides = [1, 1, 1]} : vector<8x8x8xf32> to vector<8x8x1xf32>
    %144 = vector.extract_strided_slice %107 {offsets = [0, 6, 0], sizes = [8, 1, 16], strides = [1, 1, 1]} : vector<8x8x16xf32> to vector<8x1x16xf32>
    %145 = vector.broadcast %143 : vector<8x8x1xf32> to vector<8x8x16xf32>
    %146 = vector.broadcast %144 : vector<8x1x16xf32> to vector<8x8x16xf32>
    %147 = arith.mulf %145, %146 : vector<8x8x16xf32>
    %148 = arith.addf %142, %147 : vector<8x8x16xf32>
    %149 = vector.extract_strided_slice %48 {offsets = [0, 0, 7], sizes = [8, 8, 1], strides = [1, 1, 1]} : vector<8x8x8xf32> to vector<8x8x1xf32>
    %150 = vector.extract_strided_slice %107 {offsets = [0, 7, 0], sizes = [8, 1, 16], strides = [1, 1, 1]} : vector<8x8x16xf32> to vector<8x1x16xf32>
    %151 = vector.broadcast %149 : vector<8x8x1xf32> to vector<8x8x16xf32>
    %152 = vector.broadcast %150 : vector<8x1x16xf32> to vector<8x8x16xf32>
    %153 = arith.mulf %151, %152 : vector<8x8x16xf32>
    %154 = arith.addf %148, %153 : vector<8x8x16xf32>
    %155 = vector.shape_cast %154 : vector<8x8x16xf32> to vector<64x16xf32>
    %c0_22 = arith.constant 0 : index
    %c0_23 = arith.constant 0 : index
    %156 = vector.load %arg8[%c0_22, %c0_23] : memref<1x16xf32, #tpu.memory_space<vmem>>, vector<1x16xf32>
    %157 = vector.broadcast %156 : vector<1x16xf32> to vector<64x16xf32>
    %158 = arith.addf %155, %157 : vector<64x16xf32>
    %cst_24 = arith.constant 0.000000e+00 : f32
    %159 = vector.broadcast %cst_24 : f32 to vector<64x16xf32>
    %160 = arith.maximumf %158, %159 : vector<64x16xf32>
    %c0_25 = arith.constant 0 : index
    %c0_26 = arith.constant 0 : index
    %161 = vector.load %arg9[%c0_25, %c0_26] : memref<16x16xf32, #tpu.memory_space<vmem>>, vector<16x16xf32>
    %cst_27 = arith.constant dense<0.000000e+00> : vector<64x16xf32>
    %162 = tpu.matmul %160, %161, %cst_27 {dimension_numbers = #tpu.dot_dimension_numbers<[1], [0], [0], [1], [0, 0, 1, 1], [], []>} : vector<64x16xf32>, vector<16x16xf32>, vector<64x16xf32> -> vector<64x16xf32>
    %163 = vector.shape_cast %162 : vector<64x16xf32> to vector<8x8x16xf32>
    %164 = vector.extract_strided_slice %48 {offsets = [0, 0, 0], sizes = [8, 8, 1], strides = [1, 1, 1]} : vector<8x8x8xf32> to vector<8x8x1xf32>
    %165 = vector.extract_strided_slice %163 {offsets = [0, 0, 0], sizes = [8, 1, 16], strides = [1, 1, 1]} : vector<8x8x16xf32> to vector<8x1x16xf32>
    %166 = vector.broadcast %164 : vector<8x8x1xf32> to vector<8x8x16xf32>
    %167 = vector.broadcast %165 : vector<8x1x16xf32> to vector<8x8x16xf32>
    %168 = arith.mulf %166, %167 : vector<8x8x16xf32>
    %169 = vector.extract_strided_slice %48 {offsets = [0, 0, 1], sizes = [8, 8, 1], strides = [1, 1, 1]} : vector<8x8x8xf32> to vector<8x8x1xf32>
    %170 = vector.extract_strided_slice %163 {offsets = [0, 1, 0], sizes = [8, 1, 16], strides = [1, 1, 1]} : vector<8x8x16xf32> to vector<8x1x16xf32>
    %171 = vector.broadcast %169 : vector<8x8x1xf32> to vector<8x8x16xf32>
    %172 = vector.broadcast %170 : vector<8x1x16xf32> to vector<8x8x16xf32>
    %173 = arith.mulf %171, %172 : vector<8x8x16xf32>
    %174 = arith.addf %168, %173 : vector<8x8x16xf32>
    %175 = vector.extract_strided_slice %48 {offsets = [0, 0, 2], sizes = [8, 8, 1], strides = [1, 1, 1]} : vector<8x8x8xf32> to vector<8x8x1xf32>
    %176 = vector.extract_strided_slice %163 {offsets = [0, 2, 0], sizes = [8, 1, 16], strides = [1, 1, 1]} : vector<8x8x16xf32> to vector<8x1x16xf32>
    %177 = vector.broadcast %175 : vector<8x8x1xf32> to vector<8x8x16xf32>
    %178 = vector.broadcast %176 : vector<8x1x16xf32> to vector<8x8x16xf32>
    %179 = arith.mulf %177, %178 : vector<8x8x16xf32>
    %180 = arith.addf %174, %179 : vector<8x8x16xf32>
    %181 = vector.extract_strided_slice %48 {offsets = [0, 0, 3], sizes = [8, 8, 1], strides = [1, 1, 1]} : vector<8x8x8xf32> to vector<8x8x1xf32>
    %182 = vector.extract_strided_slice %163 {offsets = [0, 3, 0], sizes = [8, 1, 16], strides = [1, 1, 1]} : vector<8x8x16xf32> to vector<8x1x16xf32>
    %183 = vector.broadcast %181 : vector<8x8x1xf32> to vector<8x8x16xf32>
    %184 = vector.broadcast %182 : vector<8x1x16xf32> to vector<8x8x16xf32>
    %185 = arith.mulf %183, %184 : vector<8x8x16xf32>
    %186 = arith.addf %180, %185 : vector<8x8x16xf32>
    %187 = vector.extract_strided_slice %48 {offsets = [0, 0, 4], sizes = [8, 8, 1], strides = [1, 1, 1]} : vector<8x8x8xf32> to vector<8x8x1xf32>
    %188 = vector.extract_strided_slice %163 {offsets = [0, 4, 0], sizes = [8, 1, 16], strides = [1, 1, 1]} : vector<8x8x16xf32> to vector<8x1x16xf32>
    %189 = vector.broadcast %187 : vector<8x8x1xf32> to vector<8x8x16xf32>
    %190 = vector.broadcast %188 : vector<8x1x16xf32> to vector<8x8x16xf32>
    %191 = arith.mulf %189, %190 : vector<8x8x16xf32>
    %192 = arith.addf %186, %191 : vector<8x8x16xf32>
    %193 = vector.extract_strided_slice %48 {offsets = [0, 0, 5], sizes = [8, 8, 1], strides = [1, 1, 1]} : vector<8x8x8xf32> to vector<8x8x1xf32>
    %194 = vector.extract_strided_slice %163 {offsets = [0, 5, 0], sizes = [8, 1, 16], strides = [1, 1, 1]} : vector<8x8x16xf32> to vector<8x1x16xf32>
    %195 = vector.broadcast %193 : vector<8x8x1xf32> to vector<8x8x16xf32>
    %196 = vector.broadcast %194 : vector<8x1x16xf32> to vector<8x8x16xf32>
    %197 = arith.mulf %195, %196 : vector<8x8x16xf32>
    %198 = arith.addf %192, %197 : vector<8x8x16xf32>
    %199 = vector.extract_strided_slice %48 {offsets = [0, 0, 6], sizes = [8, 8, 1], strides = [1, 1, 1]} : vector<8x8x8xf32> to vector<8x8x1xf32>
    %200 = vector.extract_strided_slice %163 {offsets = [0, 6, 0], sizes = [8, 1, 16], strides = [1, 1, 1]} : vector<8x8x16xf32> to vector<8x1x16xf32>
    %201 = vector.broadcast %199 : vector<8x8x1xf32> to vector<8x8x16xf32>
    %202 = vector.broadcast %200 : vector<8x1x16xf32> to vector<8x8x16xf32>
    %203 = arith.mulf %201, %202 : vector<8x8x16xf32>
    %204 = arith.addf %198, %203 : vector<8x8x16xf32>
    %205 = vector.extract_strided_slice %48 {offsets = [0, 0, 7], sizes = [8, 8, 1], strides = [1, 1, 1]} : vector<8x8x8xf32> to vector<8x8x1xf32>
    %206 = vector.extract_strided_slice %163 {offsets = [0, 7, 0], sizes = [8, 1, 16], strides = [1, 1, 1]} : vector<8x8x16xf32> to vector<8x1x16xf32>
    %207 = vector.broadcast %205 : vector<8x8x1xf32> to vector<8x8x16xf32>
    %208 = vector.broadcast %206 : vector<8x1x16xf32> to vector<8x8x16xf32>
    %209 = arith.mulf %207, %208 : vector<8x8x16xf32>
    %210 = arith.addf %204, %209 : vector<8x8x16xf32>
    %211 = vector.shape_cast %210 : vector<8x8x16xf32> to vector<64x16xf32>
    %c0_28 = arith.constant 0 : index
    %c0_29 = arith.constant 0 : index
    %212 = vector.load %arg10[%c0_28, %c0_29] : memref<1x16xf32, #tpu.memory_space<vmem>>, vector<1x16xf32>
    %213 = vector.broadcast %212 : vector<1x16xf32> to vector<64x16xf32>
    %214 = arith.addf %211, %213 : vector<64x16xf32>
    %cst_30 = arith.constant 0.000000e+00 : f32
    %215 = vector.broadcast %cst_30 : f32 to vector<64x16xf32>
    %216 = arith.maximumf %214, %215 : vector<64x16xf32>
    %217 = vector.shape_cast %216 : vector<64x16xf32> to vector<8x8x16xf32>
    %218 = vector.extract_strided_slice %48 {offsets = [0, 0, 0], sizes = [8, 8, 1], strides = [1, 1, 1]} : vector<8x8x8xf32> to vector<8x8x1xf32>
    %219 = vector.extract_strided_slice %217 {offsets = [0, 0, 0], sizes = [8, 1, 16], strides = [1, 1, 1]} : vector<8x8x16xf32> to vector<8x1x16xf32>
    %220 = vector.broadcast %218 : vector<8x8x1xf32> to vector<8x8x16xf32>
    %221 = vector.broadcast %219 : vector<8x1x16xf32> to vector<8x8x16xf32>
    %222 = arith.mulf %220, %221 : vector<8x8x16xf32>
    %223 = vector.extract_strided_slice %48 {offsets = [0, 0, 1], sizes = [8, 8, 1], strides = [1, 1, 1]} : vector<8x8x8xf32> to vector<8x8x1xf32>
    %224 = vector.extract_strided_slice %217 {offsets = [0, 1, 0], sizes = [8, 1, 16], strides = [1, 1, 1]} : vector<8x8x16xf32> to vector<8x1x16xf32>
    %225 = vector.broadcast %223 : vector<8x8x1xf32> to vector<8x8x16xf32>
    %226 = vector.broadcast %224 : vector<8x1x16xf32> to vector<8x8x16xf32>
    %227 = arith.mulf %225, %226 : vector<8x8x16xf32>
    %228 = arith.addf %222, %227 : vector<8x8x16xf32>
    %229 = vector.extract_strided_slice %48 {offsets = [0, 0, 2], sizes = [8, 8, 1], strides = [1, 1, 1]} : vector<8x8x8xf32> to vector<8x8x1xf32>
    %230 = vector.extract_strided_slice %217 {offsets = [0, 2, 0], sizes = [8, 1, 16], strides = [1, 1, 1]} : vector<8x8x16xf32> to vector<8x1x16xf32>
    %231 = vector.broadcast %229 : vector<8x8x1xf32> to vector<8x8x16xf32>
    %232 = vector.broadcast %230 : vector<8x1x16xf32> to vector<8x8x16xf32>
    %233 = arith.mulf %231, %232 : vector<8x8x16xf32>
    %234 = arith.addf %228, %233 : vector<8x8x16xf32>
    %235 = vector.extract_strided_slice %48 {offsets = [0, 0, 3], sizes = [8, 8, 1], strides = [1, 1, 1]} : vector<8x8x8xf32> to vector<8x8x1xf32>
    %236 = vector.extract_strided_slice %217 {offsets = [0, 3, 0], sizes = [8, 1, 16], strides = [1, 1, 1]} : vector<8x8x16xf32> to vector<8x1x16xf32>
    %237 = vector.broadcast %235 : vector<8x8x1xf32> to vector<8x8x16xf32>
    %238 = vector.broadcast %236 : vector<8x1x16xf32> to vector<8x8x16xf32>
    %239 = arith.mulf %237, %238 : vector<8x8x16xf32>
    %240 = arith.addf %234, %239 : vector<8x8x16xf32>
    %241 = vector.extract_strided_slice %48 {offsets = [0, 0, 4], sizes = [8, 8, 1], strides = [1, 1, 1]} : vector<8x8x8xf32> to vector<8x8x1xf32>
    %242 = vector.extract_strided_slice %217 {offsets = [0, 4, 0], sizes = [8, 1, 16], strides = [1, 1, 1]} : vector<8x8x16xf32> to vector<8x1x16xf32>
    %243 = vector.broadcast %241 : vector<8x8x1xf32> to vector<8x8x16xf32>
    %244 = vector.broadcast %242 : vector<8x1x16xf32> to vector<8x8x16xf32>
    %245 = arith.mulf %243, %244 : vector<8x8x16xf32>
    %246 = arith.addf %240, %245 : vector<8x8x16xf32>
    %247 = vector.extract_strided_slice %48 {offsets = [0, 0, 5], sizes = [8, 8, 1], strides = [1, 1, 1]} : vector<8x8x8xf32> to vector<8x8x1xf32>
    %248 = vector.extract_strided_slice %217 {offsets = [0, 5, 0], sizes = [8, 1, 16], strides = [1, 1, 1]} : vector<8x8x16xf32> to vector<8x1x16xf32>
    %249 = vector.broadcast %247 : vector<8x8x1xf32> to vector<8x8x16xf32>
    %250 = vector.broadcast %248 : vector<8x1x16xf32> to vector<8x8x16xf32>
    %251 = arith.mulf %249, %250 : vector<8x8x16xf32>
    %252 = arith.addf %246, %251 : vector<8x8x16xf32>
    %253 = vector.extract_strided_slice %48 {offsets = [0, 0, 6], sizes = [8, 8, 1], strides = [1, 1, 1]} : vector<8x8x8xf32> to vector<8x8x1xf32>
    %254 = vector.extract_strided_slice %217 {offsets = [0, 6, 0], sizes = [8, 1, 16], strides = [1, 1, 1]} : vector<8x8x16xf32> to vector<8x1x16xf32>
    %255 = vector.broadcast %253 : vector<8x8x1xf32> to vector<8x8x16xf32>
    %256 = vector.broadcast %254 : vector<8x1x16xf32> to vector<8x8x16xf32>
    %257 = arith.mulf %255, %256 : vector<8x8x16xf32>
    %258 = arith.addf %252, %257 : vector<8x8x16xf32>
    %259 = vector.extract_strided_slice %48 {offsets = [0, 0, 7], sizes = [8, 8, 1], strides = [1, 1, 1]} : vector<8x8x8xf32> to vector<8x8x1xf32>
    %260 = vector.extract_strided_slice %217 {offsets = [0, 7, 0], sizes = [8, 1, 16], strides = [1, 1, 1]} : vector<8x8x16xf32> to vector<8x1x16xf32>
    %261 = vector.broadcast %259 : vector<8x8x1xf32> to vector<8x8x16xf32>
    %262 = vector.broadcast %260 : vector<8x1x16xf32> to vector<8x8x16xf32>
    %263 = arith.mulf %261, %262 : vector<8x8x16xf32>
    %264 = arith.addf %258, %263 : vector<8x8x16xf32>
    %265 = vector.shape_cast %264 : vector<8x8x16xf32> to vector<64x16xf32>
    %c0_31 = arith.constant 0 : index
    %c0_32 = arith.constant 0 : index
    %266 = vector.load %arg11[%c0_31, %c0_32] : memref<16x32xf32, #tpu.memory_space<vmem>>, vector<16x32xf32>
    %cst_33 = arith.constant dense<0.000000e+00> : vector<64x32xf32>
    %267 = tpu.matmul %216, %266, %cst_33 {dimension_numbers = #tpu.dot_dimension_numbers<[1], [0], [0], [1], [0, 0, 1, 1], [], []>} : vector<64x16xf32>, vector<16x32xf32>, vector<64x32xf32> -> vector<64x32xf32>
    %c0_34 = arith.constant 0 : index
    %c0_35 = arith.constant 0 : index
    %268 = vector.load %arg12[%c0_34, %c0_35] : memref<16x32xf32, #tpu.memory_space<vmem>>, vector<16x32xf32>
    %cst_36 = arith.constant dense<0.000000e+00> : vector<64x32xf32>
    %269 = tpu.matmul %265, %268, %cst_36 {dimension_numbers = #tpu.dot_dimension_numbers<[1], [0], [0], [1], [0, 0, 1, 1], [], []>} : vector<64x16xf32>, vector<16x32xf32>, vector<64x32xf32> -> vector<64x32xf32>
    %270 = arith.addf %267, %269 : vector<64x32xf32>
    %c0_37 = arith.constant 0 : index
    %c0_38 = arith.constant 0 : index
    %271 = vector.load %arg13[%c0_37, %c0_38] : memref<1x32xf32, #tpu.memory_space<vmem>>, vector<1x32xf32>
    %272 = vector.broadcast %271 : vector<1x32xf32> to vector<64x32xf32>
    %273 = arith.addf %270, %272 : vector<64x32xf32>
    %cst_39 = arith.constant 0.000000e+00 : f32
    %274 = vector.broadcast %cst_39 : f32 to vector<64x32xf32>
    %275 = arith.maximumf %273, %274 : vector<64x32xf32>
    %c0_40 = arith.constant 0 : index
    %c0_41 = arith.constant 0 : index
    %276 = vector.load %arg14[%c0_40, %c0_41] : memref<32x32xf32, #tpu.memory_space<vmem>>, vector<32x32xf32>
    %cst_42 = arith.constant dense<0.000000e+00> : vector<64x32xf32>
    %277 = tpu.matmul %275, %276, %cst_42 {dimension_numbers = #tpu.dot_dimension_numbers<[1], [0], [0], [1], [0, 0, 1, 1], [], []>} : vector<64x32xf32>, vector<32x32xf32>, vector<64x32xf32> -> vector<64x32xf32>
    %c0_43 = arith.constant 0 : index
    %c0_44 = arith.constant 0 : index
    %278 = vector.load %arg15[%c0_43, %c0_44] : memref<1x32xf32, #tpu.memory_space<vmem>>, vector<1x32xf32>
    %279 = vector.broadcast %278 : vector<1x32xf32> to vector<64x32xf32>
    %280 = arith.addf %277, %279 : vector<64x32xf32>
    %cst_45 = arith.constant 0.000000e+00 : f32
    %281 = vector.broadcast %cst_45 : f32 to vector<64x32xf32>
    %282 = arith.maximumf %280, %281 : vector<64x32xf32>
    %c0_46 = arith.constant 0 : index
    %c0_47 = arith.constant 0 : index
    %283 = vector.load %arg16[%c0_46, %c0_47] : memref<32x32xf32, #tpu.memory_space<vmem>>, vector<32x32xf32>
    %cst_48 = arith.constant dense<0.000000e+00> : vector<64x32xf32>
    %284 = tpu.matmul %282, %283, %cst_48 {dimension_numbers = #tpu.dot_dimension_numbers<[1], [0], [0], [1], [0, 0, 1, 1], [], []>} : vector<64x32xf32>, vector<32x32xf32>, vector<64x32xf32> -> vector<64x32xf32>
    %c0_49 = arith.constant 0 : index
    %c0_50 = arith.constant 0 : index
    %285 = vector.load %arg17[%c0_49, %c0_50] : memref<1x32xf32, #tpu.memory_space<vmem>>, vector<1x32xf32>
    %286 = vector.broadcast %285 : vector<1x32xf32> to vector<64x32xf32>
    %287 = arith.addf %284, %286 : vector<64x32xf32>
    %cst_51 = arith.constant 0.000000e+00 : f32
    %288 = vector.broadcast %cst_51 : f32 to vector<64x32xf32>
    %289 = arith.maximumf %287, %288 : vector<64x32xf32>
    %c0_52 = arith.constant 0 : index
    %c0_53 = arith.constant 0 : index
    %290 = vector.load %arg18[%c0_52, %c0_53] : memref<32x32xf32, #tpu.memory_space<vmem>>, vector<32x32xf32>
    %cst_54 = arith.constant dense<0.000000e+00> : vector<64x32xf32>
    %291 = tpu.matmul %289, %290, %cst_54 {dimension_numbers = #tpu.dot_dimension_numbers<[1], [0], [0], [1], [0, 0, 1, 1], [], []>} : vector<64x32xf32>, vector<32x32xf32>, vector<64x32xf32> -> vector<64x32xf32>
    %c0_55 = arith.constant 0 : index
    %c0_56 = arith.constant 0 : index
    %292 = vector.load %arg19[%c0_55, %c0_56] : memref<1x32xf32, #tpu.memory_space<vmem>>, vector<1x32xf32>
    %293 = vector.broadcast %292 : vector<1x32xf32> to vector<64x32xf32>
    %294 = arith.addf %291, %293 : vector<64x32xf32>
    %295 = vector.shape_cast %294 : vector<64x32xf32> to vector<8x8x32xf32>
    %c0_57 = arith.constant 0 : index
    %c0_58 = arith.constant 0 : index
    %296 = vector.load %arg20[%c0_57, %c0_58] : memref<1x32xf32, #tpu.memory_space<vmem>>, vector<1x32xf32>
    %297 = vector.shape_cast %296 : vector<1x32xf32> to vector<1x1x32xf32>
    %298 = vector.broadcast %297 : vector<1x1x32xf32> to vector<8x8x32xf32>
    %299 = arith.mulf %295, %298 : vector<8x8x32xf32>
    %cst_59 = arith.constant dense<0.000000e+00> : vector<8x8xf32>
    %300 = vector.multi_reduction <add>, %299, %cst_59 [2] : vector<8x8x32xf32> to vector<8x8xf32>
    %301 = arith.mulf %300, %12 : vector<8x8xf32>
    %cst_60 = arith.constant dense<0.000000e+00> : vector<8xf32>
    %302 = vector.multi_reduction <add>, %301, %cst_60 [1] : vector<8x8xf32> to vector<8xf32>
    %303 = vector.shape_cast %302 : vector<8xf32> to vector<1x8xf32>
    %c0_61 = arith.constant 0 : index
    %c0_62 = arith.constant 0 : index
    %304 = vector.load %arg21[%c0_61, %c0_62] : memref<1x8xf32, #tpu.memory_space<vmem>>, vector<1x8xf32>
    tpu.vector_store %arg21[%c0_61, %c0_62], %303 {strides = array<i32>} : memref<1x8xf32, #tpu.memory_space<vmem>>, vector<1x8xf32>,
    return
  }
  func.func @transform_0(%arg0: i32) -> (i32, i32) {
    %c0_i32 = arith.constant 0 : i32
    %c0_i32_0 = arith.constant 0 : i32
    return %arg0, %c0_i32 : i32, i32
  }
  func.func @transform_1(%arg0: i32) -> (i32, i32, i32) {
    %c0_i32 = arith.constant 0 : i32
    %c0_i32_0 = arith.constant 0 : i32
    %c0_i32_1 = arith.constant 0 : i32
    return %arg0, %c0_i32, %c0_i32_0 : i32, i32, i32
  }
  func.func @transform_2(%arg0: i32) -> (i32, i32) {
    %c0_i32 = arith.constant 0 : i32
    %c0_i32_0 = arith.constant 0 : i32
    return %arg0, %c0_i32 : i32, i32
  }
  func.func @transform_3(%arg0: i32) -> (i32, i32) {
    %c0_i32 = arith.constant 0 : i32
    %c0_i32_0 = arith.constant 0 : i32
    %c0_i32_1 = arith.constant 0 : i32
    return %c0_i32, %c0_i32_0 : i32, i32
  }
  func.func @transform_4(%arg0: i32) -> (i32, i32) {
    %c0_i32 = arith.constant 0 : i32
    %c0_i32_0 = arith.constant 0 : i32
    %c0_i32_1 = arith.constant 0 : i32
    return %c0_i32, %c0_i32_0 : i32, i32
  }
  func.func @transform_5(%arg0: i32) -> (i32, i32) {
    %c0_i32 = arith.constant 0 : i32
    %c0_i32_0 = arith.constant 0 : i32
    %c0_i32_1 = arith.constant 0 : i32
    return %c0_i32, %c0_i32_0 : i32, i32
  }
  func.func @transform_6(%arg0: i32) -> (i32, i32) {
    %c0_i32 = arith.constant 0 : i32
    %c0_i32_0 = arith.constant 0 : i32
    %c0_i32_1 = arith.constant 0 : i32
    return %c0_i32, %c0_i32_0 : i32, i32
  }
  func.func @transform_7(%arg0: i32) -> (i32, i32) {
    %c0_i32 = arith.constant 0 : i32
    %c0_i32_0 = arith.constant 0 : i32
    %c0_i32_1 = arith.constant 0 : i32
    return %c0_i32, %c0_i32_0 : i32, i32
  }
  func.func @transform_8(%arg0: i32) -> (i32, i32) {
    %c0_i32 = arith.constant 0 : i32
    %c0_i32_0 = arith.constant 0 : i32
    %c0_i32_1 = arith.constant 0 : i32
    return %c0_i32, %c0_i32_0 : i32, i32
  }
  func.func @transform_9(%arg0: i32) -> (i32, i32) {
    %c0_i32 = arith.constant 0 : i32
    %c0_i32_0 = arith.constant 0 : i32
    %c0_i32_1 = arith.constant 0 : i32
    return %c0_i32, %c0_i32_0 : i32, i32
  }
  func.func @transform_10(%arg0: i32) -> (i32, i32) {
    %c0_i32 = arith.constant 0 : i32
    %c0_i32_0 = arith.constant 0 : i32
    %c0_i32_1 = arith.constant 0 : i32
    return %c0_i32, %c0_i32_0 : i32, i32
  }
  func.func @transform_11(%arg0: i32) -> (i32, i32) {
    %c0_i32 = arith.constant 0 : i32
    %c0_i32_0 = arith.constant 0 : i32
    %c0_i32_1 = arith.constant 0 : i32
    return %c0_i32, %c0_i32_0 : i32, i32
  }
  func.func @transform_12(%arg0: i32) -> (i32, i32) {
    %c0_i32 = arith.constant 0 : i32
    %c0_i32_0 = arith.constant 0 : i32
    %c0_i32_1 = arith.constant 0 : i32
    return %c0_i32, %c0_i32_0 : i32, i32
  }
  func.func @transform_13(%arg0: i32) -> (i32, i32) {
    %c0_i32 = arith.constant 0 : i32
    %c0_i32_0 = arith.constant 0 : i32
    %c0_i32_1 = arith.constant 0 : i32
    return %c0_i32, %c0_i32_0 : i32, i32
  }
  func.func @transform_14(%arg0: i32) -> (i32, i32) {
    %c0_i32 = arith.constant 0 : i32
    %c0_i32_0 = arith.constant 0 : i32
    %c0_i32_1 = arith.constant 0 : i32
    return %c0_i32, %c0_i32_0 : i32, i32
  }
  func.func @transform_15(%arg0: i32) -> (i32, i32) {
    %c0_i32 = arith.constant 0 : i32
    %c0_i32_0 = arith.constant 0 : i32
    %c0_i32_1 = arith.constant 0 : i32
    return %c0_i32, %c0_i32_0 : i32, i32
  }
  func.func @transform_16(%arg0: i32) -> (i32, i32) {
    %c0_i32 = arith.constant 0 : i32
    %c0_i32_0 = arith.constant 0 : i32
    %c0_i32_1 = arith.constant 0 : i32
    return %c0_i32, %c0_i32_0 : i32, i32
  }
  func.func @transform_17(%arg0: i32) -> (i32, i32) {
    %c0_i32 = arith.constant 0 : i32
    %c0_i32_0 = arith.constant 0 : i32
    %c0_i32_1 = arith.constant 0 : i32
    return %c0_i32, %c0_i32_0 : i32, i32
  }
  func.func @transform_18(%arg0: i32) -> (i32, i32) {
    %c0_i32 = arith.constant 0 : i32
    %c0_i32_0 = arith.constant 0 : i32
    %c0_i32_1 = arith.constant 0 : i32
    return %c0_i32, %c0_i32_0 : i32, i32
  }
  func.func @transform_19(%arg0: i32) -> (i32, i32) {
    %c0_i32 = arith.constant 0 : i32
    %c0_i32_0 = arith.constant 0 : i32
    %c0_i32_1 = arith.constant 0 : i32
    return %c0_i32, %c0_i32_0 : i32, i32
  }
  func.func @transform_20(%arg0: i32) -> (i32, i32) {
    %c0_i32 = arith.constant 0 : i32
    %c0_i32_0 = arith.constant 0 : i32
    return %arg0, %c0_i32 : i32, i32
  }
}

</mosaic_0001>

<bundles_post_ra>
// kernel: tpu_custom_call.1
= control target key start
LH: loop header
LB: loop body
LE: loop exit
PB: predicated region body
PF: predicated region fallthrough
CT: control target
= control target key end

     0   :  { %s6358_s0 = inlined_call_operand.hbm [shape: s32[8,8], index: 0, kind: input, shape index: {}]   ;;  %s6359_s1 = inlined_call_operand.vmem [shape: f32[8,8,3], index: 1, kind: input, shape index: {}]   ;;  %s6360_s2 = inlined_call_operand.hbm [shape: f32[8,8], index: 2, kind: input, shape index: {}]   ;;  %s6361_s3 = inlined_call_operand.vmem [shape: f32[21,16], index: 3, kind: input, shape index: {}]   ;;  %s6362_s4 = inlined_call_operand.hbm [shape: f32[16,16], index: 4, kind: input, shape index: {}]   ;;  %s6363_s5 = inlined_call_operand.vmem [shape: f32[1,16], index: 5, kind: input, shape index: {}]   ;;  %s6364_s6 = inlined_call_operand.vmem [shape: f32[16,16], index: 6, kind: input, shape index: {}]   ;;  %s6365_s7 = inlined_call_operand.vmem [shape: f32[1,16], index: 7, kind: input, shape index: {}]   ;;  %s6366_s8 = inlined_call_operand.hbm [shape: f32[16,16], index: 8, kind: input, shape index: {}]   ;;  %s6367_s9 = inlined_call_operand.vmem [shape: f32[1,16], index: 9, kind: input, shape index: {}]   ;;  %s6368_s10 = inlined_call_operand.hbm [shape: f32[16,32], index: 10, kind: input, shape index: {}]   ;;  %s6369_s11 = inlined_call_operand.hbm [shape: f32[16,32], index: 11, kind: input, shape index: {}]   ;;  %s6370_s12 = inlined_call_operand.vmem [shape: f32[1,32], index: 12, kind: input, shape index: {}]   ;;  %s6371_s13 = inlined_call_operand.vmem [shape: f32[32,32], index: 13, kind: input, shape index: {}]   ;;  %s6372_s14 = inlined_call_operand.vmem [shape: f32[1,32], index: 14, kind: input, shape index: {}]   ;;  %s6373_s15 = inlined_call_operand.vmem [shape: f32[32,32], index: 15, kind: input, shape index: {}]   ;;  %s6374_s16 = inlined_call_operand.vmem [shape: f32[1,32], index: 16, kind: input, shape index: {}]   ;;  %s6375_s17 = inlined_call_operand.vmem [shape: f32[32,32], index: 17, kind: input, shape index: {}]   ;;  %s6376_s18 = inlined_call_operand.vmem [shape: f32[1,32], index: 18, kind: input, shape index: {}]   ;;  %s6377_s19 = inlined_call_operand.vmem [shape: f32[1,32], index: 19, kind: input, shape index: {}]   ;;  %s6378_s20 = inlined_call_operand.hbm [shape: f32[1,8], index: 20, kind: output, shape index: {}]  }
   0x1   :  { %6499 = sst [smem:[#allocation78_spill]] %s6358_s0 }
   0x2   :  { %6500 = sst [smem:[#allocation79_spill]] %s6359_s1 }
   0x3   :  { %6501 = sst [smem:[#allocation80_spill]] %s6360_s2 }
   0x4   :  { %6502 = sst [smem:[#allocation81_spill]] %s6361_s3 }
   0x5   :  { %6503 = sst [smem:[#allocation82_spill]] %s6362_s4 }
   0x6   :  { %25 = vsyncpa [#allocation3], 0 }
   0x7   :  { %26 = vsyncpa [#allocation6], 0 }
   0x8   :  { %27 = vsyncpa [#allocation9], 0 }
   0x9   :  { %28 = vsyncpa [#allocation12], 0 }
   0xa   :  { %29 = vsyncpa [#allocation4], 0  ;;  %s4854_s1 = smov [#allocation5]  }
   0xb   :  { %s48_s22 = sshll.u32 %s4854_s1, 4  ;;  %s49_s22 = int_to_ptr.vmem [resolvable:$true] %s48_s22 }
   0xc   :  { %s4712_s23 = scalar_lea.vmem %s49_s22, 128  ;;  %p4717_p1 = scmp.lt.s32.totalorder %s49_s22, %s49_s22 }
   0xd   :  { %p4713_p0 = scmp.ne.s32.totalorder %s49_s22, %s4712_s23  ;;  %p4718_p2 = scmp.lt.s32.totalorder %s4712_s23, %s4712_s23 }
   0xf   :  { %p4719_p3 = por %p4718_p2, %p4717_p1 }
  0x11   :  { %p4720_p4 = pnand %p4719_p3, %p4713_p0 }
  0x13   :  { %4723 = shalt.err (!%p4720_p4)
}
  0x14   :  { %s6504_s25 = sld [smem:[#allocation80_spill]]  ;;  %s4855_s3 = smov [#allocation8]  }
  0x15   :  { %s77_s26 = sshll.u32 %s4855_s3, 4  ;;  %s4856_s27 = smov [#allocation2]   ;;  %s78_s26 = int_to_ptr.vmem [resolvable:$true] %s77_s26 }
  0x16   :  { %s36_s28 = sshll.u32 %s4856_s27, 4  ;;  %s4732_s4 = scalar_lea.vmem %s78_s26, 256  ;;  %s37_s28 = int_to_ptr.vmem [resolvable:$true] %s36_s28 }
  0x17   :  { %p4733_p5 = scmp.ne.s32.totalorder %s78_s26, %s4732_s4  ;;  %p4737_p6 = scmp.lt.s32.totalorder %s78_s26, %s78_s26 }
  0x18   :  { %p4738_p7 = scmp.lt.s32.totalorder %s4732_s4, %s4732_s4 }
  0x1a   :  { %51 = dma.hbm_to_vmem [thread:$0]  %s6504_s25, 128, %s49_s22, [#allocation6]  }
  0x1b   :  { %p4739_p8 = por %p4738_p7, %p4737_p6 }
  0x1d   :  { %p4740_p9 = pnand %p4739_p8, %p4733_p5 }
  0x1f   :  { %4743 = shalt.err (!%p4740_p9)
}
  0x20   :  { %s4857_s29 = smov 128   ;;  %s4858_s30 = smov 8  }
  0x21   :  { %83 = dma.hbm_to_vmem [thread:$0]  %s6366_s8, 256, %s78_s26, [#allocation9], %s4857_s29, %s4857_s29, %s4858_s30  }
  0x22   :  { %s4752_s1 = scalar_lea.vmem %s37_s28, 128  ;;  %p4757_p11 = scmp.lt.s32.totalorder %s37_s28, %s37_s28 }
  0x23   :  { %p4753_p10 = scmp.ne.s32.totalorder %s37_s28, %s4752_s1  ;;  %p4758_p12 = scmp.lt.s32.totalorder %s4752_s1, %s4752_s1 }
  0x25   :  { %p4759_p13 = por %p4758_p12, %p4757_p11 }
  0x27   :  { %p4760_p0 = pnand %p4759_p13, %p4753_p10 }
  0x29   :  { %4763 = shalt.err (!%p4760_p0)
}
  0x2a   :  { %s6505_s24 = sld [smem:[#allocation78_spill]]  ;;  %s4859_s2 = smov [#allocation7]  }
  0x2b   :  { %s59_s25 = sshll.u32 %s4859_s2, 4  ;;  %s4860_s3 = smov [#allocation10]   ;;  %s60_s25 = int_to_ptr.vmem [resolvable:$true] %s59_s25 }
  0x2c   :  { %s91_s27 = sshll.u32 %s4860_s3, 4  ;;  %s4772_s4 = scalar_lea.vmem %s60_s25, 256  ;;  %s92_s27 = int_to_ptr.vmem [resolvable:$true] %s91_s27 }
  0x2d   :  { %p4773_p1 = scmp.ne.s32.totalorder %s60_s25, %s4772_s4  ;;  %p4777_p2 = scmp.lt.s32.totalorder %s60_s25, %s60_s25 }
  0x2e   :  { %p4778_p3 = scmp.lt.s32.totalorder %s4772_s4, %s4772_s4 }
  0x30   :  { %39 = dma.hbm_to_vmem [thread:$0]  %s6505_s24, 128, %s37_s28, [#allocation3]  }
  0x31   :  { %p4779_p4 = por %p4778_p3, %p4777_p2 }
  0x33   :  { %p4780_p5 = pnand %p4779_p4, %p4773_p1 }
  0x35   :  { %4783 = shalt.err (!%p4780_p5)
}
  0x36   :  { %s6506_s0 = sld [smem:[#allocation82_spill]]  ;;  %s4792_s28 = scalar_lea.vmem %s92_s27, 256 }
  0x37   :  { %p4793_p6 = scmp.ne.s32.totalorder %s92_s27, %s4792_s28  ;;  %p4797_p7 = scmp.lt.s32.totalorder %s92_s27, %s92_s27 }
  0x38   :  { %p4798_p8 = scmp.lt.s32.totalorder %s4792_s28, %s4792_s28 }
  0x3a   :  { %p4799_p9 = por %p4798_p8, %p4797_p7 }
  0x3c   :  { %65 = dma.hbm_to_vmem [thread:$0]  %s6506_s0, 256, %s60_s25, [#allocation6], %s4857_s29, %s4857_s29, %s4858_s30  }
  0x3d   :  { %p4800_p10 = pnand %p4799_p9, %p4793_p6 }
  0x3f   :  { %4803 = shalt.err (!%p4800_p10)
}
  0x40   :  { %97 = dma.hbm_to_vmem [thread:$0]  %s6368_s10, 256, %s92_s27, [#allocation9], %s4857_s29, %s4857_s29, %s4858_s30  }
  0x41   :  { %s4861_s22 = smov [#allocation11]  }
  0x42   :  { %s103_s23 = sshll.u32 %s4861_s22, 4  ;;  %s104_s23 = int_to_ptr.vmem [resolvable:$true] %s103_s23 }
  0x43   :  { %s4812_s24 = scalar_lea.vmem %s104_s23, 256  ;;  %p4817_p12 = scmp.lt.s32.totalorder %s104_s23, %s104_s23 }
  0x44   :  { %p4813_p11 = scmp.ne.s32.totalorder %s104_s23, %s4812_s24  ;;  %p4818_p13 = scmp.lt.s32.totalorder %s4812_s24, %s4812_s24 }
  0x46   :  { %p4819_p0 = por %p4818_p13, %p4817_p12 }
  0x48   :  { %p4820_p1 = pnand %p4819_p0, %p4813_p11 }
  0x4a   :  { %4823 = shalt.err (!%p4820_p1)
}
  0x4b   :  { %109 = dma.hbm_to_vmem [thread:$0]  %s6369_s11, 256, %s104_s23, [#allocation12], %s4857_s29, %s4857_s29, %s4858_s30  }
  0x4c   :  { %4844 = dma.done.wait [#allocation3], 128  }
  0x4d   :  { %4845 = vsyncadd [#allocation3], 4294967168 }
  0x4e   :  { %4846 = dma.done.wait [#allocation6], 384  }
  0x4f   :  { %4847 = vsyncadd [#allocation6], 4294966912 }
  0x50   :  { %4848 = dma.done.wait [#allocation9], 512  }
  0x51   :  { %4849 = vsyncadd [#allocation9], 4294966784 }
  0x52   :  { %4850 = dma.done.wait [#allocation12], 256  }
  0x53   :  { %4851 = vsyncadd [#allocation12], 4294967040  ;;  %v145_v0 = vlaneseq  ;;  %v144_v6 = vld [vmem:[#allocation2] sm:$0xff]  ;;  %vm255_vm0 = vcmask 1044480   ;;  %s6508_s29 = sld [smem:[#allocation81_spill]]  ;;  %v4862_v30 = vmov 1  }
  0x54   :  { %s6509_s0 = sld [smem:[#allocation79_spill]]  ;;  %v4863_v31 = vmov 0   ;;  %v4864_v32 = vmov 2   ;;  %vm230_vm1 = vcmask 171008   ;;  %v4865_v36 = vmov 0.0   ;;  %v1067_v51 = vld [vmem:[#allocation7 + $0x8] sm:$0xff] }
  0x55   :  { %v5009_v1 = vshrl.u32 %v145_v0, 7  ;;  %v5095_v33 = vand.u32 127, %v145_v0  ;;  %4444 = vmatprep.subr.mxu1 %v1067_v51  ;;  %v1066_v52 = vld [vmem:[#allocation7] sm:$0xff]  ;;  %v4866_v59 = vmov 1966171168   ;;  %v628_v62 = vld [vmem:[#allocation5] sm:$0xff] }
  0x56   :  { %4445 = vmatpush3.msra.mxu1 %v1067_v51  ;;  %v898_v60 = vunpack.c.l.s4 %v4866_v59  ;;  %v4256_v63 = vadd.f32 -1.0, %v628_v62  ;;  %vm1017_vm10 = vcmask 64512   ;;  %vm1068_vm11 = vcmask 130048  }
  0x57   :  { %6507 = vst [vmem:[#allocation19_spill] sm:$0xff] %v5009_v1  ;;  %v5012_v2 = vsub.s32 0, %v5009_v1  ;;  %v5015_v3 = vsub.s32 2, %v5009_v1  ;;  %v5018_v4 = vsub.s32 3, %v5009_v1  ;;  %v5021_v5 = vsub.s32 1, %v5009_v1  ;;  %6510 = vst [vmem:[#allocation20_spill] sm:$0xff] %v5095_v33  ;;  %4446 = vmatprep.subr.mxu1 %v1066_v52 }
  0x58   :  { %v5026_v9 = vsub.s32 5, %v5009_v1  ;;  %v5031_v12 = vsub.s32 4, %v5009_v1  ;;  %v5045_v18 = vsub.s32 7, %v5009_v1  ;;  %v5048_v19 = vsub.s32 6, %v5009_v1  ;;  %4447 = vmatpush3.msra.mxu1 %v1066_v52 }
  0x59   :  { %v162_v7 = vrot.slane %v144_v6, %v5015_v3  ;;  %v148_v8 = vrot.slane %v144_v6, %v5012_v2  ;;  %v169_v10 = vrot.slane %v144_v6, %v5018_v4  ;;  %v155_v11 = vrot.slane %v144_v6, %v5021_v5  ;;  %v229_v13 = vld [vmem:[%s6508_s29 + $0x10] sm:$0x1f]  ;;  %v228_v14 = vld [vmem:[%s6508_s29 + $0x8] sm:$0xff]  ;;  %v227_v15 = vld [vmem:[%s6508_s29] sm:$0xff] }
  0x5a   :  { %4426 = vmatprep.subr.msk.mxu0 %vm255_vm0, %v229_v13  ;;  %v183_v16 = vrot.slane %v144_v6, %v5026_v9  ;;  %v176_v17 = vrot.slane %v144_v6, %v5031_v12  ;;  %v197_v20 = vrot.slane %v144_v6, %v5045_v18  ;;  %v190_v21 = vrot.slane %v144_v6, %v5048_v19  ;;  %v364_v22 = vld [vmem:[%s6509_s0] sm:$0xff]  ;;  %v366_v23 = vld [vmem:[%s6509_s0 + $0x10] sm:$0xff]  ;;  %v367_v24 = vld [vmem:[%s6509_s0 + $0x18] sm:$0xff] }
  0x5b   :  { %164 = vbcast.lane.b32.xlu1 %v162_v7, 256  ;;  %150 = vbcast.lane.b32.xlu0 %v148_v8, 256  ;;  %v365_v25 = vld [vmem:[%s6509_s0 + $0x8] sm:$0xff]  ;;  %v5067_v26 = vld [vmem:[%s6509_s0 + $0x20] sm:$0xff]  ;;  %v5078_v28 = vld [vmem:[%s6509_s0 + $0x30] sm:$0xff]  ;;  %v899_v0 = vunpack.c.0.s8 %v898_v60  ;;  %vm3593_vm12 = vcmask 261120  }
  0x5c   :  { %4427 = vmatpush3.msk.msra.mxu0 %vm255_vm0, %v229_v13  ;;  %v5073_v27 = vld [vmem:[%s6509_s0 + $0x28] sm:$0xff]  ;;  %v5085_v29 = vld [vmem:[%s6509_s0 + $0x38] sm:$0xff]  ;;  %v5146_v8 = vmul.f32 1e+09, %v4256_v63  ;;  %vm4195_vm13 = vcmask 1041409   ;;  %vm4197_vm14 = vcmask 1042434  }
  0x5d   :  { %4428 = vmatprep.subr.mxu0 %v228_v14  ;;  %vm4199_vm15 = vcmask 1043459   ;;  %vm4201_vm0 = vcmask 1044484  }
  0x5e   :  { %4429 = vmatpush3.msra.mxu0 %v228_v14 }
  0x5f   :  { %171 = vbcast.lane.b32.xlu1 %v169_v10, 256  ;;  %157 = vbcast.lane.b32.xlu0 %v155_v11, 256  ;;  %v5149_v10 = vsub.s32 %v899_v0, %v5009_v1 }
  0x60   :  { %4430 = vmatprep.subr.mxu0 %v227_v15 }
  0x61   :  { %4431 = vmatpush3.msra.mxu0 %v227_v15 }
  0x63   :  { %185 = vbcast.lane.b32.xlu1 %v183_v16, 256  ;;  %178 = vbcast.lane.b32.xlu0 %v176_v17, 256  ;;  %v903_v16 = vrot.slane %v5146_v8, %v5149_v10 }
  0x67   :  { %199 = vbcast.lane.b32.xlu1 %v197_v20, 256  ;;  %192 = vbcast.lane.b32.xlu0 %v190_v21, 256 }
  0x85   :  { %372 = vxpose.xlu0.b32.start.end [1/1] (short) (narrow) %v364_v22, 8 }
  0x89   :  { %436 = vxpose.xlu0.b32.start.end [1/1] (short) (narrow) %v366_v23, 8 }
  0x8d   :  { %468 = vxpose.xlu0.b32.start.end [1/1] (short) (narrow) %v367_v24, 8 }
  0x90   :  { %404 = vxpose.xlu1.b32.start.end [1/1] (short) (narrow) %v365_v25, 8 }
  0x91   :  { %500 = vxpose.xlu0.b32.start.end [1/1] (short) (narrow) %v5067_v26, 8 }
  0x94   :  { %532 = vxpose.xlu1.b32.start.end [1/1] (short) (narrow) %v5073_v27, 8 }
  0x95   :  { %564 = vxpose.xlu0.b32.start.end [1/1] (short) (narrow) %v5078_v28, 8 }
  0x98   :  { %596 = vxpose.xlu1.b32.start.end [1/1] (short) (narrow) %v5085_v29, 8 }
  0xb6   :  { %4609 = vset.pattern.permute.xlu1 %v4862_v30 }
  0xb7   :  { %718 = vperm.xlu1 %4609, %v364_v22  }
  0xbb   :  { %4610 = vset.pattern.permute.xlu1 %v4863_v31 }
  0xbc   :  { %636 = vperm.xlu1 %4610, %v365_v25  }
  0xbe   :  { %4607 = vset.pattern.permute.xlu0 %v4863_v31 }
  0xbf   :  { %631 = vperm.xlu0 %4607, %v364_v22  }
  0xc0   :  { %4611 = vset.pattern.permute.xlu1 %v4864_v32 }
  0xc1   :  { %806 = vperm.xlu1 %4611, %v364_v22  }
  0xc3   :  { %641 = vperm.xlu0 %4607, %v366_v23  }
  0xc5   :  { %810 = vperm.xlu1 %4611, %v365_v25  }
  0xc7   :  { %651 = vperm.xlu0 %4607, %v5067_v26  }
  0xc9   :  { %4612 = vset.pattern.permute.xlu1 %v4862_v30 }
  0xca   :  { %726 = vperm.xlu1 %4612, %v366_v23  }
  0xcb   :  { %661 = vperm.xlu0 %4607, %v5078_v28  }
  0xcd   :  { %v151_v34 = vpop.permute.xlu0 %150  ;;  %v165_v35 = vpop.permute.xlu1 %164 }
  0xce   :  { %4613 = vset.pattern.permute.xlu1 %v4863_v31  ;;  %vm203_vm2 = vcmp.eq.s32.totalorder %v5095_v33, %v151_v34  ;;  %vm205_vm3 = vcmp.eq.s32.totalorder %v5095_v33, %v165_v35 }
  0xcf   :  { %646 = vperm.xlu1 %4613, %v367_v24   ;;  %4608 = vset.pattern.permute.xlu0 %v4862_v30  ;;  %v4239_v37 = vsel %vm203_vm2, 1.0, %v4865_v36  ;;  %v4241_v40 = vsel %vm205_vm3, 1.0, %v4865_v36  ;;  %vm4205_vm2 = vcmask 1046534   ;;  %vm4207_vm3 = vcmask 1047559  }
  0xd0   :  { %722 = vperm.xlu0 %4608, %v365_v25   ;;  %4432 = vmatprep.mubr.msk.f32.mxu0 %vm230_vm1, %v4239_v37  ;;  %v919_v25 = vrot.slane %v903_v16, %v5149_v10 }
  0xd1   :  { %v158_v38 = vpop.permute.xlu0 %157  ;;  %v172_v39 = vpop.permute.xlu1 %171 }
  0xd2   :  { %vm204_vm4 = vcmp.eq.s32.totalorder %v5095_v33, %v158_v38  ;;  %vm206_vm5 = vcmp.eq.s32.totalorder %v5095_v33, %v172_v39  ;;  %v956_v35 = vrot.slane %v919_v25, %v5012_v2 }
  0xd3   :  { %v4240_v41 = vsel %vm204_vm4, 1.0, %v4865_v36  ;;  %4614 = vset.pattern.permute.xlu1 %v4864_v32  ;;  %v4242_v44 = vsel %vm206_vm5, 1.0, %v4865_v36  ;;  %vm4219_vm4 = vcmask 57344  }
  0xd4   :  { %814 = vperm.xlu1 %4614, %v366_v23   ;;  %730 = vperm.xlu0 %4608, %v367_v24  }
  0xd5   :  { %4433 = vmatmul.mubr.msk.f32.vlgmr.msra.gmra.mxu0 %vm230_vm1, %v4240_v41  ;;  %v179_v42 = vpop.permute.xlu0 %178  ;;  %v186_v43 = vpop.permute.xlu1 %185 }
  0xd6   :  { %vm207_vm6 = vcmp.eq.s32.totalorder %v5095_v33, %v179_v42  ;;  %4435 = vmatprep.mubr.msk.f32.mxu0 %vm230_vm1, %v4241_v40  ;;  %vm208_vm7 = vcmp.eq.s32.totalorder %v5095_v33, %v186_v43 }
  0xd7   :  { %v4243_v45 = vsel %vm207_vm6, 1.0, %v4865_v36  ;;  %v4244_v48 = vsel %vm208_vm7, 1.0, %v4865_v36 }
  0xd8   :  { %818 = vperm.xlu1 %4614, %v367_v24   ;;  %738 = vperm.xlu0 %4608, %v5073_v27  }
  0xd9   :  { %4436 = vmatmul.mubr.msk.f32.gmra.mxu0 %vm230_vm1, %v4242_v44  ;;  %v193_v46 = vpop.permute.xlu0 %192  ;;  %v200_v47 = vpop.permute.xlu1 %199 }
  0xda   :  { %4438 = vmatprep.mubr.msk.f32.mxu0 %vm230_vm1, %v4243_v45  ;;  %vm209_vm8 = vcmp.eq.s32.totalorder %v5095_v33, %v193_v46  ;;  %vm210_vm9 = vcmp.eq.s32.totalorder %v5095_v33, %v200_v47  ;;  %v911_v47 = vcombine.high %v903_v16, %v903_v16  ;;  %v941_v16 = vcombine.high %v919_v25, %v919_v25 }
  0xdb   :  { %v4245_v49 = vsel %vm209_vm8, 1.0, %v4865_v36  ;;  %v4246_v50 = vsel %vm210_vm9, 1.0, %v4865_v36 }
  0xdc   :  { %4615 = vset.pattern.permute.xlu1 %v4862_v30  ;;  %746 = vperm.xlu0 %4608, %v5085_v29   ;;  %v933_v63 = vrot.slane %v911_v47, %v5149_v10 }
  0xdd   :  { %4439 = vmatmul.mubr.msk.f32.gmra.mxu0 %vm230_vm1, %v4244_v48  ;;  %734 = vperm.xlu1 %4615, %v5067_v26  }
  0xde   :  { %4441 = vmatprep.mubr.msk.f32.mxu0 %vm230_vm1, %v4245_v49 }
  0xe1   :  { %4616 = vset.pattern.permute.xlu1 %v4863_v31  ;;  %4442 = vmatmul.mubr.msk.f32.gmra.mxu0 %vm230_vm1, %v4246_v50  ;;  %vm4203_vm1 = vcmask 1045509  }
  0xe2   :  { %656 = vperm.xlu1 %4616, %v5073_v27  }
  0xe6   :  { %4617 = vset.pattern.permute.xlu1 %v4864_v32 }
  0xe7   :  { %822 = vperm.xlu1 %4617, %v5067_v26  }
  0xeb   :  { %826 = vperm.xlu1 %4617, %v5073_v27  }
  0xef   :  { %4618 = vset.pattern.permute.xlu1 %v4862_v30 }
  0xf0   :  { %742 = vperm.xlu1 %4618, %v5078_v28  }
  0xf4   :  { %4619 = vset.pattern.permute.xlu1 %v4863_v31 }
  0xf5   :  { %666 = vperm.xlu1 %4619, %v5085_v29  }
  0xf9   :  { %4620 = vset.pattern.permute.xlu1 %v4864_v32 }
  0xfa   :  { %830 = vperm.xlu1 %4620, %v5078_v28  }
  0xfe   :  { %834 = vperm.xlu1 %4620, %v5085_v29  }
 0x101   :  { %v388_v53 = vpop.trf.xlu0 }
 0x102   :  { %4621 = vset.pattern.permute.xlu1 %v4863_v31  ;;  %v752_v11 = vrot.slane %v388_v53, %v5021_v5  ;;  %v672_v15 = vrot.slane %v388_v53, %v5012_v2  ;;  %v840_v21 = vrot.slane %v388_v53, %v5015_v3 }
 0x105   :  { %v5134_v55 = vpop.trf.xlu0 }
 0x106   :  { %v760_v44 = vrot.slane %v5134_v55, %v5021_v5  ;;  %v680_v45 = vrot.slane %v5134_v55, %v5012_v2  ;;  %v848_v0 = vrot.slane %v5134_v55, %v5015_v3  ;;  %v960_v55 = vrot.slane %v933_v63, %v5012_v2 }
 0x109   :  { %v5138_v57 = vpop.trf.xlu0 }
 0x10a   :  { %v684_v62 = vrot.slane %v5138_v57, %v5012_v2 }
 0x10c   :  { %v420_v54 = vpop.trf.xlu1 }
 0x10d   :  { %v5142_v61 = vpop.trf.xlu0  ;;  %v676_v41 = vrot.slane %v420_v54, %v5012_v2  ;;  %v844_v46 = vrot.slane %v420_v54, %v5015_v3  ;;  %v756_v51 = vrot.slane %v420_v54, %v5021_v5 }
 0x110   :  { %v5136_v56 = vpop.trf.xlu1 }
 0x111   :  { %v5144_v7 = vpop.trf.xlu0 }
 0x114   :  { %v5140_v58 = vpop.trf.xlu1 }
 0x132   :  { %v719_v6 = vpop.permute.xlu1 %718 }
 0x133   :  { %v781_v14 = vsub.f32 %v719_v6, %v752_v11 }
 0x135   :  { %v789_v23 = vmul.f32 %v781_v14, %v781_v14 }
 0x137   :  { %v637_v13 = vpop.permute.xlu1 %636 }
 0x138   :  { %v702_v48 = vsub.f32 %v637_v13, %v676_v41  ;;  %v764_v13 = vrot.slane %v5138_v57, %v5021_v5 }
 0x13a   :  { %v632_v17 = vpop.permute.xlu0 %631  ;;  %v710_v6 = vmul.f32 %v702_v48, %v702_v48 }
 0x13b   :  { %v701_v20 = vsub.f32 %v632_v17, %v672_v15 }
 0x13c   :  { %v807_v22 = vpop.permute.xlu1 %806 }
 0x13d   :  { %v709_v24 = vmul.f32 %v701_v20, %v701_v20  ;;  %v869_v26 = vsub.f32 %v807_v22, %v840_v21 }
 0x13e   :  { %v642_v27 = vpop.permute.xlu0 %641 }
 0x13f   :  { %v797_v28 = vadd.f32 %v789_v23, %v709_v24  ;;  %v877_v29 = vmul.f32 %v869_v26, %v869_v26  ;;  %v703_v52 = vsub.f32 %v642_v27, %v680_v45  ;;  %v852_v26 = vrot.slane %v5138_v57, %v5015_v3 }
 0x140   :  { %v811_v34 = vpop.permute.xlu1 %810 }
 0x141   :  { %v885_v36 = vadd.f32 %v877_v29, %v797_v28  ;;  %v870_v53 = vsub.f32 %v811_v34, %v844_v46  ;;  %v711_v15 = vmul.f32 %v703_v52, %v703_v52 }
 0x142   :  { %v5158_v37 = vpop.permute.xlu0 %651 }
 0x143   :  { %v945_v38 = vmul.f32 -0.1, %v885_v36  ;;  %v878_v54 = vmul.f32 %v870_v53, %v870_v53  ;;  %v943_v36 = vcombine.high %v933_v63, %v933_v63 }
 0x145   :  { %v993_v39 = vadd.f32 %v956_v35, %v945_v38  ;;  %v727_v40 = vpop.permute.xlu1 %726  ;;  %v964_v35 = vrot.slane %v941_v16, %v5012_v2  ;;  %v856_v16 = vrot.slane %v5142_v61, %v5015_v3 }
 0x146   :  { %v5161_v42 = vpop.permute.xlu0 %661  ;;  %v783_v49 = vsub.f32 %v727_v40, %v760_v44 }
 0x147   :  { %v1001_v43 = vmul.f32 1.442695, %v993_v39 }
 0x148   :  { %v791_v11 = vmul.f32 %v783_v49, %v783_v49 }
 0x149   :  { %4671 = vpow2.f32 %v1001_v43 }
 0x14a   :  { %v647_v50 = vpop.permute.xlu1 %646  ;;  %v799_v27 = vadd.f32 %v791_v11, %v711_v15 }
 0x14b   :  { %v723_v59 = vpop.permute.xlu0 %722  ;;  %v704_v21 = vsub.f32 %v647_v50, %v684_v62  ;;  %v968_v50 = vrot.slane %v943_v36, %v5012_v2  ;;  %v768_v62 = vrot.slane %v5142_v61, %v5021_v5 }
 0x14c   :  { %v782_v60 = vsub.f32 %v723_v59, %v756_v51 }
 0x14d   :  { %v712_v25 = vmul.f32 %v704_v21, %v704_v21 }
 0x14e   :  { %v790_v14 = vmul.f32 %v782_v60, %v782_v60  ;;  %v896_v60 = vcombine.high %v5146_v8, %v5146_v8 }
 0x14f   :  { %v815_v17 = vpop.permute.xlu1 %814  ;;  %v731_v20 = vpop.permute.xlu0 %730 }
 0x150   :  { %v798_v22 = vadd.f32 %v790_v14, %v710_v6  ;;  %v871_v23 = vsub.f32 %v815_v17, %v848_v0  ;;  %v784_v24 = vsub.f32 %v731_v20, %v764_v13  ;;  %v688_v0 = vrot.slane %v5142_v61, %v5012_v2 }
 0x151   :  { %v910_v13 = vrot.slane %v896_v60, %v5149_v10  ;;  %v772_v17 = vrot.slane %v5136_v56, %v5021_v5 }
 0x152   :  { %v886_v28 = vadd.f32 %v878_v54, %v798_v22  ;;  %v879_v29 = vmul.f32 %v871_v23, %v871_v23  ;;  %v792_v34 = vmul.f32 %v784_v24, %v784_v24  ;;  %v705_v15 = vsub.f32 %v5158_v37, %v688_v0 }
 0x153   :  { %v819_v38 = vpop.permute.xlu1 %818  ;;  %v692_v54 = vrot.slane %v5136_v56, %v5012_v2  ;;  %v739_v8 = vpop.permute.xlu0 %738  ;;  %v926_v22 = vrot.slane %v910_v13, %v5149_v10  ;;  %v912_v37 = vcombine.high %v910_v13, %v910_v13 }
 0x154   :  { %v946_v39 = vmul.f32 -0.1, %v886_v28  ;;  %v887_v40 = vadd.f32 %v879_v29, %v799_v27  ;;  %v872_v41 = vsub.f32 %v819_v38, %v852_v26  ;;  %v800_v57 = vadd.f32 %v792_v34, %v712_v25 }
 0x155   :  { %v713_v24 = vmul.f32 %v705_v15, %v705_v15  ;;  %v786_v26 = vsub.f32 %v739_v8, %v772_v17  ;;  %v860_v34 = vrot.slane %v5136_v56, %v5015_v3  ;;  %v972_v61 = vrot.slane %v926_v22, %v5012_v2 }
 0x156   :  { %v5180_v43 = vpop.eup %4671  ;;  %v994_v44 = vadd.f32 %v960_v55, %v946_v39  ;;  %v947_v45 = vmul.f32 -0.1, %v887_v40  ;;  %v880_v46 = vmul.f32 %v872_v41, %v872_v41  ;;  %v940_v39 = vrot.slane %v912_v37, %v5149_v10 }
 0x157   :  { %v1018_v47 = vsel %vm1017_vm10, %v5180_v43, 0.0  ;;  %v794_v38 = vmul.f32 %v786_v26, %v786_v26  ;;  %v747_v13 = vpop.permute.xlu0 %746  ;;  %v864_v15 = vrot.slane %v5144_v7, %v5015_v3  ;;  %v942_v17 = vcombine.high %v926_v22, %v926_v22 }
 0x158   :  { %v1003_v48 = vmul.f32 1.442695, %v994_v44  ;;  %v995_v49 = vadd.f32 %v964_v35, %v947_v45  ;;  %v888_v51 = vadd.f32 %v880_v46, %v800_v57  ;;  %v735_v52 = vpop.permute.xlu1 %734  ;;  %1019 = vadd.xlane.f32.xlu0 %v1018_v47  ;;  %v976_v47 = vrot.slane %v940_v39, %v5012_v2 }
 0x159   :  { %v785_v6 = vsub.f32 %v735_v52, %v768_v62  ;;  %v696_v62 = vrot.slane %v5144_v7, %v5012_v2  ;;  %v868_v37 = vrot.slane %v5140_v58, %v5015_v3 }
 0x15a   :  { %4673 = vpow2.f32 %v1003_v48  ;;  %v1005_v53 = vmul.f32 1.442695, %v995_v49  ;;  %v948_v59 = vmul.f32 -0.1, %v888_v51 }
 0x15b   :  { %v793_v20 = vmul.f32 %v785_v6, %v785_v6 }
 0x15c   :  { %4675 = vpow2.f32 %v1005_v53  ;;  %v996_v63 = vadd.f32 %v968_v50, %v948_v59  ;;  %v776_v53 = vrot.slane %v5144_v7, %v5021_v5 }
 0x15d   :  { %v657_v11 = vpop.permute.xlu1 %656  ;;  %v801_v27 = vadd.f32 %v793_v20, %v713_v24 }
 0x15e   :  { %v1007_v14 = vmul.f32 1.442695, %v996_v63  ;;  %v706_v21 = vsub.f32 %v657_v11, %v692_v54  ;;  %v707_v11 = vsub.f32 %v5161_v42, %v696_v62  ;;  %v780_v54 = vrot.slane %v5140_v58, %v5021_v5 }
 0x160   :  { %4677 = vpow2.f32 %v1007_v14  ;;  %v714_v28 = vmul.f32 %v706_v21, %v706_v21  ;;  %v700_v14 = vrot.slane %v5140_v58, %v5012_v2  ;;  %v715_v21 = vmul.f32 %v707_v11, %v707_v11 }
 0x162   :  { %v823_v23 = vpop.permute.xlu1 %822  ;;  %v802_v45 = vadd.f32 %v794_v38, %v714_v28 }
 0x163   :  { %v873_v55 = vsub.f32 %v823_v23, %v856_v16  ;;  %v788_v23 = vsub.f32 %v747_v13, %v780_v54 }
 0x165   :  { %v881_v29 = vmul.f32 %v873_v55, %v873_v55  ;;  %v796_v7 = vmul.f32 %v788_v23, %v788_v23 }
 0x166   :  { %v827_v35 = vpop.permute.xlu1 %826 }
 0x167   :  { %v5203_v36 = vpop.eup %4673  ;;  %v889_v25 = vadd.f32 %v881_v29, %v801_v27  ;;  %v874_v40 = vsub.f32 %v827_v35, %v860_v34  ;;  %v980_v27 = vrot.slane %v942_v17, %v5012_v2  ;;  %v944_v34 = vcombine.high %v940_v39, %v940_v39 }
 0x168   :  { %v1021_v41 = vsel %vm1017_vm10, %v5203_v36, 0.0 }
 0x169   :  { %v5208_v44 = vpop.eup %4675  ;;  %v949_v57 = vmul.f32 -0.1, %v889_v25  ;;  %v882_v46 = vmul.f32 %v874_v40, %v874_v40  ;;  %1022 = vadd.xlane.f32.xlu1 %v1021_v41 }
 0x16a   :  { %v1024_v50 = vsel %vm1017_vm10, %v5208_v44, 0.0 }
 0x16b   :  { %v997_v56 = vadd.f32 %v972_v61, %v949_v57  ;;  %v890_v48 = vadd.f32 %v882_v46, %v802_v45  ;;  %v743_v49 = vpop.permute.xlu1 %742  ;;  %v984_v45 = vrot.slane %v944_v34, %v5012_v2  ;;  %v4869_v34 = vmov 6  }
 0x16c   :  { %v787_v63 = vsub.f32 %v743_v49, %v776_v53 }
 0x16d   :  { %v5213_v51 = vpop.eup %4677  ;;  %v1009_v10 = vmul.f32 1.442695, %v997_v56  ;;  %v950_v52 = vmul.f32 -0.1, %v890_v48  ;;  %1025 = vadd.xlane.f32.xlu1 %v1024_v50 }
 0x16e   :  { %v1027_v59 = vsel %vm1017_vm10, %v5213_v51, 0.0  ;;  %v795_v8 = vmul.f32 %v787_v63, %v787_v63 }
 0x16f   :  { %4679 = vpow2.f32 %v1009_v10  ;;  %v998_v60 = vadd.f32 %v976_v47, %v950_v52  ;;  %1028 = vadd.xlane.f32.xlu0 %v1027_v59 }
 0x170   :  { %v667_v0 = vpop.permute.xlu1 %666  ;;  %v803_v26 = vadd.f32 %v795_v8, %v715_v21 }
 0x171   :  { %v1011_v6 = vmul.f32 1.442695, %v998_v60  ;;  %v708_v16 = vsub.f32 %v667_v0, %v700_v14 }
 0x173   :  { %4681 = vpow2.f32 %v1011_v6  ;;  %v716_v42 = vmul.f32 %v708_v16, %v708_v16 }
 0x175   :  { %v831_v20 = vpop.permute.xlu1 %830  ;;  %v804_v22 = vadd.f32 %v796_v7, %v716_v42 }
 0x176   :  { %v875_v24 = vsub.f32 %v831_v20, %v864_v15 }
 0x178   :  { %v883_v55 = vmul.f32 %v875_v24, %v875_v24 }
 0x179   :  { %v835_v28 = vpop.permute.xlu1 %834 }
 0x17a   :  { %v891_v29 = vadd.f32 %v883_v55, %v803_v26  ;;  %v876_v61 = vsub.f32 %v835_v28, %v868_v37  ;;  %v4867_v28 = vmov 4  }
 0x17c   :  { %v5231_v35 = vpop.eup %4679  ;;  %v951_v38 = vmul.f32 -0.1, %v891_v29  ;;  %v884_v25 = vmul.f32 %v876_v61, %v876_v61 }
 0x17d   :  { %v1030_v40 = vsel %vm1017_vm10, %v5231_v35, 0.0 }
 0x17e   :  { %v999_v41 = vadd.f32 %v980_v27, %v951_v38  ;;  %v892_v57 = vadd.f32 %v884_v25, %v804_v22  ;;  %1031 = vadd.xlane.f32.xlu1 %v1030_v40  ;;  %v4870_v38 = vmov 7  }
 0x180   :  { %v5236_v58 = vpop.eup %4681  ;;  %v1013_v46 = vmul.f32 1.442695, %v999_v41  ;;  %v952_v56 = vmul.f32 -0.1, %v892_v57 }
 0x181   :  { %v1033_v39 = vsel %vm1017_vm10, %v5236_v58, 0.0 }
 0x182   :  { %4683 = vpow2.f32 %v1013_v46  ;;  %v1000_v47 = vadd.f32 %v984_v45, %v952_v56  ;;  %1034 = vadd.xlane.f32.xlu0 %v1033_v39  ;;  %v4871_v46 = vmov 5  }
 0x184   :  { %v1015_v48 = vmul.f32 1.442695, %v1000_v47  ;;  %v1862_v47 = vld [vmem:[%s6364_s6 + $0x8] sm:$0xff] }
 0x185   :  { %4460 = vmatprep.subr.mxu1 %v1862_v47 }
 0x186   :  { %4685 = vpow2.f32 %v1015_v48  ;;  %v1861_v48 = vld [vmem:[%s6364_s6] sm:$0xff] }
 0x18f   :  { %v5240_v49 = vpop.eup %4683 }
 0x190   :  { %v1036_v50 = vsel %vm1017_vm10, %v5240_v49, 0.0 }
 0x191   :  { %1037 = vadd.xlane.f32.xlu1 %v1036_v50 }
 0x193   :  { %v5244_v10 = vpop.eup %4685 }
 0x194   :  { %v1039_v52 = vsel %vm1017_vm10, %v5244_v10, 0.0 }
 0x195   :  { %v4434_v53 = vpop.f32.mrf.mxu0  ;;  %1040 = vadd.xlane.f32.xlu0 %v1039_v52 }
 0x197   :  { %v325_v59 = vpop.f32.mrf.mxu0 }
 0x198   :  { %4448 = vmatprep.mubr.msk.f32.mxu1 %vm1068_vm11, %v325_v59 }
 0x199   :  { %4449 = vmatmul.mubr.msk.f32.vlgmr.msra.gmra.mxu1 %vm1068_vm11, %v4434_v53  ;;  %v4437_v60 = vpop.f32.mrf.mxu0 }
 0x19a   :  { %4461 = vmatpush3.msra.mxu1 %v1862_v47 }
 0x19b   :  { %v335_v62 = vpop.f32.mrf.mxu0  ;;  %4462 = vmatprep.subr.mxu1 %v1861_v48 }
 0x19c   :  { %4451 = vmatprep.mubr.msk.f32.mxu1 %vm1068_vm11, %v335_v62  ;;  %4463 = vmatpush3.msra.mxu1 %v1861_v48 }
 0x19d   :  { %v4440_v63 = vpop.f32.mrf.mxu0  ;;  %4452 = vmatmul.mubr.msk.f32.gmra.mxu1 %vm1068_vm11, %v4437_v60 }
 0x19f   :  { %v345_v0 = vpop.f32.mrf.mxu0 }
 0x1a0   :  { %4454 = vmatprep.mubr.msk.f32.mxu1 %vm1068_vm11, %v345_v0 }
 0x1a1   :  { %v4443_v6 = vpop.f32.mrf.mxu0  ;;  %4455 = vmatmul.mubr.msk.f32.gmra.mxu1 %vm1068_vm11, %v4440_v63 }
 0x1a3   :  { %v355_v11 = vpop.f32.mrf.mxu0 }
 0x1a4   :  { %4457 = vmatprep.mubr.msk.f32.mxu1 %vm1068_vm11, %v355_v11 }
 0x1a5   :  { %4458 = vmatmul.mubr.msk.f32.gmra.mxu1 %vm1068_vm11, %v4443_v6 }
 0x1e1   :  { %v1020_v14 = vpop.xlane.xlu0 %1019 }
 0x1e2   :  { %v1042_v13 = vadd.f32 1e-09, %v1020_v14 }
 0x1e4   :  { %4687 = vrcp.f32 %v1042_v13 }
 0x1f1   :  { %v4688_v15 = vpop.eup %4687 }
 0x1f2   :  { %v5257_v54 = vmul.f32 %v4688_v15, %v5180_v43  ;;  %v1023_v8 = vpop.xlane.xlu1 %1022 }
 0x1f3   :  { %v1043_v16 = vadd.f32 1e-09, %v1023_v8 }
 0x1f4   :  { %1279 = vperm.xlu0 %4608, %v5257_v54   ;;  %1200 = vperm.xlu1 %4621, %v5257_v54  }
 0x1f5   :  { %4689 = vrcp.f32 %v1043_v16 }
 0x1f6   :  { %v1026_v17 = vpop.xlane.xlu1 %1025 }
 0x1f7   :  { %v1044_v20 = vadd.f32 1e-09, %v1026_v17 }
 0x1f8   :  { %4623 = vset.pattern.permute.xlu0 %v4864_v32  ;;  %v1029_v21 = vpop.xlane.xlu0 %1028 }
 0x1f9   :  { %4691 = vrcp.f32 %v1044_v20  ;;  %v1045_v23 = vadd.f32 1e-09, %v1029_v21  ;;  %1359 = vperm.xlu0 %4623, %v5257_v54  }
 0x1fb   :  { %4693 = vrcp.f32 %v1045_v23 }
 0x1fd   :  { %4626 = vset.pattern.permute.xlu0 %v4862_v30 }
 0x202   :  { %v4690_v43 = vpop.eup %4689 }
 0x203   :  { %v5265_v24 = vmul.f32 %v4690_v43, %v5203_v36 }
 0x205   :  { %1205 = vperm.xlu1 %4621, %v5265_v24  }
 0x206   :  { %v4692_v26 = vpop.eup %4691 }
 0x207   :  { %v5269_v42 = vmul.f32 %v4692_v26, %v5208_v44  ;;  %v1032_v36 = vpop.xlane.xlu1 %1031 }
 0x208   :  { %v4694_v55 = vpop.eup %4693  ;;  %v1046_v44 = vadd.f32 1e-09, %v1032_v36 }
 0x209   :  { %1287 = vperm.xlu0 %4626, %v5269_v42   ;;  %4622 = vset.pattern.permute.xlu1 %v4862_v30  ;;  %v5275_v37 = vmul.f32 %v4694_v55, %v5213_v51  ;;  %v4868_v51 = vmov 3  }
 0x20a   :  { %1283 = vperm.xlu1 %4622, %v5265_v24   ;;  %4695 = vrcp.f32 %v1046_v44 }
 0x20b   :  { %v1035_v27 = vpop.xlane.xlu0 %1034 }
 0x20c   :  { %v1047_v7 = vadd.f32 1e-09, %v1035_v27 }
 0x20d   :  { %1291 = vperm.xlu0 %4626, %v5275_v37  }
 0x20e   :  { %4624 = vset.pattern.permute.xlu1 %v4864_v32  ;;  %4697 = vrcp.f32 %v1047_v7 }
 0x20f   :  { %1363 = vperm.xlu1 %4624, %v5265_v24  }
 0x211   :  { %4630 = vset.pattern.permute.xlu0 %v4864_v32 }
 0x212   :  { %1367 = vperm.xlu0 %4630, %v5269_v42  }
 0x213   :  { %4625 = vset.pattern.permute.xlu1 %v4863_v31 }
 0x214   :  { %1210 = vperm.xlu1 %4625, %v5269_v42  }
 0x216   :  { %4633 = vset.pattern.permute.xlu0 %v4867_v28 }
 0x217   :  { %1523 = vperm.xlu0 %4633, %v5265_v24   ;;  %v4696_v25 = vpop.eup %4695 }
 0x218   :  { %4627 = vset.pattern.permute.xlu1 %v4868_v51  ;;  %v5301_v41 = vmul.f32 %v4696_v25, %v5231_v35 }
 0x219   :  { %1439 = vperm.xlu1 %4627, %v5257_v54  }
 0x21a   :  { %v1038_v29 = vpop.xlane.xlu1 %1037 }
 0x21b   :  { %4636 = vset.pattern.permute.xlu0 %v4868_v51  ;;  %v1048_v61 = vadd.f32 1e-09, %v1038_v29  ;;  %v4698_v45 = vpop.eup %4697 }
 0x21c   :  { %1451 = vperm.xlu0 %4636, %v5275_v37   ;;  %v5307_v57 = vmul.f32 %v4698_v45, %v5236_v58 }
 0x21d   :  { %4628 = vset.pattern.permute.xlu1 %v4863_v31  ;;  %4699 = vrcp.f32 %v1048_v61 }
 0x21e   :  { %1215 = vperm.xlu1 %4628, %v5275_v37   ;;  %v1041_v22 = vpop.xlane.xlu0 %1040 }
 0x21f   :  { %v1049_v40 = vadd.f32 1e-09, %v1041_v22 }
 0x220   :  { %4638 = vset.pattern.permute.xlu0 %v4869_v34 }
 0x221   :  { %1679 = vperm.xlu0 %4638, %v5257_v54   ;;  %4701 = vrcp.f32 %v1049_v40 }
 0x222   :  { %4629 = vset.pattern.permute.xlu1 %v4868_v51 }
 0x223   :  { %1443 = vperm.xlu1 %4629, %v5265_v24  }
 0x225   :  { %4642 = vset.pattern.permute.xlu0 %v4870_v38 }
 0x226   :  { %1763 = vperm.xlu0 %4642, %v5265_v24  }
 0x227   :  { %4631 = vset.pattern.permute.xlu1 %v4867_v28 }
 0x228   :  { %1519 = vperm.xlu1 %4631, %v5257_v54  }
 0x22a   :  { %4644 = vset.pattern.permute.xlu0 %v4863_v31  ;;  %v4700_v35 = vpop.eup %4699 }
 0x22b   :  { %1220 = vperm.xlu0 %4644, %v5301_v41   ;;  %v5317_v56 = vmul.f32 %v4700_v35, %v5240_v49 }
 0x22c   :  { %4632 = vset.pattern.permute.xlu1 %v4864_v32 }
 0x22d   :  { %1371 = vperm.xlu1 %4632, %v5275_v37  }
 0x22e   :  { %v4702_v58 = vpop.eup %4701 }
 0x22f   :  { %1225 = vperm.xlu0 %4644, %v5307_v57   ;;  %v5323_v39 = vmul.f32 %v4702_v58, %v5244_v10 }
 0x231   :  { %4634 = vset.pattern.permute.xlu1 %v4868_v51 }
 0x232   :  { %1447 = vperm.xlu1 %4634, %v5269_v42  }
 0x233   :  { %4648 = vset.pattern.permute.xlu0 %v4870_v38 }
 0x234   :  { %1771 = vperm.xlu0 %4648, %v5275_v37  }
 0x236   :  { %4635 = vset.pattern.permute.xlu1 %v4871_v46 }
 0x237   :  { %1599 = vperm.xlu1 %4635, %v5257_v54  }
 0x238   :  { %4650 = vset.pattern.permute.xlu0 %v4863_v31 }
 0x239   :  { %1230 = vperm.xlu0 %4650, %v5317_v56  }
 0x23b   :  { %1603 = vperm.xlu1 %4635, %v5265_v24  }
 0x23d   :  { %1235 = vperm.xlu0 %4650, %v5323_v39  }
 0x23f   :  { %4637 = vset.pattern.permute.xlu1 %v4867_v28 }
 0x240   :  { %1527 = vperm.xlu1 %4637, %v5269_v42  }
 0x241   :  { %4654 = vset.pattern.permute.xlu0 %v4868_v51 }
 0x242   :  { %1459 = vperm.xlu0 %4654, %v5307_v57  }
 0x244   :  { %1531 = vperm.xlu1 %4637, %v5275_v37  }
 0x246   :  { %4657 = vset.pattern.permute.xlu0 %v4864_v32 }
 0x247   :  { %1387 = vperm.xlu0 %4657, %v5323_v39  }
 0x248   :  { %4639 = vset.pattern.permute.xlu1 %v4869_v34 }
 0x249   :  { %1683 = vperm.xlu1 %4639, %v5265_v24  }
 0x24b   :  { %4660 = vset.pattern.permute.xlu0 %v4867_v28 }
 0x24c   :  { %1543 = vperm.xlu0 %4660, %v5317_v56  }
 0x24d   :  { %4640 = vset.pattern.permute.xlu1 %v4870_v38 }
 0x24e   :  { %1759 = vperm.xlu1 %4640, %v5257_v54  }
 0x250   :  { %4661 = vset.pattern.permute.xlu0 %v4871_v46 }
 0x251   :  { %1607 = vperm.xlu0 %4661, %v5269_v42  }
 0x252   :  { %4641 = vset.pattern.permute.xlu1 %v4871_v46 }
 0x253   :  { %1611 = vperm.xlu1 %4641, %v5275_v37  }
 0x255   :  { %1615 = vperm.xlu0 %4661, %v5301_v41  }
 0x257   :  { %4643 = vset.pattern.permute.xlu1 %v4869_v34 }
 0x258   :  { %1687 = vperm.xlu1 %4643, %v5269_v42  }
 0x259   :  { %1627 = vperm.xlu0 %4661, %v5323_v39   ;;  %v4450_v21 = vpop.f32.mrf.mxu1 }
 0x25a   :  { %v1317_v24 = vrot.slane %v4450_v21, %v5021_v5  ;;  %v1245_v55 = vrot.slane %v4450_v21, %v5012_v2  ;;  %v1397_v36 = vrot.slane %v4450_v21, %v5015_v3  ;;  %v1477_v7 = vrot.slane %v4450_v21, %v5018_v4 }
 0x25b   :  { %v5438_v43 = vpop.f32.mrf.mxu1 }
 0x25c   :  { %1691 = vperm.xlu1 %4643, %v5275_v37   ;;  %v1241_v44 = vrot.slane %v5438_v43, %v5012_v2  ;;  %v1313_v27 = vrot.slane %v5438_v43, %v5021_v5  ;;  %v1393_v22 = vrot.slane %v5438_v43, %v5015_v3  ;;  %v1473_v35 = vrot.slane %v5438_v43, %v5018_v4 }
 0x25d   :  { %4666 = vset.pattern.permute.xlu0 %v4869_v34  ;;  %v1553_v48 = vrot.slane %v5438_v43, %v5031_v12 }
 0x25e   :  { %1699 = vperm.xlu0 %4666, %v5307_v57  }
 0x260   :  { %4645 = vset.pattern.permute.xlu1 %v4862_v30 }
 0x261   :  { %1295 = vperm.xlu1 %4645, %v5301_v41  }
 0x262   :  { %1707 = vperm.xlu0 %4666, %v5323_v39  }
 0x265   :  { %4646 = vset.pattern.permute.xlu1 %v4870_v38 }
 0x266   :  { %1767 = vperm.xlu1 %4646, %v5269_v42   ;;  %4670 = vset.pattern.permute.xlu0 %v4863_v31 }
 0x26a   :  { %4647 = vset.pattern.permute.xlu1 %v4862_v30 }
 0x26b   :  { %1299 = vperm.xlu1 %4647, %v5307_v57  }
 0x26f   :  { %4649 = vset.pattern.permute.xlu1 %v4864_v32  ;;  %v5370_v49 = vpop.permute.xlu0 %1279  ;;  %v5372_v50 = vpop.permute.xlu1 %1200 }
 0x270   :  { %1375 = vperm.xlu1 %4649, %v5301_v41   ;;  %6511 = vst [vmem:[#allocation21_spill] sm:$0xff] %v5370_v49  ;;  %v1270_v29 = vmul.f32 %v1241_v44, %v5372_v50  ;;  %v1342_v61 = vmul.f32 %v1313_v27, %v5370_v49  ;;  %v1633_v27 = vrot.slane %v5438_v43, %v5026_v9 }
 0x272   :  { %v1350_v58 = vadd.f32 %v1342_v61, %v1270_v29 }
 0x274   :  { %1379 = vperm.xlu1 %4649, %v5307_v57   ;;  %v5376_v10 = vpop.permute.xlu0 %1359 }
 0x278   :  { %4651 = vset.pattern.permute.xlu1 %v4862_v30 }
 0x279   :  { %1303 = vperm.xlu1 %4651, %v5317_v56  }
 0x27d   :  { %4652 = vset.pattern.permute.xlu1 %v4868_v51 }
 0x27e   :  { %1455 = vperm.xlu1 %4652, %v5301_v41  }
 0x280   :  { %v5378_v52 = vpop.permute.xlu1 %1205 }
 0x282   :  { %4653 = vset.pattern.permute.xlu1 %v4862_v30 }
 0x283   :  { %1307 = vperm.xlu1 %4653, %v5323_v39  }
 0x284   :  { %v5382_v53 = vpop.permute.xlu0 %1287 }
 0x285   :  { %6512 = vst [vmem:[#allocation22_spill] sm:$0xff] %v5382_v53  ;;  %v5384_v59 = vpop.permute.xlu1 %1283 }
 0x286   :  { %v1343_v37 = vmul.f32 %v1317_v24, %v5384_v59  ;;  %v1557_v24 = vrot.slane %v4450_v21, %v5031_v12 }
 0x287   :  { %4655 = vset.pattern.permute.xlu1 %v4864_v32 }
 0x288   :  { %1383 = vperm.xlu1 %4655, %v5317_v56   ;;  %v5388_v60 = vpop.permute.xlu0 %1291 }
 0x289   :  { %6513 = vst [vmem:[#allocation23_spill] sm:$0xff] %v5388_v60 }
 0x28a   :  { %v5390_v62 = vpop.permute.xlu1 %1363 }
 0x28c   :  { %4656 = vset.pattern.permute.xlu1 %v4867_v28 }
 0x28d   :  { %1535 = vperm.xlu1 %4656, %v5301_v41   ;;  %v5394_v63 = vpop.permute.xlu0 %1367 }
 0x28e   :  { %6514 = vst [vmem:[#allocation24_spill] sm:$0xff] %v5394_v63 }
 0x28f   :  { %v5396_v30 = vpop.permute.xlu1 %1210 }
 0x290   :  { %6515 = vst [vmem:[#allocation25_spill] sm:$0xff] %v5396_v30 }
 0x291   :  { %1539 = vperm.xlu1 %4656, %v5307_v57  }
 0x292   :  { %v5399_v0 = vpop.permute.xlu0 %1523 }
 0x293   :  { %6516 = vst [vmem:[#allocation26_spill] sm:$0xff] %v5399_v0 }
 0x294   :  { %v5401_v6 = vpop.permute.xlu1 %1439 }
 0x295   :  { %6517 = vst [vmem:[#allocation27_spill] sm:$0xff] %v5401_v6  ;;  %4658 = vset.pattern.permute.xlu1 %v4868_v51  ;;  %v1423_v51 = vmul.f32 %v1397_v36, %v5390_v62  ;;  %v1502_v47 = vmul.f32 %v1473_v35, %v5401_v6  ;;  %v1797_v35 = vrot.slane %v4450_v21, %v5045_v18 }
 0x296   :  { %1463 = vperm.xlu1 %4658, %v5317_v56  }
 0x297   :  { %v5405_v32 = vpop.permute.xlu0 %1451 }
 0x298   :  { %6518 = vst [vmem:[#allocation28_spill] sm:$0xff] %v5405_v32 }
 0x299   :  { %v5407_v11 = vpop.permute.xlu1 %1215 }
 0x29a   :  { %6519 = vst [vmem:[#allocation29_spill] sm:$0xff] %v5407_v11  ;;  %1467 = vperm.xlu1 %4658, %v5323_v39  }
 0x29c   :  { %v5410_v14 = vpop.permute.xlu0 %1679 }
 0x29d   :  { %6520 = vst [vmem:[#allocation30_spill] sm:$0xff] %v5410_v14 }
 0x29e   :  { %v5412_v13 = vpop.permute.xlu1 %1443  ;;  %4659 = vset.pattern.permute.xlu1 %v4871_v46 }
 0x29f   :  { %1619 = vperm.xlu1 %4659, %v5307_v57   ;;  %v1503_v40 = vmul.f32 %v1477_v7, %v5412_v13 }
 0x2a1   :  { %v5416_v15 = vpop.permute.xlu0 %1763 }
 0x2a2   :  { %6521 = vst [vmem:[#allocation31_spill] sm:$0xff] %v5416_v15 }
 0x2a3   :  { %v5418_v54 = vpop.permute.xlu1 %1519  ;;  %4662 = vset.pattern.permute.xlu1 %v4869_v34 }
 0x2a4   :  { %6522 = vst [vmem:[#allocation32_spill] sm:$0xff] %v5418_v54  ;;  %1695 = vperm.xlu1 %4662, %v5301_v41   ;;  %v1582_v44 = vmul.f32 %v1553_v48, %v5418_v54 }
 0x2a6   :  { %v5425_v16 = vpop.permute.xlu0 %1220 }
 0x2a7   :  { %6524 = vst [vmem:[#allocation34_spill] sm:$0xff] %v5425_v16 }
 0x2a8   :  { %v5422_v8 = vpop.permute.xlu1 %1371  ;;  %4663 = vset.pattern.permute.xlu1 %v4867_v28  ;;  %v1271_v28 = vmul.f32 %v1245_v55, %v5378_v52 }
 0x2a9   :  { %6523 = vst [vmem:[#allocation33_spill] sm:$0xff] %v5422_v8  ;;  %1547 = vperm.xlu1 %4663, %v5323_v39  }
 0x2aa   :  { %v5432_v20 = vpop.permute.xlu0 %1225  ;;  %v1351_v25 = vadd.f32 %v1343_v37, %v1271_v28  ;;  %v1637_v37 = vrot.slane %v4450_v21, %v5026_v9  ;;  %v1583_v28 = vmul.f32 %v1557_v24, %v5399_v0 }
 0x2ab   :  { %6526 = vst [vmem:[#allocation36_spill] sm:$0xff] %v5432_v20 }
 0x2ad   :  { %v5428_v17 = vpop.permute.xlu1 %1447  ;;  %4664 = vset.pattern.permute.xlu1 %v4871_v46  ;;  %v1431_v46 = vadd.f32 %v1423_v51, %v1351_v25  ;;  %v1717_v25 = vrot.slane %v4450_v21, %v5048_v19  ;;  %v4453_v21 = vpop.f32.mrf.mxu1 }
 0x2ae   :  { %6525 = vst [vmem:[#allocation35_spill] sm:$0xff] %v5428_v17  ;;  %1623 = vperm.xlu1 %4664, %v5317_v56   ;;  %v1725_v33 = vrot.slane %v4453_v21, %v5048_v19 }
 0x2af   :  { %v5441_v26 = vpop.permute.xlu0 %1771  ;;  %v1511_v55 = vadd.f32 %v1503_v40, %v1431_v46 }
 0x2b0   :  { %6528 = vst [vmem:[#allocation38_spill] sm:$0xff] %v5441_v26 }
 0x2b2   :  { %v5434_v23 = vpop.permute.xlu1 %1599  ;;  %4665 = vset.pattern.permute.xlu1 %v4870_v38 }
 0x2b3   :  { %6527 = vst [vmem:[#allocation37_spill] sm:$0xff] %v5434_v23  ;;  %1775 = vperm.xlu1 %4665, %v5301_v41   ;;  %v1662_v61 = vmul.f32 %v1633_v27, %v5434_v23 }
 0x2b4   :  { %v5461_v41 = vpop.permute.xlu0 %1230 }
 0x2b5   :  { %6529 = vst [vmem:[#allocation39_spill] sm:$0xff] %v5461_v41 }
 0x2b6   :  { %v5443_v42 = vpop.permute.xlu1 %1603 }
 0x2b7   :  { %1779 = vperm.xlu1 %4665, %v5307_v57   ;;  %v1422_v57 = vmul.f32 %v1393_v22, %v5376_v10  ;;  %v1663_v51 = vmul.f32 %v1637_v37, %v5443_v42  ;;  %v1591_v22 = vadd.f32 %v1583_v28, %v1511_v55  ;;  %v1793_v37 = vrot.slane %v5438_v43, %v5045_v18 }
 0x2b8   :  { %v5483_v7 = vpop.permute.xlu0 %1235 }
 0x2b9   :  { %v1430_v36 = vadd.f32 %v1422_v57, %v1350_v58  ;;  %6532 = vst [vmem:[#allocation42_spill] sm:$0xff] %v5483_v7  ;;  %v1713_v58 = vrot.slane %v5438_v43, %v5048_v19  ;;  %v1325_v43 = vrot.slane %v4453_v21, %v5021_v5 }
 0x2bb   :  { %v5463_v45 = vpop.permute.xlu1 %1527  ;;  %4667 = vset.pattern.permute.xlu1 %v4869_v34  ;;  %v1510_v29 = vadd.f32 %v1502_v47, %v1430_v36  ;;  %v1823_v47 = vmul.f32 %v1797_v35, %v5416_v15  ;;  %v1742_v55 = vmul.f32 %v1713_v58, %v5410_v14 }
 0x2bc   :  { %6530 = vst [vmem:[#allocation40_spill] sm:$0xff] %v5463_v45  ;;  %1703 = vperm.xlu1 %4667, %v5317_v56  }
 0x2bd   :  { %v1590_v40 = vadd.f32 %v1582_v44, %v1510_v29  ;;  %v5496_v48 = vpop.permute.xlu0 %1459 }
 0x2be   :  { %6534 = vst [vmem:[#allocation44_spill] sm:$0xff] %v5496_v48 }
 0x2bf   :  { %v5475_v34 = vpop.permute.xlu1 %1531 }
 0x2c0   :  { %6531 = vst [vmem:[#allocation41_spill] sm:$0xff] %v5475_v34  ;;  %4668 = vset.pattern.permute.xlu1 %v4870_v38  ;;  %v1671_v38 = vadd.f32 %v1663_v51, %v1591_v22  ;;  %v1253_v51 = vrot.slane %v4453_v21, %v5012_v2 }
 0x2c1   :  { %1783 = vperm.xlu1 %4668, %v5317_v56   ;;  %v1670_v56 = vadd.f32 %v1662_v61, %v1590_v40  ;;  %v1169_v61 = vpop.f32.mrf.mxu1 }
 0x2c2   :  { %v1273_v22 = vmul.f32 %v1253_v51, %v5407_v11  ;;  %v5514_v40 = vpop.permute.xlu0 %1387  ;;  %v1565_v51 = vrot.slane %v4453_v21, %v5031_v12 }
 0x2c3   :  { %v1750_v27 = vadd.f32 %v1742_v55, %v1670_v56  ;;  %6536 = vst [vmem:[#allocation46_spill] sm:$0xff] %v5514_v40  ;;  %v1249_v56 = vrot.slane %v1169_v61, %v5012_v2 }
 0x2c4   :  { %v5488_v57 = vpop.permute.xlu1 %1683 }
 0x2c5   :  { %6533 = vst [vmem:[#allocation43_spill] sm:$0xff] %v5488_v57  ;;  %v1743_v46 = vmul.f32 %v1717_v25, %v5488_v57  ;;  %1787 = vperm.xlu1 %4668, %v5323_v39   ;;  %v5507_v39 = vld [vmem:[%s6363_s5] ss:$0 sm:$0xff]  ;;  %v1405_v25 = vrot.slane %v4453_v21, %v5015_v3 }
 0x2c7   :  { %v1751_v24 = vadd.f32 %v1743_v46, %v1671_v38  ;;  %v1345_v46 = vmul.f32 %v1325_v43, %v5388_v60  ;;  %v1425_v58 = vmul.f32 %v1405_v25, %v5422_v8 }
 0x2c9   :  { %v1831_v36 = vadd.f32 %v1823_v47, %v1751_v24  ;;  %v5501_v44 = vpop.permute.xlu1 %1759  ;;  %4669 = vset.pattern.permute.xlu1 %v4863_v31  ;;  %v1353_v24 = vadd.f32 %v1345_v46, %v1273_v22  ;;  %v1401_v46 = vrot.slane %v1169_v61, %v5015_v3 }
 0x2ca   :  { %6535 = vst [vmem:[#allocation45_spill] sm:$0xff] %v5501_v44  ;;  %v1822_v28 = vmul.f32 %v1793_v37, %v5501_v44  ;;  %v1321_v37 = vrot.slane %v1169_v61, %v5021_v5 }
 0x2cb   :  { %v1846_v31 = vadd.f32 %v5507_v39, %v1831_v36  ;;  %v1485_v36 = vrot.slane %v4453_v21, %v5018_v4 }
 0x2cc   :  { %v1830_v29 = vadd.f32 %v1822_v28, %v1750_v27  ;;  %v1272_v27 = vmul.f32 %v1249_v56, %v5396_v30  ;;  %v1433_v28 = vadd.f32 %v1425_v58, %v1353_v24  ;;  %v1344_v22 = vmul.f32 %v1321_v37, %v5382_v53 }
 0x2cd   :  { %v1854_v55 = vmax.f32 %v1846_v31, 0.0  ;;  %v1505_v25 = vmul.f32 %v1485_v36, %v5405_v32  ;;  %v1585_v31 = vmul.f32 %v1565_v51, %v5475_v34  ;;  %v1481_v58 = vrot.slane %v1169_v61, %v5018_v4 }
 0x2ce   :  { %v5517_v35 = vpop.permute.xlu1 %1611  ;;  %v1845_v38 = vadd.f32 %v5507_v39, %v1830_v29  ;;  %v5528_v29 = vpop.permute.xlu0 %1543  ;;  %v1352_v56 = vadd.f32 %v1344_v22, %v1272_v27  ;;  %v1561_v36 = vrot.slane %v1169_v61, %v5031_v12 }
 0x2cf   :  { %6537 = vst [vmem:[#allocation47_spill] sm:$0xff] %v5517_v35  ;;  %6538 = vst [vmem:[#allocation48_spill] sm:$0xff] %v5528_v29  ;;  %v1504_v37 = vmul.f32 %v1481_v58, %v5428_v17  ;;  %v1805_v58 = vrot.slane %v4453_v21, %v5045_v18 }
 0x2d0   :  { %v1853_v47 = vmax.f32 %v1845_v38, 0.0  ;;  %v1645_v38 = vrot.slane %v4453_v21, %v5026_v9 }
 0x2d2   :  { %4464 = vmatprep.mubr.msk.f32.mxu1 %vm1068_vm11, %v1853_v47  ;;  %v1513_v47 = vadd.f32 %v1505_v25, %v1433_v28  ;;  %v1665_v24 = vmul.f32 %v1645_v38, %v5517_v35  ;;  %v5546_v34 = vpop.permute.xlu0 %1607  ;;  %v1584_v28 = vmul.f32 %v1561_v36, %v5463_v45  ;;  %v1641_v25 = vrot.slane %v1169_v61, %v5026_v9 }
 0x2d3   :  { %v5530_v43 = vpop.permute.xlu1 %1687  ;;  %4465 = vmatmul.mubr.msk.f32.vlgmr.msra.gmra.mxu1 %vm1068_vm11, %v1854_v55  ;;  %v1424_v55 = vmul.f32 %v1401_v46, %v5394_v63  ;;  %6541 = vst [vmem:[#allocation51_spill] sm:$0xff] %v5546_v34  ;;  %v1721_v46 = vrot.slane %v1169_v61, %v5048_v19 }
 0x2d4   :  { %6539 = vst [vmem:[#allocation49_spill] sm:$0xff] %v5530_v43  ;;  %v1593_v51 = vadd.f32 %v1585_v31, %v1513_v47  ;;  %v1664_v32 = vmul.f32 %v1641_v25, %v5546_v34 }
 0x2d5   :  { %v1432_v22 = vadd.f32 %v1424_v55, %v1352_v56  ;;  %v1744_v17 = vmul.f32 %v1721_v46, %v5530_v43  ;;  %v1801_v55 = vrot.slane %v1169_v61, %v5045_v18 }
 0x2d6   :  { %v1673_v38 = vadd.f32 %v1665_v24, %v1593_v51  ;;  %v5614_v45 = vpop.permute.xlu0 %1615 }
 0x2d7   :  { %v5541_v1 = vpop.permute.xlu1 %1691  ;;  %v1512_v35 = vadd.f32 %v1504_v37, %v1432_v22  ;;  %6557 = vst [vmem:[#allocation67_spill] sm:$0xff] %v5614_v45 }
 0x2d8   :  { %6540 = vst [vmem:[#allocation50_spill] sm:$0xff] %v5541_v1  ;;  %v1745_v27 = vmul.f32 %v1725_v33, %v5541_v1  ;;  %v1825_v33 = vmul.f32 %v1805_v58, %v5441_v26  ;;  %v2392_v26 = vld [vmem:[#allocation8 + $0x8] sm:$0xff] }
 0x2d9   :  { %v1592_v47 = vadd.f32 %v1584_v28, %v1512_v35  ;;  %4476 = vmatprep.subr.mxu0 %v2392_v26 }
 0x2da   :  { %v1753_v31 = vadd.f32 %v1745_v27, %v1673_v38  ;;  %4477 = vmatpush3.msra.mxu0 %v2392_v26 }
 0x2db   :  { %v1672_v56 = vadd.f32 %v1664_v32, %v1592_v47 }
 0x2dc   :  { %v5553_v63 = vpop.permute.xlu1 %1295  ;;  %v1833_v36 = vadd.f32 %v1825_v33, %v1753_v31 }
 0x2dd   :  { %6542 = vst [vmem:[#allocation52_spill] sm:$0xff] %v5553_v63  ;;  %v1752_v37 = vadd.f32 %v1744_v17, %v1672_v56  ;;  %v5588_v56 = vpop.f32.mrf.mxu1 }
 0x2de   :  { %v1848_v25 = vadd.f32 %v5507_v39, %v1833_v36  ;;  %v1493_v26 = vrot.slane %v5588_v56, %v5018_v4 }
 0x2e0   :  { %v1856_v27 = vmax.f32 %v1848_v25, 0.0  ;;  %v1333_v25 = vrot.slane %v5588_v56, %v5021_v5 }
 0x2e1   :  { %v5559_v24 = vpop.permute.xlu1 %1767 }
 0x2e2   :  { %6543 = vst [vmem:[#allocation53_spill] sm:$0xff] %v5559_v24  ;;  %v1824_v51 = vmul.f32 %v1801_v55, %v5559_v24  ;;  %v5590_v55 = vpop.f32.mrf.mxu1  ;;  %v1413_v24 = vrot.slane %v5588_v56, %v5015_v3 }
 0x2e3   :  { %v1569_v8 = vrot.slane %v5590_v55, %v5031_v12 }
 0x2e4   :  { %v1832_v22 = vadd.f32 %v1824_v51, %v1752_v37  ;;  %v1329_v37 = vrot.slane %v5590_v55, %v5021_v5  ;;  %v1257_v51 = vrot.slane %v5590_v55, %v5012_v2  ;;  %v5618_v53 = vpop.f32.mrf.mxu1 }
 0x2e6   :  { %v5563_v1 = vpop.permute.xlu1 %1299  ;;  %v1847_v21 = vadd.f32 %v5507_v39, %v1832_v22  ;;  %v1346_v22 = vmul.f32 %v1329_v37, %v5553_v63  ;;  %v1274_v43 = vmul.f32 %v1257_v51, %v5425_v16  ;;  %v1489_v63 = vrot.slane %v5590_v55, %v5018_v4  ;;  %v5626_v11 = vpop.f32.mrf.mxu1 }
 0x2e7   :  { %6544 = vst [vmem:[#allocation54_spill] sm:$0xff] %v5563_v1  ;;  %v1347_v34 = vmul.f32 %v1333_v25, %v5563_v1 }
 0x2e8   :  { %v1855_v35 = vmax.f32 %v1847_v21, 0.0  ;;  %v1409_v21 = vrot.slane %v5590_v55, %v5015_v3  ;;  %v1354_v60 = vadd.f32 %v1346_v22, %v1274_v43  ;;  %v1573_v43 = vrot.slane %v5588_v56, %v5031_v12 }
 0x2e9   :  { %v1269_v22 = vrot.slane %v5618_v53, %v5012_v2 }
 0x2ea   :  { %4467 = vmatprep.mubr.msk.f32.mxu1 %vm1068_vm11, %v1855_v35 }
 0x2eb   :  { %v5567_v32 = vpop.permute.xlu1 %1375  ;;  %4468 = vmatmul.mubr.msk.f32.gmra.mxu1 %vm1068_vm11, %v1856_v27  ;;  %v1261_v27 = vrot.slane %v5588_v56, %v5012_v2 }
 0x2ec   :  { %6545 = vst [vmem:[#allocation55_spill] sm:$0xff] %v5567_v32  ;;  %v1426_v37 = vmul.f32 %v1409_v21, %v5567_v32 }
 0x2ed   :  { %v1275_v30 = vmul.f32 %v1261_v27, %v5432_v20  ;;  %v1337_v27 = vrot.slane %v5626_v11, %v5021_v5 }
 0x2ee   :  { %v1434_v16 = vadd.f32 %v1426_v37, %v1354_v60  ;;  %v1653_v60 = vrot.slane %v5588_v56, %v5026_v9  ;;  %v1341_v37 = vrot.slane %v5618_v53, %v5021_v5 }
 0x2ef   :  { %v5570_v61 = vpop.permute.xlu1 %1379  ;;  %v1355_v32 = vadd.f32 %v1347_v34, %v1275_v30  ;;  %v1507_v30 = vmul.f32 %v1493_v26, %v5496_v48  ;;  %v1265_v26 = vrot.slane %v5626_v11, %v5012_v2 }
 0x2f0   :  { %6546 = vst [vmem:[#allocation56_spill] sm:$0xff] %v5570_v61  ;;  %v1427_v51 = vmul.f32 %v1413_v24, %v5570_v61  ;;  %v1649_v24 = vrot.slane %v5590_v55, %v5026_v9 }
 0x2f2   :  { %v1435_v44 = vadd.f32 %v1427_v51, %v1355_v32  ;;  %v1729_v32 = vrot.slane %v5590_v55, %v5048_v19  ;;  %v1666_v51 = vmul.f32 %v1649_v24, %v5614_v45  ;;  %v1809_v24 = vrot.slane %v5590_v55, %v5045_v18 }
 0x2f4   :  { %v5572_v17 = vpop.permute.xlu1 %1303 }
 0x2f5   :  { %6547 = vst [vmem:[#allocation57_spill] sm:$0xff] %v5572_v17 }
 0x2f9   :  { %v5574_v28 = vpop.permute.xlu1 %1455 }
 0x2fa   :  { %6548 = vst [vmem:[#allocation58_spill] sm:$0xff] %v5574_v28  ;;  %v1506_v25 = vmul.f32 %v1489_v63, %v5574_v28  ;;  %v5634_v63 = vpop.permute.xlu0 %1627 }
 0x2fb   :  { %6559 = vst [vmem:[#allocation69_spill] sm:$0xff] %v5634_v63 }
 0x2fc   :  { %v1514_v14 = vadd.f32 %v1506_v25, %v1434_v16  ;;  %v1515_v25 = vadd.f32 %v1507_v30, %v1435_v44  ;;  %v2391_v44 = vld [vmem:[#allocation8] sm:$0xff]  ;;  %v1277_v30 = vmul.f32 %v1269_v22, %v5483_v7  ;;  %v1421_v22 = vrot.slane %v5618_v53, %v5015_v3 }
 0x2fd   :  { %4478 = vmatprep.subr.mxu0 %v2391_v44 }
 0x2fe   :  { %v5576_v38 = vpop.permute.xlu1 %1307  ;;  %4479 = vmatpush3.msra.mxu0 %v2391_v44 }
 0x2ff   :  { %6549 = vst [vmem:[#allocation59_spill] sm:$0xff] %v5576_v38 }
 0x303   :  { %v5578_v46 = vpop.permute.xlu1 %1383 }
 0x304   :  { %6550 = vst [vmem:[#allocation60_spill] sm:$0xff] %v5578_v46 }
 0x308   :  { %v5580_v58 = vpop.permute.xlu1 %1535 }
 0x309   :  { %6551 = vst [vmem:[#allocation61_spill] sm:$0xff] %v5580_v58  ;;  %v1586_v1 = vmul.f32 %v1569_v8, %v5580_v58  ;;  %v1349_v58 = vmul.f32 %v1341_v37, %v5576_v38 }
 0x30b   :  { %v1594_v8 = vadd.f32 %v1586_v1, %v1514_v14 }
 0x30c   :  { %v5582_v31 = vpop.permute.xlu1 %1539 }
 0x30d   :  { %6552 = vst [vmem:[#allocation62_spill] sm:$0xff] %v5582_v31  ;;  %v1587_v34 = vmul.f32 %v1573_v43, %v5582_v31  ;;  %v1348_v43 = vmul.f32 %v1337_v27, %v5572_v17  ;;  %v1417_v31 = vrot.slane %v5626_v11, %v5015_v3  ;;  %v1674_v48 = vadd.f32 %v1666_v51, %v1594_v8 }
 0x30e   :  { %v1497_v8 = vrot.slane %v5626_v11, %v5018_v4  ;;  %v1813_v17 = vrot.slane %v5588_v56, %v5045_v18 }
 0x30f   :  { %v1595_v28 = vadd.f32 %v1587_v34, %v1515_v25  ;;  %v1428_v27 = vmul.f32 %v1417_v31, %v5578_v46 }
 0x311   :  { %v5584_v47 = vpop.permute.xlu1 %1463 }
 0x312   :  { %6553 = vst [vmem:[#allocation63_spill] sm:$0xff] %v5584_v47  ;;  %v1508_v46 = vmul.f32 %v1497_v8, %v5584_v47 }
 0x315   :  { %v5586_v33 = vpop.permute.xlu1 %1467 }
 0x316   :  { %6554 = vst [vmem:[#allocation64_spill] sm:$0xff] %v5586_v33 }
 0x31a   :  { %v5592_v36 = vpop.permute.xlu1 %1619 }
 0x31b   :  { %6555 = vst [vmem:[#allocation65_spill] sm:$0xff] %v5592_v36  ;;  %v1667_v1 = vmul.f32 %v1653_v60, %v5592_v36  ;;  %v1276_v60 = vmul.f32 %v1265_v26, %v5461_v41  ;;  %v1357_v26 = vadd.f32 %v1349_v58, %v1277_v30  ;;  %v1501_v41 = vrot.slane %v5618_v53, %v5018_v4 }
 0x31d   :  { %v1675_v34 = vadd.f32 %v1667_v1, %v1595_v28  ;;  %v1356_v25 = vadd.f32 %v1348_v43, %v1276_v60  ;;  %v1509_v58 = vmul.f32 %v1501_v41, %v5586_v33  ;;  %v1577_v60 = vrot.slane %v5626_v11, %v5031_v12 }
 0x31e   :  { %v1737_v41 = vrot.slane %v5626_v11, %v5048_v19 }
 0x31f   :  { %v5603_v35 = vpop.permute.xlu1 %1695  ;;  %v1436_v1 = vadd.f32 %v1428_v27, %v1356_v25 }
 0x320   :  { %6556 = vst [vmem:[#allocation66_spill] sm:$0xff] %v5603_v35  ;;  %v1746_v14 = vmul.f32 %v1729_v32, %v5603_v35  ;;  %v1733_v32 = vrot.slane %v5588_v56, %v5048_v19  ;;  %v5665_v35 = vpop.permute.xlu0 %1699 }
 0x321   :  { %6561 = vst [vmem:[#allocation71_spill] sm:$0xff] %v5665_v35  ;;  %v1516_v27 = vadd.f32 %v1508_v46, %v1436_v1  ;;  %v1661_v46 = vrot.slane %v5618_v53, %v5026_v9 }
 0x322   :  { %v1754_v55 = vadd.f32 %v1746_v14, %v1674_v48  ;;  %v1747_v31 = vmul.f32 %v1733_v32, %v5665_v35  ;;  %v1429_v48 = vmul.f32 %v1421_v22, %v5514_v40  ;;  %v1581_v14 = vrot.slane %v5618_v53, %v5031_v12 }
 0x323   :  { %v1657_v32 = vrot.slane %v5626_v11, %v5026_v9 }
 0x324   :  { %v5623_v21 = vpop.permute.xlu1 %1547  ;;  %v1755_v43 = vadd.f32 %v1747_v31, %v1675_v34  ;;  %v1437_v30 = vadd.f32 %v1429_v48, %v1357_v26  ;;  %v1588_v34 = vmul.f32 %v1577_v60, %v5528_v29  ;;  %v1741_v60 = vrot.slane %v5618_v53, %v5048_v19 }
 0x325   :  { %6558 = vst [vmem:[#allocation68_spill] sm:$0xff] %v5623_v21  ;;  %v1589_v8 = vmul.f32 %v1581_v14, %v5623_v21  ;;  %v1669_v14 = vmul.f32 %v1661_v46, %v5634_v63 }
 0x329   :  { %v5642_v16 = vpop.permute.xlu1 %1623 }
 0x32a   :  { %6560 = vst [vmem:[#allocation70_spill] sm:$0xff] %v5642_v16  ;;  %v1668_v22 = vmul.f32 %v1657_v32, %v5642_v16 }
 0x32e   :  { %v5668_v37 = vpop.permute.xlu1 %1775 }
 0x32f   :  { %6562 = vst [vmem:[#allocation72_spill] sm:$0xff] %v5668_v37  ;;  %v1826_v51 = vmul.f32 %v1809_v24, %v5668_v37 }
 0x331   :  { %v1834_v28 = vadd.f32 %v1826_v51, %v1754_v55 }
 0x332   :  { %v5684_v24 = vpop.permute.xlu1 %1779 }
 0x333   :  { %6563 = vst [vmem:[#allocation73_spill] sm:$0xff] %v5684_v24  ;;  %v1827_v56 = vmul.f32 %v1813_v17, %v5684_v24  ;;  %v1849_v44 = vadd.f32 %v5507_v39, %v1834_v28  ;;  %v1517_v17 = vadd.f32 %v1509_v58, %v1437_v30  ;;  %v1596_v28 = vadd.f32 %v1588_v34, %v1516_v27 }
 0x334   :  { %v1817_v58 = vrot.slane %v5626_v11, %v5045_v18 }
 0x335   :  { %v1835_v55 = vadd.f32 %v1827_v56, %v1755_v43  ;;  %v1857_v51 = vmax.f32 %v1849_v44, 0.0  ;;  %v1597_v31 = vadd.f32 %v1589_v8, %v1517_v17  ;;  %v1676_v43 = vadd.f32 %v1668_v22, %v1596_v28  ;;  %v5709_v56 = vpop.permute.xlu0 %1707 }
 0x336   :  { %6565 = vst [vmem:[#allocation75_spill] sm:$0xff] %v5709_v56  ;;  %v1749_v8 = vmul.f32 %v1741_v60, %v5709_v56 }
 0x337   :  { %v5698_v25 = vpop.permute.xlu1 %1703  ;;  %4470 = vmatprep.mubr.msk.f32.mxu1 %vm1068_vm11, %v1857_v51  ;;  %v1850_v26 = vadd.f32 %v5507_v39, %v1835_v55  ;;  %v1677_v30 = vadd.f32 %v1669_v14, %v1597_v31  ;;  %v1821_v51 = vrot.slane %v5618_v53, %v5045_v18 }
 0x338   :  { %6564 = vst [vmem:[#allocation74_spill] sm:$0xff] %v5698_v25  ;;  %v1748_v48 = vmul.f32 %v1737_v41, %v5698_v25 }
 0x339   :  { %v1858_v1 = vmax.f32 %v1850_v26, 0.0  ;;  %v1757_v11 = vadd.f32 %v1749_v8, %v1677_v30 }
 0x33a   :  { %v1756_v32 = vadd.f32 %v1748_v48, %v1676_v43 }
 0x33b   :  { %4471 = vmatmul.mubr.msk.f32.gmra.mxu1 %vm1068_vm11, %v1858_v1 }
 0x33c   :  { %v5711_v44 = vpop.permute.xlu1 %1783 }
 0x33d   :  { %6566 = vst [vmem:[#allocation76_spill] sm:$0xff] %v5711_v44  ;;  %v1828_v27 = vmul.f32 %v1817_v58, %v5711_v44 }
 0x33f   :  { %v1836_v55 = vadd.f32 %v1828_v27, %v1756_v32 }
 0x340   :  { %v5719_v41 = vpop.permute.xlu1 %1787 }
 0x341   :  { %6567 = vst [vmem:[#allocation77_spill] sm:$0xff] %v5719_v41  ;;  %v1829_v34 = vmul.f32 %v1821_v51, %v5719_v41  ;;  %v1851_v17 = vadd.f32 %v5507_v39, %v1836_v55 }
 0x343   :  { %v1837_v22 = vadd.f32 %v1829_v34, %v1757_v11  ;;  %v1859_v26 = vmax.f32 %v1851_v17, 0.0 }
 0x345   :  { %4473 = vmatprep.mubr.msk.f32.mxu1 %vm1068_vm11, %v1859_v26  ;;  %v1852_v46 = vadd.f32 %v5507_v39, %v1837_v22 }
 0x347   :  { %v1860_v31 = vmax.f32 %v1852_v46, 0.0 }
 0x349   :  { %4474 = vmatmul.mubr.msk.f32.gmra.mxu1 %vm1068_vm11, %v1860_v31 }
 0x393   :  { %v4466_v28 = vpop.f32.mrf.mxu1 }
 0x394   :  { %v1999_v48 = vrot.slane %v4466_v28, %v5012_v2  ;;  %v2039_v53 = vrot.slane %v4466_v28, %v5021_v5  ;;  %v2087_v1 = vrot.slane %v4466_v28, %v5015_v3  ;;  %v2135_v14 = vrot.slane %v4466_v28, %v5018_v4 }
 0x395   :  { %v1953_v43 = vpop.f32.mrf.mxu1  ;;  %v2183_v39 = vrot.slane %v4466_v28, %v5031_v12  ;;  %v2231_v11 = vrot.slane %v4466_v28, %v5026_v9  ;;  %v2279_v31 = vrot.slane %v4466_v28, %v5048_v19 }
 0x396   :  { %v2025_v58 = vmul.f32 %v1999_v48, %v5378_v52  ;;  %v2065_v60 = vmul.f32 %v2039_v53, %v5384_v59  ;;  %v2113_v30 = vmul.f32 %v2087_v1, %v5390_v62  ;;  %v1995_v27 = vrot.slane %v1953_v43, %v5012_v2 }
 0x397   :  { %v2035_v8 = vrot.slane %v1953_v43, %v5021_v5  ;;  %v2083_v55 = vrot.slane %v1953_v43, %v5015_v3  ;;  %v2161_v51 = vmul.f32 %v2135_v14, %v5412_v13  ;;  %v2131_v26 = vrot.slane %v1953_v43, %v5018_v4 }
 0x398   :  { %v2073_v32 = vadd.f32 %v2065_v60, %v2025_v58  ;;  %v2024_v17 = vmul.f32 %v1995_v27, %v5372_v50  ;;  %v2209_v46 = vmul.f32 %v2183_v39, %v5399_v0  ;;  %v2179_v1 = vrot.slane %v1953_v43, %v5031_v12 }
 0x399   :  { %v2064_v22 = vmul.f32 %v2035_v8, %v5370_v49  ;;  %v2112_v53 = vmul.f32 %v2083_v55, %v5376_v10  ;;  %v2257_v14 = vmul.f32 %v2231_v11, %v5443_v42  ;;  %v2227_v27 = vrot.slane %v1953_v43, %v5026_v9 }
 0x39a   :  { %v2121_v34 = vadd.f32 %v2113_v30, %v2073_v32  ;;  %v2160_v32 = vmul.f32 %v2131_v26, %v5401_v6  ;;  %v2305_v8 = vmul.f32 %v2279_v31, %v5488_v57  ;;  %v2327_v39 = vrot.slane %v4466_v28, %v5045_v18  ;;  %v6569_v28 = vld [vmem:[#allocation45_spill] sm:$0xff] }
 0x39b   :  { %v2072_v58 = vadd.f32 %v2064_v22, %v2024_v17  ;;  %v2275_v55 = vrot.slane %v1953_v43, %v5048_v19  ;;  %v2256_v17 = vmul.f32 %v2227_v27, %v5434_v23  ;;  %v2323_v11 = vrot.slane %v1953_v43, %v5045_v18  ;;  %v6576_v23 = vld [vmem:[#allocation28_spill] sm:$0xff] }
 0x39c   :  { %v2169_v48 = vadd.f32 %v2161_v51, %v2121_v34  ;;  %v2208_v51 = vmul.f32 %v2179_v1, %v5418_v54  ;;  %v2353_v26 = vmul.f32 %v2327_v39, %v5416_v15  ;;  %v5761_v1 = vld [vmem:[%s6365_s7] ss:$0 sm:$0xff] }
 0x39d   :  { %v2120_v30 = vadd.f32 %v2112_v53, %v2072_v58 }
 0x39e   :  { %v2217_v60 = vadd.f32 %v2209_v46, %v2169_v48  ;;  %v6568_v48 = vld [vmem:[#allocation30_spill] sm:$0xff] }
 0x39f   :  { %v2168_v49 = vadd.f32 %v2160_v32, %v2120_v30  ;;  %v2304_v53 = vmul.f32 %v2275_v55, %v6568_v48 }
 0x3a0   :  { %v2265_v0 = vadd.f32 %v2257_v14, %v2217_v60  ;;  %v2352_v14 = vmul.f32 %v2323_v11, %v6569_v28 }
 0x3a1   :  { %v2216_v34 = vadd.f32 %v2208_v51, %v2168_v49  ;;  %v6570_v51 = vld [vmem:[#allocation29_spill] sm:$0xff] }
 0x3a2   :  { %v2313_v22 = vadd.f32 %v2305_v8, %v2265_v0 }
 0x3a3   :  { %v2264_v46 = vadd.f32 %v2256_v17, %v2216_v34  ;;  %v6571_v34 = vld [vmem:[#allocation23_spill] sm:$0xff] }
 0x3a4   :  { %v2361_v31 = vadd.f32 %v2353_v26, %v2313_v22 }
 0x3a5   :  { %v2312_v58 = vadd.f32 %v2304_v53, %v2264_v46 }
 0x3a6   :  { %v2376_v60 = vadd.f32 %v5761_v1, %v2361_v31  ;;  %v6572_v31 = vld [vmem:[#allocation25_spill] sm:$0xff] }
 0x3a7   :  { %v2360_v49 = vadd.f32 %v2352_v14, %v2312_v58  ;;  %v6573_v14 = vld [vmem:[#allocation22_spill] sm:$0xff] }
 0x3a8   :  { %v2384_v39 = vmax.f32 %v2376_v60, 0.0 }
 0x3a9   :  { %v2375_v43 = vadd.f32 %v5761_v1, %v2360_v49 }
 0x3ab   :  { %v4469_v0 = vpop.f32.mrf.mxu1  ;;  %v2383_v27 = vmax.f32 %v2375_v43, 0.0  ;;  %v6574_v43 = vld [vmem:[#allocation33_spill] sm:$0xff] }
 0x3ac   :  { %v2007_v30 = vrot.slane %v4469_v0, %v5012_v2  ;;  %v2047_v32 = vrot.slane %v4469_v0, %v5021_v5  ;;  %v2095_v11 = vrot.slane %v4469_v0, %v5015_v3  ;;  %v2143_v53 = vrot.slane %v4469_v0, %v5018_v4 }
 0x3ad   :  { %v1963_v8 = vpop.f32.mrf.mxu1  ;;  %4480 = vmatprep.mubr.msk.f32.mxu0 %vm1068_vm11, %v2383_v27  ;;  %v6575_v27 = vld [vmem:[#allocation24_spill] sm:$0xff] }
 0x3ae   :  { %v2027_v55 = vmul.f32 %v2007_v30, %v6570_v51  ;;  %v2067_v17 = vmul.f32 %v2047_v32, %v6571_v34  ;;  %v2003_v22 = vrot.slane %v1963_v8, %v5012_v2  ;;  %v2043_v26 = vrot.slane %v1963_v8, %v5021_v5  ;;  %4481 = vmatmul.mubr.msk.f32.vlgmr.msra.gmra.mxu0 %vm1068_vm11, %v2384_v39 }
 0x3af   :  { %v2091_v46 = vrot.slane %v1963_v8, %v5015_v3  ;;  %v2139_v60 = vrot.slane %v1963_v8, %v5018_v4  ;;  %v2115_v30 = vmul.f32 %v2095_v11, %v6574_v43  ;;  %v2191_v32 = vrot.slane %v4469_v0, %v5031_v12  ;;  %v6578_v11 = vld [vmem:[#allocation41_spill] sm:$0xff] }
 0x3b0   :  { %v2026_v58 = vmul.f32 %v2003_v22, %v6572_v31  ;;  %v2066_v49 = vmul.f32 %v2043_v26, %v6573_v14  ;;  %v2075_v34 = vadd.f32 %v2067_v17, %v2027_v55  ;;  %v2187_v28 = vrot.slane %v1963_v8, %v5031_v12  ;;  %v6577_v31 = vld [vmem:[#allocation35_spill] sm:$0xff] }
 0x3b1   :  { %v2114_v51 = vmul.f32 %v2091_v46, %v6575_v27  ;;  %v2163_v54 = vmul.f32 %v2143_v53, %v6576_v23  ;;  %v2239_v22 = vrot.slane %v4469_v0, %v5026_v9  ;;  %v2162_v26 = vmul.f32 %v2139_v60, %v6577_v31  ;;  %v6579_v46 = vld [vmem:[#allocation40_spill] sm:$0xff]  ;;  %v6583_v23 = vld [vmem:[#allocation49_spill] sm:$0xff] }
 0x3b2   :  { %v2074_v48 = vadd.f32 %v2066_v49, %v2026_v58  ;;  %v2123_v15 = vadd.f32 %v2115_v30, %v2075_v34  ;;  %v2235_v14 = vrot.slane %v1963_v8, %v5026_v9  ;;  %v2211_v43 = vmul.f32 %v2191_v32, %v6578_v11  ;;  %v6580_v49 = vld [vmem:[#allocation47_spill] sm:$0xff] }
 0x3b3   :  { %v2287_v55 = vrot.slane %v4469_v0, %v5048_v19  ;;  %v2210_v27 = vmul.f32 %v2187_v28, %v6579_v46  ;;  %v2283_v58 = vrot.slane %v1963_v8, %v5048_v19  ;;  %v2259_v53 = vmul.f32 %v2239_v22, %v6580_v49  ;;  %v6584_v28 = vld [vmem:[#allocation38_spill] sm:$0xff] }
 0x3b4   :  { %v2122_v39 = vadd.f32 %v2114_v51, %v2074_v48  ;;  %v2171_v57 = vadd.f32 %v2163_v54, %v2123_v15  ;;  %v2335_v30 = vrot.slane %v4469_v0, %v5045_v18  ;;  %v6581_v51 = vld [vmem:[#allocation51_spill] sm:$0xff]  ;;  %v2331_v31 = vrot.slane %v1963_v8, %v5045_v18  ;;  %v6582_v54 = vld [vmem:[#allocation50_spill] sm:$0xff] }
 0x3b5   :  { %v2258_v60 = vmul.f32 %v2235_v14, %v6581_v51  ;;  %v2307_v32 = vmul.f32 %v2287_v55, %v6582_v54 }
 0x3b6   :  { %v2170_v17 = vadd.f32 %v2162_v26, %v2122_v39  ;;  %v2219_v34 = vadd.f32 %v2211_v43, %v2171_v57  ;;  %v2306_v39 = vmul.f32 %v2283_v58, %v6583_v23  ;;  %v2355_v46 = vmul.f32 %v2335_v30, %v6584_v28  ;;  %v6585_v57 = vld [vmem:[#allocation53_spill] sm:$0xff]  ;;  %v6591_v23 = vld [vmem:[#allocation58_spill] sm:$0xff] }
 0x3b7   :  { %v2354_v43 = vmul.f32 %v2331_v31, %v6585_v57 }
 0x3b8   :  { %v2218_v48 = vadd.f32 %v2210_v27, %v2170_v17  ;;  %v2267_v15 = vadd.f32 %v2259_v53, %v2219_v34 }
 0x3ba   :  { %v2266_v11 = vadd.f32 %v2258_v60, %v2218_v48  ;;  %v2315_v26 = vadd.f32 %v2307_v32, %v2267_v15  ;;  %v6587_v60 = vld [vmem:[#allocation34_spill] sm:$0xff]  ;;  %v6588_v32 = vld [vmem:[#allocation52_spill] sm:$0xff] }
 0x3bc   :  { %v2314_v6 = vadd.f32 %v2306_v39, %v2266_v11  ;;  %v2363_v22 = vadd.f32 %v2355_v46, %v2315_v26  ;;  %v6586_v46 = vld [vmem:[#allocation54_spill] sm:$0xff] }
 0x3be   :  { %v2362_v49 = vadd.f32 %v2354_v43, %v2314_v6  ;;  %v2378_v0 = vadd.f32 %v5761_v1, %v2363_v22 }
 0x3c0   :  { %v2377_v14 = vadd.f32 %v5761_v1, %v2362_v49  ;;  %v2386_v8 = vmax.f32 %v2378_v0, 0.0 }
 0x3c2   :  { %v2385_v27 = vmax.f32 %v2377_v14, 0.0  ;;  %v6589_v14 = vld [vmem:[#allocation55_spill] sm:$0xff] }
 0x3c4   :  { %4483 = vmatprep.mubr.msk.f32.mxu0 %vm1068_vm11, %v2385_v27 }
 0x3c5   :  { %4484 = vmatmul.mubr.msk.f32.gmra.mxu0 %vm1068_vm11, %v2386_v8 }
 0x3fb   :  { %v4472_v55 = vpop.f32.mrf.mxu1 }
 0x3fc   :  { %v2015_v17 = vrot.slane %v4472_v55, %v5012_v2  ;;  %v2055_v58 = vrot.slane %v4472_v55, %v5021_v5  ;;  %v2103_v34 = vrot.slane %v4472_v55, %v5015_v3  ;;  %v2151_v48 = vrot.slane %v4472_v55, %v5018_v4 }
 0x3fd   :  { %v1973_v11 = vpop.f32.mrf.mxu1  ;;  %v2199_v22 = vrot.slane %v4472_v55, %v5031_v12 }
 0x3fe   :  { %v2029_v31 = vmul.f32 %v2015_v17, %v5432_v20  ;;  %v2069_v6 = vmul.f32 %v2055_v58, %v6586_v46  ;;  %v2011_v49 = vrot.slane %v1973_v11, %v5012_v2  ;;  %v2051_v53 = vrot.slane %v1973_v11, %v5021_v5  ;;  %v6590_v46 = vld [vmem:[#allocation44_spill] sm:$0xff] }
 0x3ff   :  { %v2099_v30 = vrot.slane %v1973_v11, %v5015_v3  ;;  %v2147_v26 = vrot.slane %v1973_v11, %v5018_v4  ;;  %v2117_v43 = vmul.f32 %v2103_v34, %v5570_v61  ;;  %v2195_v8 = vrot.slane %v1973_v11, %v5031_v12  ;;  %v6592_v34 = vld [vmem:[#allocation62_spill] sm:$0xff] }
 0x400   :  { %v2028_v15 = vmul.f32 %v2011_v49, %v6587_v60  ;;  %v2068_v39 = vmul.f32 %v2051_v53, %v6588_v32  ;;  %v2077_v0 = vadd.f32 %v2069_v6, %v2029_v31  ;;  %v2165_v20 = vmul.f32 %v2151_v48, %v6590_v46  ;;  %v6593_v31 = vld [vmem:[#allocation61_spill] sm:$0xff] }
 0x401   :  { %v2116_v27 = vmul.f32 %v2099_v30, %v6589_v14  ;;  %v2164_v49 = vmul.f32 %v2147_v26, %v6591_v23  ;;  %v2243_v53 = vrot.slane %v1973_v11, %v5026_v9  ;;  %v2247_v32 = vrot.slane %v4472_v55, %v5026_v9 }
 0x402   :  { %v2076_v17 = vadd.f32 %v2068_v39, %v2028_v15  ;;  %v2125_v58 = vadd.f32 %v2117_v43, %v2077_v0  ;;  %v2213_v61 = vmul.f32 %v2199_v22, %v6592_v34  ;;  %v2212_v6 = vmul.f32 %v2195_v8, %v6593_v31 }
 0x403   :  { %v2291_v30 = vrot.slane %v1973_v11, %v5048_v19  ;;  %v2339_v15 = vrot.slane %v1973_v11, %v5045_v18  ;;  %v2295_v48 = vrot.slane %v4472_v55, %v5048_v19  ;;  %v2260_v0 = vmul.f32 %v2243_v53, %v5614_v45 }
 0x404   :  { %v2124_v57 = vadd.f32 %v2116_v27, %v2076_v17  ;;  %v2173_v60 = vadd.f32 %v2165_v20, %v2125_v58  ;;  %v2261_v27 = vmul.f32 %v2247_v32, %v5592_v36  ;;  %v2343_v22 = vrot.slane %v4472_v55, %v5045_v18  ;;  %v6616_v36 = vld [vmem:[#allocation24_spill] sm:$0xff] }
 0x405   :  { %v2356_v32 = vmul.f32 %v2339_v15, %v5668_v37  ;;  %v6596_v15 = vld [vmem:[#allocation57_spill] sm:$0xff] }
 0x406   :  { %v2172_v51 = vadd.f32 %v2164_v49, %v2124_v57  ;;  %v2221_v39 = vadd.f32 %v2213_v61, %v2173_v60  ;;  %v6594_v61 = vld [vmem:[#allocation66_spill] sm:$0xff]  ;;  %v2309_v49 = vmul.f32 %v2295_v48, %v5665_v35 }
 0x407   :  { %v2308_v60 = vmul.f32 %v2291_v30, %v6594_v61  ;;  %v2357_v61 = vmul.f32 %v2343_v22, %v5684_v24 }
 0x408   :  { %v2220_v26 = vadd.f32 %v2212_v6, %v2172_v51  ;;  %v2269_v17 = vadd.f32 %v2261_v27, %v2221_v39 }
 0x409   :  { %v5828_v43 = vpop.f32.mrf.mxu1 }
 0x40a   :  { %v2023_v20 = vrot.slane %v5828_v43, %v5012_v2  ;;  %v2063_v57 = vrot.slane %v5828_v43, %v5021_v5  ;;  %v2268_v11 = vadd.f32 %v2260_v0, %v2220_v26  ;;  %v2111_v51 = vrot.slane %v5828_v43, %v5015_v3  ;;  %v6595_v0 = vld [vmem:[#allocation39_spill] sm:$0xff] }
 0x40b   :  { %v1983_v8 = vpop.f32.mrf.mxu1  ;;  %v2317_v27 = vadd.f32 %v2309_v49, %v2269_v17  ;;  %v2159_v45 = vrot.slane %v5828_v43, %v5018_v4 }
 0x40c   :  { %v2019_v58 = vrot.slane %v1983_v8, %v5012_v2  ;;  %v2031_v53 = vmul.f32 %v2023_v20, %v5483_v7  ;;  %v2071_v6 = vmul.f32 %v2063_v57, %v5576_v38  ;;  %v2059_v55 = vrot.slane %v1983_v8, %v5021_v5 }
 0x40d   :  { %v2107_v26 = vrot.slane %v1983_v8, %v5015_v3  ;;  %v2316_v39 = vadd.f32 %v2308_v60, %v2268_v11  ;;  %v2155_v48 = vrot.slane %v1983_v8, %v5018_v4  ;;  %v2207_v20 = vrot.slane %v5828_v43, %v5031_v12  ;;  %v6597_v11 = vld [vmem:[#allocation60_spill] sm:$0xff] }
 0x40e   :  { %v2030_v30 = vmul.f32 %v2019_v58, %v6595_v0  ;;  %v2070_v37 = vmul.f32 %v2059_v55, %v6596_v15  ;;  %v2203_v57 = vrot.slane %v1983_v8, %v5031_v12  ;;  %v2365_v7 = vadd.f32 %v2357_v61, %v2317_v27 }
 0x40f   :  { %v2364_v38 = vadd.f32 %v2356_v32, %v2316_v39  ;;  %v2119_v58 = vmul.f32 %v2111_v51, %v5514_v40  ;;  %v2118_v60 = vmul.f32 %v2107_v26, %v6597_v11  ;;  %v2079_v22 = vadd.f32 %v2071_v6, %v2031_v53 }
 0x410   :  { %v2078_v17 = vadd.f32 %v2070_v37, %v2030_v30  ;;  %v2380_v0 = vadd.f32 %v5761_v1, %v2365_v7  ;;  %v2251_v55 = vrot.slane %v1983_v8, %v5026_v9  ;;  %v2255_v15 = vrot.slane %v5828_v43, %v5026_v9 }
 0x411   :  { %v2379_v49 = vadd.f32 %v5761_v1, %v2364_v38  ;;  %v2166_v31 = vmul.f32 %v2155_v48, %v5584_v47  ;;  %v2127_v32 = vadd.f32 %v2119_v58, %v2079_v22  ;;  %v2167_v61 = vmul.f32 %v2159_v45, %v5586_v33 }
 0x412   :  { %v2126_v24 = vadd.f32 %v2118_v60, %v2078_v17  ;;  %v2214_v26 = vmul.f32 %v2203_v57, %v5528_v29  ;;  %v2299_v37 = vrot.slane %v1983_v8, %v5048_v19  ;;  %v2215_v38 = vmul.f32 %v2207_v20, %v5623_v21 }
 0x413   :  { %v2387_v51 = vmax.f32 %v2379_v49, 0.0  ;;  %v2388_v53 = vmax.f32 %v2380_v0, 0.0  ;;  %v2175_v6 = vadd.f32 %v2167_v61, %v2127_v32  ;;  %v2303_v30 = vrot.slane %v5828_v43, %v5048_v19  ;;  %v3300_v32 = vld [vmem:[#allocation11 + $0x8] sm:$0xff] }
 0x414   :  { %v2174_v7 = vadd.f32 %v2166_v31, %v2126_v24  ;;  %v2262_v39 = vmul.f32 %v2251_v55, %v5642_v16  ;;  %v2347_v27 = vrot.slane %v1983_v8, %v5045_v18  ;;  %v2263_v57 = vmul.f32 %v2255_v15, %v5634_v63  ;;  %4492 = vmatprep.subr.mxu0 %v3300_v32  ;;  %v6613_v63 = vld [vmem:[#allocation25_spill] sm:$0xff] }
 0x415   :  { %4486 = vmatprep.mubr.msk.f32.mxu0 %vm1068_vm11, %v2387_v51  ;;  %v2223_v48 = vadd.f32 %v2215_v38, %v2175_v6  ;;  %v2351_v0 = vrot.slane %v5828_v43, %v5045_v18  ;;  %v2310_v31 = vmul.f32 %v2299_v37, %v5698_v25  ;;  %v2311_v58 = vmul.f32 %v2303_v30, %v5709_v56  ;;  %v3299_v43 = vld [vmem:[#allocation11] sm:$0xff]  ;;  %v5885_v37 = vld [vmem:[#allocation10 + $0x8] sm:$0xff] }
 0x416   :  { %4487 = vmatmul.mubr.msk.f32.gmra.mxu0 %vm1068_vm11, %v2388_v53  ;;  %v2222_v45 = vadd.f32 %v2214_v26, %v2174_v7  ;;  %v2358_v17 = vmul.f32 %v2347_v27, %v5711_v44  ;;  %4584 = vmatprep.subr.mxu1 %v3300_v32  ;;  %6598 = vst [vmem:[#allocation38_spill] sm:$0xff] %v5885_v37  ;;  %v6604_v44 = vld [vmem:[#allocation37_spill] sm:$0xff] }
 0x417   :  { %v2271_v20 = vadd.f32 %v2263_v57, %v2223_v48  ;;  %v2359_v8 = vmul.f32 %v2351_v0, %v5719_v41  ;;  %4493 = vmatpush3.msra.mxu0 %v3300_v32  ;;  %4586 = vmatpush3.msra.mxu1 %v3300_v32  ;;  %v6612_v56 = vld [vmem:[#allocation41_spill] sm:$0xff] }
 0x418   :  { %v2270_v24 = vadd.f32 %v2262_v39, %v2222_v45  ;;  %4494 = vmatprep.subr.mxu0 %v3299_v43  ;;  %4585 = vmatprep.subr.mxu1 %v3299_v43 }
 0x419   :  { %v2319_v22 = vadd.f32 %v2311_v58, %v2271_v20  ;;  %4495 = vmatpush3.msra.mxu0 %v3299_v43  ;;  %4587 = vmatpush3.msra.mxu1 %v3299_v43 }
 0x41a   :  { %v2318_v60 = vadd.f32 %v2310_v31, %v2270_v24  ;;  %4508 = vmatprep.subr.mxu0 %v5885_v37  ;;  %v6619_v37 = vld [vmem:[#allocation51_spill] sm:$0xff] }
 0x41b   :  { %v2367_v55 = vadd.f32 %v2359_v8, %v2319_v22  ;;  %v6599_v22 = vld [vmem:[#allocation21_spill] sm:$0xff] }
 0x41c   :  { %v2366_v49 = vadd.f32 %v2358_v17, %v2318_v60 }
 0x41d   :  { %v2382_v61 = vadd.f32 %v5761_v1, %v2367_v55  ;;  %v6600_v55 = vld [vmem:[#allocation26_spill] sm:$0xff] }
 0x41e   :  { %v2381_v15 = vadd.f32 %v5761_v1, %v2366_v49 }
 0x41f   :  { %v2390_v26 = vmax.f32 %v2382_v61, 0.0 }
 0x420   :  { %v2389_v51 = vmax.f32 %v2381_v15, 0.0 }
 0x422   :  { %4489 = vmatprep.mubr.msk.f32.mxu0 %vm1068_vm11, %v2389_v51 }
 0x423   :  { %4490 = vmatmul.mubr.msk.f32.gmra.mxu0 %vm1068_vm11, %v2390_v26 }
 0x46e   :  { %v4482_v1 = vpop.f32.mrf.mxu0 }
 0x46f   :  { %v2529_v38 = vrot.slane %v4482_v1, %v5012_v2  ;;  %v2569_v53 = vrot.slane %v4482_v1, %v5021_v5  ;;  %v2617_v7 = vrot.slane %v4482_v1, %v5015_v3  ;;  %v2665_v6 = vrot.slane %v4482_v1, %v5018_v4 }
 0x470   :  { %v2483_v30 = vpop.f32.mrf.mxu0  ;;  %v2713_v48 = vrot.slane %v4482_v1, %v5031_v12  ;;  %v2761_v58 = vrot.slane %v4482_v1, %v5026_v9  ;;  %v2809_v15 = vrot.slane %v4482_v1, %v5048_v19 }
 0x471   :  { %v2555_v39 = vmul.f32 %v2529_v38, %v5378_v52  ;;  %v2595_v27 = vmul.f32 %v2569_v53, %v5384_v59  ;;  %v2643_v45 = vmul.f32 %v2617_v7, %v5390_v62  ;;  %v2525_v0 = vrot.slane %v2483_v30, %v5012_v2 }
 0x472   :  { %v2565_v24 = vrot.slane %v2483_v30, %v5021_v5  ;;  %v2613_v31 = vrot.slane %v2483_v30, %v5015_v3  ;;  %v2691_v20 = vmul.f32 %v2665_v6, %v5412_v13  ;;  %v2661_v49 = vrot.slane %v2483_v30, %v5018_v4  ;;  %v6601_v6 = vld [vmem:[#allocation27_spill] sm:$0xff] }
 0x473   :  { %v2603_v57 = vadd.f32 %v2595_v27, %v2555_v39  ;;  %v2554_v17 = vmul.f32 %v2525_v0, %v5372_v50  ;;  %v2739_v32 = vmul.f32 %v2713_v48, %v6600_v55  ;;  %v2709_v26 = vrot.slane %v2483_v30, %v5031_v12 }
 0x474   :  { %v2594_v8 = vmul.f32 %v2565_v24, %v6599_v22  ;;  %v2642_v51 = vmul.f32 %v2613_v31, %v5376_v10  ;;  %v2787_v38 = vmul.f32 %v2761_v58, %v5443_v42  ;;  %v2690_v39 = vmul.f32 %v2661_v49, %v6601_v6 }
 0x475   :  { %v2651_v60 = vadd.f32 %v2643_v45, %v2603_v57  ;;  %v2757_v27 = vrot.slane %v2483_v30, %v5026_v9  ;;  %v6602_v45 = vld [vmem:[#allocation43_spill] sm:$0xff]  ;;  %v2857_v48 = vrot.slane %v4482_v1, %v5045_v18  ;;  %v2805_v31 = vrot.slane %v2483_v30, %v5048_v19  ;;  %v5922_v1 = vld [vmem:[%s6367_s9] ss:$0 sm:$0xff] }
 0x476   :  { %v2602_v43 = vadd.f32 %v2594_v8, %v2554_v17  ;;  %v2835_v57 = vmul.f32 %v2809_v15, %v6602_v45 }
 0x477   :  { %v2699_v61 = vadd.f32 %v2691_v20, %v2651_v60  ;;  %v6603_v20 = vld [vmem:[#allocation32_spill] sm:$0xff]  ;;  %v2786_v58 = vmul.f32 %v2757_v27, %v6604_v44 }
 0x478   :  { %v2650_v7 = vadd.f32 %v2642_v51, %v2602_v43  ;;  %v2738_v60 = vmul.f32 %v2709_v26, %v6603_v20  ;;  %v6606_v51 = vld [vmem:[#allocation30_spill] sm:$0xff] }
 0x479   :  { %v2747_v53 = vadd.f32 %v2739_v32, %v2699_v61  ;;  %v2853_v32 = vrot.slane %v2483_v30, %v5045_v18  ;;  %v6605_v61 = vld [vmem:[#allocation31_spill] sm:$0xff]  ;;  %v2834_v25 = vmul.f32 %v2805_v31, %v6606_v51  ;;  %v6608_v31 = vld [vmem:[#allocation29_spill] sm:$0xff] }
 0x47a   :  { %v2698_v24 = vadd.f32 %v2690_v39, %v2650_v7  ;;  %v2883_v49 = vmul.f32 %v2857_v48, %v6605_v61 }
 0x47b   :  { %v2795_v0 = vadd.f32 %v2787_v38, %v2747_v53  ;;  %v6607_v38 = vld [vmem:[#allocation45_spill] sm:$0xff] }
 0x47c   :  { %v2746_v8 = vadd.f32 %v2738_v60, %v2698_v24  ;;  %v2882_v53 = vmul.f32 %v2853_v32, %v6607_v38 }
 0x47d   :  { %v2843_v17 = vadd.f32 %v2835_v57, %v2795_v0 }
 0x47e   :  { %v2794_v43 = vadd.f32 %v2786_v58, %v2746_v8 }
 0x47f   :  { %v2891_v15 = vadd.f32 %v2883_v49, %v2843_v17 }
 0x480   :  { %v2842_v26 = vadd.f32 %v2834_v25, %v2794_v43  ;;  %v6609_v25 = vld [vmem:[#allocation23_spill] sm:$0xff] }
 0x481   :  { %v2906_v39 = vadd.f32 %v5922_v1, %v2891_v15 }
 0x482   :  { %v2890_v7 = vadd.f32 %v2882_v53, %v2842_v26  ;;  %v6610_v26 = vld [vmem:[#allocation33_spill] sm:$0xff] }
 0x483   :  { %v5934_v32 = vmax.f32 %v2906_v39, 0.0 }
 0x484   :  { %v2905_v0 = vadd.f32 %v5922_v1, %v2890_v7 }
 0x485   :  { %v4485_v27 = vpop.f32.mrf.mxu0 }
 0x486   :  { %v2537_v30 = vrot.slane %v4485_v27, %v5012_v2  ;;  %v2577_v57 = vrot.slane %v4485_v27, %v5021_v5  ;;  %v2625_v48 = vrot.slane %v4485_v27, %v5015_v3  ;;  %v2673_v24 = vrot.slane %v4485_v27, %v5018_v4 }
 0x487   :  { %v2493_v60 = vpop.f32.mrf.mxu0  ;;  %v2721_v58 = vrot.slane %v4485_v27, %v5031_v12  ;;  %v2769_v49 = vrot.slane %v4485_v27, %v5026_v9  ;;  %v2817_v43 = vrot.slane %v4485_v27, %v5048_v19  ;;  %v5941_v29 = vmax.f32 %v2905_v0, 0.0 }
 0x488   :  { %v2557_v17 = vmul.f32 %v2537_v30, %v6608_v31  ;;  %v2597_v8 = vmul.f32 %v2577_v57, %v6609_v25  ;;  %v2645_v53 = vmul.f32 %v2625_v48, %v6610_v26  ;;  %v2533_v7 = vrot.slane %v2493_v60, %v5012_v2  ;;  %v6611_v30 = vld [vmem:[#allocation28_spill] sm:$0xff]  ;;  %v6615_v48 = vld [vmem:[#allocation47_spill] sm:$0xff] }
 0x489   :  { %v2573_v16 = vrot.slane %v2493_v60, %v5021_v5  ;;  %v2693_v47 = vmul.f32 %v2673_v24, %v6611_v30  ;;  %v2621_v57 = vrot.slane %v2493_v60, %v5015_v3  ;;  %v2669_v39 = vrot.slane %v2493_v60, %v5018_v4 }
 0x48a   :  { %v2605_v15 = vadd.f32 %v2597_v8, %v2557_v17  ;;  %v2741_v11 = vmul.f32 %v2721_v58, %v6612_v56  ;;  %v2556_v21 = vmul.f32 %v2533_v7, %v6613_v63  ;;  %v6614_v17 = vld [vmem:[#allocation22_spill] sm:$0xff]  ;;  %v2789_v33 = vmul.f32 %v2769_v49, %v6615_v48 }
 0x48b   :  { %v2596_v8 = vmul.f32 %v2573_v16, %v6614_v17  ;;  %v2837_v40 = vmul.f32 %v2817_v43, %v6582_v54  ;;  %v2865_v0 = vrot.slane %v4485_v27, %v5045_v18  ;;  %v2717_v35 = vrot.slane %v2493_v60, %v5031_v12  ;;  %v6618_v54 = vld [vmem:[#allocation40_spill] sm:$0xff] }
 0x48c   :  { %v2653_v41 = vadd.f32 %v2645_v53, %v2605_v15  ;;  %v2644_v14 = vmul.f32 %v2621_v57, %v6616_v36  ;;  %v2765_v15 = vrot.slane %v2493_v60, %v5026_v9  ;;  %v6617_v53 = vld [vmem:[#allocation35_spill] sm:$0xff]  ;;  %v2924_v7 = vrot.slane %v5941_v29, %v5012_v2 }
 0x48d   :  { %v2604_v23 = vadd.f32 %v2596_v8, %v2556_v21  ;;  %v2692_v58 = vmul.f32 %v2669_v39, %v6617_v53  ;;  %v2964_v16 = vrot.slane %v5941_v29, %v5021_v5  ;;  %v3012_v49 = vrot.slane %v5941_v29, %v5015_v3 }
 0x48e   :  { %v2701_v24 = vadd.f32 %v2693_v47, %v2653_v41  ;;  %v2813_v47 = vrot.slane %v2493_v60, %v5048_v19  ;;  %v2861_v21 = vrot.slane %v2493_v60, %v5045_v18  ;;  %v2885_v41 = vmul.f32 %v2865_v0, %v6584_v28 }
 0x48f   :  { %v2652_v43 = vadd.f32 %v2644_v14, %v2604_v23  ;;  %v2953_v57 = vmul.f32 %v2924_v7, %v5372_v50  ;;  %v2993_v39 = vmul.f32 %v2964_v16, %v6599_v22  ;;  %v3060_v8 = vrot.slane %v5941_v29, %v5018_v4  ;;  %v6621_v16 = vld [vmem:[#allocation53_spill] sm:$0xff] }
 0x490   :  { %v2749_v27 = vadd.f32 %v2741_v11, %v2701_v24  ;;  %v2740_v48 = vmul.f32 %v2717_v35, %v6618_v54  ;;  %v2788_v11 = vmul.f32 %v2765_v15, %v6619_v37  ;;  %v3041_v14 = vmul.f32 %v3012_v49, %v5376_v10  ;;  %v6620_v24 = vld [vmem:[#allocation49_spill] sm:$0xff] }
 0x491   :  { %v2700_v46 = vadd.f32 %v2692_v58, %v2652_v43  ;;  %v3001_v23 = vadd.f32 %v2993_v39, %v2953_v57  ;;  %v3108_v60 = vrot.slane %v5941_v29, %v5031_v12  ;;  %v2928_v50 = vrot.slane %v5934_v32, %v5012_v2 }
 0x492   :  { %v2797_v34 = vadd.f32 %v2789_v33, %v2749_v27  ;;  %v2836_v7 = vmul.f32 %v2813_v47, %v6620_v24  ;;  %v2884_v33 = vmul.f32 %v2861_v21, %v6621_v16  ;;  %v3089_v35 = vmul.f32 %v3060_v8, %v6601_v6 }
 0x493   :  { %v2748_v22 = vadd.f32 %v2740_v48, %v2700_v46  ;;  %v3049_v58 = vadd.f32 %v3041_v14, %v3001_v23  ;;  %v3156_v15 = vrot.slane %v5941_v29, %v5026_v9  ;;  %v2954_v10 = vmul.f32 %v2928_v50, %v5378_v52 }
 0x494   :  { %v2845_v0 = vadd.f32 %v2837_v40, %v2797_v34  ;;  %v2968_v43 = vrot.slane %v5934_v32, %v5021_v5  ;;  %v3016_v40 = vrot.slane %v5934_v32, %v5015_v3  ;;  %v3137_v34 = vmul.f32 %v3108_v60, %v6603_v20 }
 0x495   :  { %v2796_v27 = vadd.f32 %v2788_v11, %v2748_v22  ;;  %v3097_v46 = vadd.f32 %v3089_v35, %v3049_v58  ;;  %v3204_v48 = vrot.slane %v5941_v29, %v5048_v19  ;;  %v3252_v6 = vrot.slane %v5941_v29, %v5045_v18 }
 0x496   :  { %v2893_v49 = vadd.f32 %v2885_v41, %v2845_v0  ;;  %v2994_v21 = vmul.f32 %v2968_v43, %v5384_v59  ;;  %v3064_v41 = vrot.slane %v5934_v32, %v5018_v4  ;;  %v3185_v39 = vmul.f32 %v3156_v15, %v6604_v44 }
 0x497   :  { %v2844_v52 = vadd.f32 %v2836_v7, %v2796_v27  ;;  %v3145_v57 = vadd.f32 %v3137_v34, %v3097_v46  ;;  %v3112_v20 = vrot.slane %v5934_v32, %v5031_v12  ;;  %v3160_v8 = vrot.slane %v5934_v32, %v5026_v9 }
 0x498   :  { %v2908_v47 = vadd.f32 %v5922_v1, %v2893_v49  ;;  %v3002_v14 = vadd.f32 %v2994_v21, %v2954_v10  ;;  %v3042_v60 = vmul.f32 %v3016_v40, %v5390_v62  ;;  %v3233_v59 = vmul.f32 %v3204_v48, %v6606_v51 }
 0x499   :  { %v2892_v23 = vadd.f32 %v2884_v33, %v2844_v52  ;;  %v3193_v50 = vadd.f32 %v3185_v39, %v3145_v57  ;;  %v3281_v0 = vmul.f32 %v3252_v6, %v6607_v38  ;;  %v3090_v7 = vmul.f32 %v3064_v41, %v5412_v13 }
 0x49a   :  { %v6000_v11 = vmax.f32 %v2908_v47, 0.0  ;;  %v3050_v44 = vadd.f32 %v3042_v60, %v3002_v14  ;;  %v3138_v15 = vmul.f32 %v3112_v20, %v6600_v55  ;;  %v3186_v33 = vmul.f32 %v3160_v8, %v5443_v42 }
 0x49b   :  { %v2907_v22 = vadd.f32 %v5922_v1, %v2892_v23  ;;  %v3241_v35 = vadd.f32 %v3233_v59, %v3193_v50  ;;  %v3208_v38 = vrot.slane %v5934_v32, %v5048_v19  ;;  %v3256_v13 = vrot.slane %v5934_v32, %v5045_v18 }
 0x49c   :  { %v2936_v58 = vrot.slane %v6000_v11, %v5012_v2  ;;  %v2976_v62 = vrot.slane %v6000_v11, %v5021_v5  ;;  %v3098_v51 = vadd.f32 %v3090_v7, %v3050_v44  ;;  %v3024_v42 = vrot.slane %v6000_v11, %v5015_v3 }
 0x49d   :  { %v6013_v10 = vmax.f32 %v2907_v22, 0.0  ;;  %v3289_v49 = vadd.f32 %v3281_v0, %v3241_v35  ;;  %v3234_v6 = vmul.f32 %v3208_v38, %v6602_v45  ;;  %v3282_v21 = vmul.f32 %v3256_v13, %v6605_v61 }
 0x49e   :  { %v2956_v27 = vmul.f32 %v2936_v58, %v6608_v31  ;;  %v2996_v43 = vmul.f32 %v2976_v62, %v6609_v25  ;;  %v3146_v55 = vadd.f32 %v3138_v15, %v3098_v51  ;;  %v3072_v25 = vrot.slane %v6000_v11, %v5018_v4  ;;  %v6622_v58 = vld [vmem:[#allocation38_spill] sm:$0xff] }
 0x49f   :  { %v2932_v40 = vrot.slane %v6013_v10, %v5012_v2  ;;  %v2972_v46 = vrot.slane %v6013_v10, %v5021_v5  ;;  %v3020_v34 = vrot.slane %v6013_v10, %v5015_v3  ;;  %4496 = vmatprep.mubr.msk.f32.mxu0 %vm1068_vm11, %v3289_v49  ;;  %v3068_v31 = vrot.slane %v6013_v10, %v5018_v4  ;;  %v6624_v49 = vld [vmem:[#allocation50_spill] sm:$0xff] }
 0x4a0   :  { %v3194_v48 = vadd.f32 %v3186_v33, %v3146_v55  ;;  %v3116_v41 = vrot.slane %v6013_v10, %v5031_v12  ;;  %v3044_v57 = vmul.f32 %v3024_v42, %v6610_v26  ;;  %v3120_v39 = vrot.slane %v6000_v11, %v5031_v12  ;;  %v6623_v33 = vld [vmem:[#allocation47_spill] sm:$0xff] }
 0x4a1   :  { %v2955_v47 = vmul.f32 %v2932_v40, %v6613_v63  ;;  %v2995_v52 = vmul.f32 %v2972_v46, %v6614_v17  ;;  %v3043_v23 = vmul.f32 %v3020_v34, %v6616_v36  ;;  %v3004_v14 = vadd.f32 %v2996_v43, %v2956_v27  ;;  %v3297_v36 = vld [vmem:[#allocation10] sm:$0xff] }
 0x4a2   :  { %v3242_v20 = vadd.f32 %v3234_v6, %v3194_v48  ;;  %v3091_v45 = vmul.f32 %v3068_v31, %v6617_v53  ;;  %v3164_v63 = vrot.slane %v6013_v10, %v5026_v9  ;;  %v3092_v61 = vmul.f32 %v3072_v25, %v6611_v30  ;;  %v6626_v6 = vld [vmem:[#allocation54_spill] sm:$0xff] }
 0x4a3   :  { %v3003_v8 = vadd.f32 %v2995_v52, %v2955_v47  ;;  %v3052_v50 = vadd.f32 %v3044_v57, %v3004_v14  ;;  %v3168_v26 = vrot.slane %v6000_v11, %v5026_v9  ;;  %v3139_v59 = vmul.f32 %v3116_v41, %v6618_v54  ;;  %v6627_v47 = vld [vmem:[#allocation56_spill] sm:$0xff]  ;;  %v6629_v14 = vld [vmem:[#allocation34_spill] sm:$0xff] }
 0x4a4   :  { %v3290_v17 = vadd.f32 %v3282_v21, %v3242_v20  ;;  %v3212_v0 = vrot.slane %v6013_v10, %v5048_v19  ;;  %v3140_v44 = vmul.f32 %v3120_v39, %v6612_v56  ;;  %v3216_v30 = vrot.slane %v6000_v11, %v5048_v19  ;;  %v6628_v39 = vld [vmem:[#allocation44_spill] sm:$0xff] }
 0x4a5   :  { %v3051_v60 = vadd.f32 %v3043_v23, %v3003_v8  ;;  %v3100_v22 = vadd.f32 %v3092_v61, %v3052_v50  ;;  %v3187_v7 = vmul.f32 %v3164_v63, %v6619_v37  ;;  %v3260_v54 = vrot.slane %v6013_v10, %v5045_v18  ;;  %v6630_v63 = vld [vmem:[#allocation52_spill] sm:$0xff] }
 0x4a6   :  { %4497 = vmatmul.mubr.msk.f32.vlgmr.msra.gmra.mxu0 %vm1068_vm11, %v3290_v17  ;;  %v3188_v62 = vmul.f32 %v3168_v26, %v6623_v33  ;;  %v3264_v51 = vrot.slane %v6000_v11, %v5045_v18  ;;  %v3235_v38 = vmul.f32 %v3212_v0, %v6620_v24  ;;  %v3236_v37 = vmul.f32 %v3216_v30, %v6624_v49 }
 0x4a7   :  { %v3099_v53 = vadd.f32 %v3091_v45, %v3051_v60  ;;  %4509 = vmatpush3.msra.mxu0 %v6622_v58  ;;  %v3148_v15 = vadd.f32 %v3140_v44, %v3100_v22  ;;  %v3283_v43 = vmul.f32 %v3260_v54, %v6621_v16  ;;  %v6631_v60 = vld [vmem:[#allocation62_spill] sm:$0xff]  ;;  %v6633_v44 = vld [vmem:[#allocation65_spill] sm:$0xff] }
 0x4a8   :  { %4510 = vmatprep.subr.mxu0 %v3297_v36  ;;  %v3284_v55 = vmul.f32 %v3264_v51, %v6584_v28  ;;  %v6634_v54 = vld [vmem:[#allocation58_spill] sm:$0xff] }
 0x4a9   :  { %v3147_v35 = vadd.f32 %v3139_v59, %v3099_v53  ;;  %4511 = vmatpush3.msra.mxu0 %v3297_v36  ;;  %v3196_v13 = vadd.f32 %v3188_v62, %v3148_v15  ;;  %v6632_v36 = vld [vmem:[#allocation55_spill] sm:$0xff] }
 0x4ab   :  { %v3195_v56 = vadd.f32 %v3187_v7, %v3147_v35  ;;  %v3244_v42 = vadd.f32 %v3236_v37, %v3196_v13  ;;  %v6636_v37 = vld [vmem:[#allocation61_spill] sm:$0xff] }
 0x4ad   :  { %v3243_v27 = vadd.f32 %v3235_v38, %v3195_v56  ;;  %v3292_v46 = vadd.f32 %v3284_v55, %v3244_v42  ;;  %v6635_v38 = vld [vmem:[#allocation71_spill] sm:$0xff] }
 0x4af   :  { %v3291_v40 = vadd.f32 %v3283_v43, %v3243_v27 }
 0x4b1   :  { %4499 = vmatprep.mubr.msk.f32.mxu0 %vm1068_vm11, %v3291_v40 }
 0x4b2   :  { %4500 = vmatmul.mubr.msk.f32.gmra.mxu0 %vm1068_vm11, %v3292_v46 }
 0x4b3   :  { %4512 = vmatprep.mubr.msk.f32.mxu0 %vm1068_vm11, %v5941_v29  ;;  %v6625_v29 = vld [vmem:[#allocation36_spill] sm:$0xff] }
 0x4b6   :  { %4513 = vmatmul.mubr.msk.f32.vlgmr.msra.gmra.mxu0 %vm1068_vm11, %v5934_v32 }
 0x4b7   :  { %4515 = vmatprep.mubr.msk.f32.mxu0 %vm1068_vm11, %v6013_v10 }
 0x4ba   :  { %4516 = vmatmul.mubr.msk.f32.gmra.mxu0 %vm1068_vm11, %v6000_v11 }
 0x4d6   :  { %v4488_v24 = vpop.f32.mrf.mxu0 }
 0x4d7   :  { %v2545_v28 = vrot.slane %v4488_v24, %v5012_v2  ;;  %v2585_v16 = vrot.slane %v4488_v24, %v5021_v5  ;;  %v2633_v34 = vrot.slane %v4488_v24, %v5015_v3  ;;  %v2681_v31 = vrot.slane %v4488_v24, %v5018_v4 }
 0x4d8   :  { %v2503_v25 = vpop.f32.mrf.mxu0  ;;  %v2729_v10 = vrot.slane %v4488_v24, %v5031_v12  ;;  %v2777_v8 = vrot.slane %v4488_v24, %v5026_v9  ;;  %v2825_v26 = vrot.slane %v4488_v24, %v5048_v19  ;;  %v2873_v7 = vrot.slane %v4488_v24, %v5045_v18 }
 0x4d9   :  { %v2559_v48 = vmul.f32 %v2545_v28, %v6625_v29  ;;  %v2599_v32 = vmul.f32 %v2585_v16, %v6626_v6  ;;  %v2647_v52 = vmul.f32 %v2633_v34, %v6627_v47  ;;  %v2541_v11 = vrot.slane %v2503_v25, %v5012_v2  ;;  %v6637_v28 = vld [vmem:[#allocation73_spill] sm:$0xff] }
 0x4da   :  { %v2581_v41 = vrot.slane %v2503_v25, %v5021_v5  ;;  %v2629_v57 = vrot.slane %v2503_v25, %v5015_v3  ;;  %v2695_v20 = vmul.f32 %v2681_v31, %v6628_v39  ;;  %v2677_v17 = vrot.slane %v2503_v25, %v5018_v4  ;;  %v6638_v31 = vld [vmem:[#allocation67_spill] sm:$0xff] }
 0x4db   :  { %v2607_v21 = vadd.f32 %v2599_v32, %v2559_v48  ;;  %v2558_v45 = vmul.f32 %v2541_v11, %v6629_v14  ;;  %v2743_v50 = vmul.f32 %v2729_v10, %v6631_v60  ;;  %v2725_v22 = vrot.slane %v2503_v25, %v5031_v12  ;;  %v6639_v32 = vld [vmem:[#allocation66_spill] sm:$0xff]  ;;  %v6640_v10 = vld [vmem:[#allocation72_spill] sm:$0xff] }
 0x4dc   :  { %v2598_v61 = vmul.f32 %v2581_v41, %v6630_v63  ;;  %v2646_v53 = vmul.f32 %v2629_v57, %v6632_v36  ;;  %v2791_v30 = vmul.f32 %v2777_v8, %v6633_v44  ;;  %v2694_v15 = vmul.f32 %v2677_v17, %v6634_v54  ;;  %v6641_v11 = vld [vmem:[#allocation42_spill] sm:$0xff]  ;;  %v6642_v57 = vld [vmem:[#allocation59_spill] sm:$0xff] }
 0x4dd   :  { %v2655_v23 = vadd.f32 %v2647_v52, %v2607_v21  ;;  %v2773_v33 = vrot.slane %v2503_v25, %v5026_v9  ;;  %v2821_v62 = vrot.slane %v2503_v25, %v5048_v19  ;;  %v2869_v51 = vrot.slane %v2503_v25, %v5045_v18 }
 0x4de   :  { %v2606_v0 = vadd.f32 %v2598_v61, %v2558_v45  ;;  %v2839_v13 = vmul.f32 %v2825_v26, %v6635_v38  ;;  %v2742_v27 = vmul.f32 %v2725_v22, %v6636_v37  ;;  %v2887_v16 = vmul.f32 %v2873_v7, %v6637_v28 }
 0x4df   :  { %v2703_v59 = vadd.f32 %v2695_v20, %v2655_v23  ;;  %v2790_v25 = vmul.f32 %v2773_v33, %v6638_v31  ;;  %v2838_v52 = vmul.f32 %v2821_v62, %v6639_v32  ;;  %v2886_v21 = vmul.f32 %v2869_v51, %v6640_v10  ;;  %v6645_v62 = vld [vmem:[#allocation39_spill] sm:$0xff] }
 0x4e0   :  { %v2654_v35 = vadd.f32 %v2646_v53, %v2606_v0 }
 0x4e1   :  { %v2751_v58 = vadd.f32 %v2743_v50, %v2703_v59  ;;  %v6643_v50 = vld [vmem:[#allocation46_spill] sm:$0xff]  ;;  %v6644_v59 = vld [vmem:[#allocation64_spill] sm:$0xff] }
 0x4e2   :  { %v2702_v49 = vadd.f32 %v2694_v15, %v2654_v35 }
 0x4e3   :  { %v2799_v56 = vadd.f32 %v2791_v30, %v2751_v58  ;;  %v4491_v43 = vpop.f32.mrf.mxu0 }
 0x4e4   :  { %v2553_v42 = vrot.slane %v4491_v43, %v5012_v2  ;;  %v2593_v55 = vrot.slane %v4491_v43, %v5021_v5  ;;  %v2641_v40 = vrot.slane %v4491_v43, %v5015_v3  ;;  %v2689_v46 = vrot.slane %v4491_v43, %v5018_v4 }
 0x4e5   :  { %v2847_v24 = vadd.f32 %v2839_v13, %v2799_v56  ;;  %v2750_v34 = vadd.f32 %v2742_v27, %v2702_v49  ;;  %v2513_v48 = vpop.f32.mrf.mxu0  ;;  %v2737_v45 = vrot.slane %v4491_v43, %v5031_v12  ;;  %v2785_v61 = vrot.slane %v4491_v43, %v5026_v9  ;;  %v6646_v13 = vld [vmem:[#allocation68_spill] sm:$0xff]  ;;  %v6647_v27 = vld [vmem:[#allocation57_spill] sm:$0xff] }
 0x4e6   :  { %v2561_v41 = vmul.f32 %v2553_v42, %v6641_v11  ;;  %v2601_v20 = vmul.f32 %v2593_v55, %v6642_v57  ;;  %v2649_v26 = vmul.f32 %v2641_v40, %v6643_v50  ;;  %v2697_v0 = vmul.f32 %v2689_v46, %v6644_v59 }
 0x4e7   :  { %v2895_v8 = vadd.f32 %v2887_v16, %v2847_v24  ;;  %v2798_v23 = vadd.f32 %v2790_v25, %v2750_v34  ;;  %v2549_v53 = vrot.slane %v2513_v48, %v5012_v2  ;;  %v2833_v30 = vrot.slane %v4491_v43, %v5048_v19  ;;  %v6648_v34 = vld [vmem:[#allocation69_spill] sm:$0xff] }
 0x4e8   :  { %v2609_v17 = vadd.f32 %v2601_v20, %v2561_v41  ;;  %v2589_v7 = vrot.slane %v2513_v48, %v5021_v5  ;;  %v2637_v58 = vrot.slane %v2513_v48, %v5015_v3  ;;  %v2881_v33 = vrot.slane %v4491_v43, %v5045_v18  ;;  %v6649_v43 = vld [vmem:[#allocation60_spill] sm:$0xff] }
 0x4e9   :  { %v2846_v22 = vadd.f32 %v2838_v52, %v2798_v23  ;;  %v2910_v35 = vadd.f32 %v5922_v1, %v2895_v8  ;;  %v2560_v51 = vmul.f32 %v2549_v53, %v6645_v62  ;;  %v2745_v49 = vmul.f32 %v2737_v45, %v6646_v13  ;;  %v6650_v8 = vld [vmem:[#allocation75_spill] sm:$0xff]  ;;  %v6651_v45 = vld [vmem:[#allocation77_spill] sm:$0xff] }
 0x4ea   :  { %v2657_v15 = vadd.f32 %v2649_v26, %v2609_v17  ;;  %v2600_v42 = vmul.f32 %v2589_v7, %v6647_v27  ;;  %v2685_v40 = vrot.slane %v2513_v48, %v5018_v4  ;;  %v2733_v46 = vrot.slane %v2513_v48, %v5031_v12  ;;  %v6652_v53 = vld [vmem:[#allocation63_spill] sm:$0xff] }
 0x4eb   :  { %v2894_v56 = vadd.f32 %v2886_v21, %v2846_v22  ;;  %v2781_v24 = vrot.slane %v2513_v48, %v5026_v9  ;;  %v2793_v25 = vmul.f32 %v2785_v61, %v6648_v34  ;;  %v2648_v41 = vmul.f32 %v2637_v58, %v6649_v43  ;;  %v6654_v61 = vld [vmem:[#allocation70_spill] sm:$0xff] }
 0x4ec   :  { %v2705_v55 = vadd.f32 %v2697_v0, %v2657_v15  ;;  %v2608_v52 = vadd.f32 %v2600_v42, %v2560_v51  ;;  %v6135_v20 = vmax.f32 %v2910_v35, 0.0  ;;  %v2841_v23 = vmul.f32 %v2833_v30, %v6650_v8 }
 0x4ed   :  { %v2909_v16 = vadd.f32 %v5922_v1, %v2894_v56  ;;  %v2889_v17 = vmul.f32 %v2881_v33, %v6651_v45  ;;  %v2696_v22 = vmul.f32 %v2685_v40, %v6652_v53  ;;  %v2829_v7 = vrot.slane %v2513_v48, %v5048_v19  ;;  %v6653_v56 = vld [vmem:[#allocation48_spill] sm:$0xff] }
 0x4ee   :  { %v2753_v21 = vadd.f32 %v2745_v49, %v2705_v55  ;;  %v2656_v0 = vadd.f32 %v2648_v41, %v2608_v52  ;;  %v2744_v13 = vmul.f32 %v2733_v46, %v6653_v56  ;;  %v2792_v51 = vmul.f32 %v2781_v24, %v6654_v61  ;;  %v6655_v41 = vld [vmem:[#allocation74_spill] sm:$0xff] }
 0x4ef   :  { %v2917_v26 = vmax.f32 %v2909_v16, 0.0  ;;  %v2877_v58 = vrot.slane %v2513_v48, %v5045_v18  ;;  %v2944_v40 = vrot.slane %v6135_v20, %v5012_v2  ;;  %v2984_v48 = vrot.slane %v6135_v20, %v5021_v5 }
 0x4f0   :  { %v2801_v15 = vadd.f32 %v2793_v25, %v2753_v21  ;;  %v2704_v35 = vadd.f32 %v2696_v22, %v2656_v0  ;;  %v3032_v25 = vrot.slane %v6135_v20, %v5015_v3  ;;  %v2840_v21 = vmul.f32 %v2829_v7, %v6655_v41 }
 0x4f1   :  { %4518 = vmatprep.mubr.msk.f32.mxu0 %vm1068_vm11, %v2917_v26  ;;  %v2940_v30 = vrot.slane %v2917_v26, %v5012_v2  ;;  %v2980_v33 = vrot.slane %v2917_v26, %v5021_v5  ;;  %v3028_v49 = vrot.slane %v2917_v26, %v5015_v3  ;;  %v3076_v55 = vrot.slane %v2917_v26, %v5018_v4 }
 0x4f2   :  { %v2849_v42 = vadd.f32 %v2841_v23, %v2801_v15  ;;  %4519 = vmatmul.mubr.msk.f32.gmra.mxu0 %vm1068_vm11, %v6135_v20  ;;  %v2752_v46 = vadd.f32 %v2744_v13, %v2704_v35  ;;  %v6656_v23 = vld [vmem:[#allocation76_spill] sm:$0xff]  ;;  %v3124_v22 = vrot.slane %v2917_v26, %v5031_v12  ;;  %v3172_v13 = vrot.slane %v2917_v26, %v5026_v9 }
 0x4f3   :  { %v2957_v24 = vmul.f32 %v2940_v30, %v6629_v14  ;;  %v2997_v16 = vmul.f32 %v2980_v33, %v6630_v63  ;;  %v2888_v0 = vmul.f32 %v2877_v58, %v6656_v23  ;;  %v3045_v8 = vmul.f32 %v3028_v49, %v6632_v36 }
 0x4f4   :  { %v2897_v52 = vadd.f32 %v2889_v17, %v2849_v42  ;;  %v2800_v15 = vadd.f32 %v2792_v51, %v2752_v46  ;;  %v3093_v63 = vmul.f32 %v3076_v55, %v6634_v54  ;;  %v2958_v35 = vmul.f32 %v2944_v40, %v6625_v29 }
 0x4f5   :  { %v3005_v45 = vadd.f32 %v2997_v16, %v2957_v24  ;;  %v2998_v17 = vmul.f32 %v2984_v48, %v6626_v6  ;;  %v3220_v58 = vrot.slane %v2917_v26, %v5048_v19  ;;  %v3046_v33 = vmul.f32 %v3032_v25, %v6627_v47 }
 0x4f6   :  { %v2912_v14 = vadd.f32 %v5922_v1, %v2897_v52  ;;  %v2848_v30 = vadd.f32 %v2840_v21, %v2800_v15  ;;  %v3080_v36 = vrot.slane %v6135_v20, %v5018_v4  ;;  %v3128_v49 = vrot.slane %v6135_v20, %v5031_v12  ;;  %v3585_v15 = vld [vmem:[%s6371_s13 + $0x18] sm:$0xff] }
 0x4f7   :  { %v3053_v7 = vadd.f32 %v3045_v8, %v3005_v45  ;;  %v3006_v42 = vadd.f32 %v2998_v17, %v2958_v35  ;;  %v3141_v29 = vmul.f32 %v3124_v22, %v6636_v37  ;;  %v3268_v6 = vrot.slane %v2917_v26, %v5045_v18  ;;  %4524 = vmatprep.subr.mxu1 %v3585_v15 }
 0x4f8   :  { %v6170_v51 = vmax.f32 %v2912_v14, 0.0  ;;  %v2896_v54 = vadd.f32 %v2888_v0, %v2848_v30  ;;  %v3189_v8 = vmul.f32 %v3172_v13, %v6638_v31  ;;  %v3094_v47 = vmul.f32 %v3080_v36, %v6628_v39 }
 0x4f9   :  { %v3101_v55 = vadd.f32 %v3093_v63, %v3053_v7  ;;  %v3054_v45 = vadd.f32 %v3046_v33, %v3006_v42  ;;  %v3176_v40 = vrot.slane %v6135_v20, %v5026_v9  ;;  %v3237_v24 = vmul.f32 %v3220_v58, %v6639_v32 }
 0x4fa   :  { %v2911_v48 = vadd.f32 %v5922_v1, %v2896_v54  ;;  %v3224_v16 = vrot.slane %v6135_v20, %v5048_v19  ;;  %v3142_v37 = vmul.f32 %v3128_v49, %v6631_v60  ;;  %v2952_v31 = vrot.slane %v6170_v51, %v5012_v2 }
 0x4fb   :  { %v3149_v46 = vadd.f32 %v3141_v29, %v3101_v55  ;;  %v3102_v25 = vadd.f32 %v3094_v47, %v3054_v45  ;;  %v2992_v39 = vrot.slane %v6170_v51, %v5021_v5  ;;  %v3285_v1 = vmul.f32 %v3268_v6, %v6640_v10 }
 0x4fc   :  { %v6191_v26 = vmax.f32 %v2911_v48, 0.0  ;;  %v3272_v32 = vrot.slane %v6135_v20, %v5045_v18  ;;  %v3190_v0 = vmul.f32 %v3176_v40, %v6633_v44  ;;  %v2960_v22 = vmul.f32 %v2952_v31, %v6641_v11  ;;  %v3583_v40 = vld [vmem:[%s6371_s13 + $0x8] sm:$0xff] }
 0x4fd   :  { %v3197_v52 = vadd.f32 %v3189_v8, %v3149_v46  ;;  %v3150_v21 = vadd.f32 %v3142_v37, %v3102_v25  ;;  %v3000_v60 = vmul.f32 %v2992_v39, %v6642_v57  ;;  %v3238_v57 = vmul.f32 %v3224_v16, %v6635_v38  ;;  %v6657_v46 = vld [vmem:[#allocation68_spill] sm:$0xff] }
 0x4fe   :  { %4521 = vmatprep.mubr.msk.f32.mxu0 %vm1068_vm11, %v6191_v26  ;;  %v2948_v10 = vrot.slane %v6191_v26, %v5012_v2  ;;  %v2988_v20 = vrot.slane %v6191_v26, %v5021_v5  ;;  %v3036_v44 = vrot.slane %v6191_v26, %v5015_v3  ;;  %v3040_v14 = vrot.slane %v6170_v51, %v5015_v3  ;;  %v3582_v37 = vld [vmem:[%s6371_s13] sm:$0xff] }
 0x4ff   :  { %v3245_v13 = vadd.f32 %v3237_v24, %v3197_v52  ;;  %4522 = vmatmul.mubr.msk.f32.gmra.mxu0 %vm1068_vm11, %v6170_v51  ;;  %v3198_v11 = vadd.f32 %v3190_v0, %v3150_v21  ;;  %v3084_v30 = vrot.slane %v6191_v26, %v5018_v4  ;;  %v3286_v58 = vmul.f32 %v3272_v32, %v6637_v28  ;;  %v6658_v21 = vld [vmem:[#allocation75_spill] sm:$0xff] }
 0x500   :  { %v2959_v35 = vmul.f32 %v2948_v10, %v6645_v62  ;;  %v2999_v17 = vmul.f32 %v2988_v20, %v6647_v27  ;;  %v3088_v33 = vrot.slane %v6170_v51, %v5018_v4  ;;  %v3047_v42 = vmul.f32 %v3036_v44, %v6649_v43  ;;  %v3584_v43 = vld [vmem:[%s6371_s13 + $0x10] sm:$0xff] }
 0x501   :  { %v3293_v63 = vadd.f32 %v3285_v1, %v3245_v13  ;;  %v3246_v7 = vadd.f32 %v3238_v57, %v3198_v11  ;;  %v3132_v62 = vrot.slane %v6191_v26, %v5031_v12  ;;  %v3008_v36 = vadd.f32 %v3000_v60, %v2960_v22 }
 0x502   :  { %v3007_v38 = vadd.f32 %v2999_v17, %v2959_v35  ;;  %v3048_v49 = vmul.f32 %v3040_v14, %v6643_v50  ;;  %v3136_v54 = vrot.slane %v6170_v51, %v5031_v12  ;;  %v3095_v28 = vmul.f32 %v3084_v30, %v6652_v53 }
 0x503   :  { %4502 = vmatprep.mubr.msk.f32.mxu1 %vm1068_vm11, %v3293_v63  ;;  %v3294_v27 = vadd.f32 %v3286_v58, %v3246_v7  ;;  %v3180_v29 = vrot.slane %v6191_v26, %v5026_v9  ;;  %v3096_v8 = vmul.f32 %v3088_v33, %v6644_v59  ;;  %v3184_v50 = vrot.slane %v6170_v51, %v5026_v9 }
 0x504   :  { %v3055_v55 = vadd.f32 %v3047_v42, %v3007_v38  ;;  %v3056_v6 = vadd.f32 %v3048_v49, %v3008_v36  ;;  %v3143_v47 = vmul.f32 %v3132_v62, %v6653_v56  ;;  %v3228_v53 = vrot.slane %v6191_v26, %v5048_v19 }
 0x505   :  { %4503 = vmatmul.mubr.msk.f32.vlgmr.msra.gmra.mxu1 %vm1068_vm11, %v3294_v27  ;;  %v3144_v24 = vmul.f32 %v3136_v54, %v6657_v46  ;;  %v3232_v59 = vrot.slane %v6170_v51, %v5048_v19  ;;  %v3191_v25 = vmul.f32 %v3180_v29, %v6654_v61  ;;  %v3276_v56 = vrot.slane %v6191_v26, %v5045_v18  ;;  %v3733_v29 = vld [vmem:[%s6373_s15 + $0x10] sm:$0xff] }
 0x506   :  { %v3103_v45 = vadd.f32 %v3095_v28, %v3055_v55  ;;  %4525 = vmatpush3.msra.mxu1 %v3585_v15  ;;  %v3104_v48 = vadd.f32 %v3096_v8, %v3056_v6  ;;  %v3192_v39 = vmul.f32 %v3184_v50, %v6648_v34  ;;  %v3280_v52 = vrot.slane %v6170_v51, %v5045_v18  ;;  %v6659_v15 = vld [vmem:[#allocation77_spill] sm:$0xff]  ;;  %v3734_v55 = vld [vmem:[%s6373_s15 + $0x18] sm:$0xff] }
 0x507   :  { %4526 = vmatprep.subr.mxu1 %v3584_v43  ;;  %v3239_v32 = vmul.f32 %v3228_v53, %v6655_v41  ;;  %v3240_v0 = vmul.f32 %v3232_v59, %v6658_v21  ;;  %v3287_v22 = vmul.f32 %v3276_v56, %v6656_v23  ;;  %v4300_v23 = vld [vmem:[%s6370_s12] ss:$0 sm:$0xff]  ;;  %4544 = vmatprep.subr.mxu0 %v3734_v55  ;;  %v3732_v50 = vld [vmem:[%s6373_s15 + $0x8] sm:$0xff] }
 0x508   :  { %v3151_v16 = vadd.f32 %v3143_v47, %v3103_v45  ;;  %4527 = vmatpush3.msra.mxu1 %v3584_v43  ;;  %v3152_v31 = vadd.f32 %v3144_v24, %v3104_v48  ;;  %v3288_v13 = vmul.f32 %v3280_v52, %v6659_v15  ;;  %4545 = vmatpush3.msra.mxu0 %v3734_v55  ;;  %v3731_v53 = vld [vmem:[%s6373_s15] sm:$0xff] }
 0x509   :  { %4528 = vmatprep.subr.mxu1 %v3583_v40  ;;  %4546 = vmatprep.subr.mxu0 %v3733_v29 }
 0x50a   :  { %v3199_v1 = vadd.f32 %v3191_v25, %v3151_v16  ;;  %4529 = vmatpush3.msra.mxu1 %v3583_v40  ;;  %v3200_v61 = vadd.f32 %v3192_v39, %v3152_v31  ;;  %4547 = vmatpush3.msra.mxu0 %v3733_v29 }
 0x50b   :  { %4530 = vmatprep.subr.mxu1 %v3582_v37  ;;  %4548 = vmatprep.subr.mxu0 %v3732_v50 }
 0x50c   :  { %v3247_v26 = vadd.f32 %v3239_v32, %v3199_v1  ;;  %4531 = vmatpush3.msra.mxu1 %v3582_v37  ;;  %v3248_v60 = vadd.f32 %v3240_v0, %v3200_v61  ;;  %4549 = vmatpush3.msra.mxu0 %v3732_v50  ;;  %v4301_v32 = vld [vmem:[%s6372_s14] ss:$0 sm:$0xff] }
 0x50d   :  { %4550 = vmatprep.subr.mxu0 %v3731_v53 }
 0x50e   :  { %v3295_v34 = vadd.f32 %v3287_v22, %v3247_v26  ;;  %v3296_v10 = vadd.f32 %v3288_v13, %v3248_v60  ;;  %4551 = vmatpush3.msra.mxu0 %v3731_v53 }
 0x510   :  { %4505 = vmatprep.mubr.msk.f32.mxu1 %vm1068_vm11, %v3295_v34 }
 0x511   :  { %4506 = vmatmul.mubr.msk.f32.gmra.mxu1 %vm1068_vm11, %v3296_v10 }
 0x566   :  { %v4498_v51 = vpop.f32.mrf.mxu0 }
 0x568   :  { %v3391_v41 = vpop.f32.mrf.mxu0 }
 0x572   :  { %v4501_v20 = vpop.f32.mrf.mxu0 }
 0x574   :  { %v3401_v44 = vpop.f32.mrf.mxu0 }
 0x576   :  { %v4514_v11 = vpop.f32.mrf.mxu0 }
 0x577   :  { %v3526_v57 = vadd.f32 %v4514_v11, %v4498_v51 }
 0x578   :  { %v3520_v14 = vpop.f32.mrf.mxu0 }
 0x579   :  { %v3521_v63 = vadd.f32 %v3520_v14, %v3391_v41  ;;  %v3567_v35 = vadd.f32 %v4300_v23, %v3526_v57  ;;  %v3880_v57 = vld [vmem:[%s6375_s17 + $0x8] sm:$0xff] }
 0x57a   :  { %v4517_v17 = vpop.f32.mrf.mxu0 }
 0x57b   :  { %v3566_v30 = vadd.f32 %v4300_v23, %v3521_v63  ;;  %v3536_v7 = vadd.f32 %v4517_v17, %v4501_v20  ;;  %v3575_v42 = vmax.f32 %v3567_v35, 0.0  ;;  %v3882_v20 = vld [vmem:[%s6375_s17 + $0x18] sm:$0xff]  ;;  %v3879_v63 = vld [vmem:[%s6375_s17] sm:$0xff] }
 0x57c   :  { %v3530_v58 = vpop.f32.mrf.mxu0  ;;  %4564 = vmatprep.subr.mxu1 %v3882_v20 }
 0x57d   :  { %v3574_v33 = vmax.f32 %v3566_v30, 0.0  ;;  %v3531_v38 = vadd.f32 %v3530_v58, %v3401_v44  ;;  %v3569_v62 = vadd.f32 %v4300_v23, %v3536_v7  ;;  %v3881_v44 = vld [vmem:[%s6375_s17 + $0x10] sm:$0xff] }
 0x57f   :  { %v3568_v36 = vadd.f32 %v4300_v23, %v3531_v38  ;;  %4532 = vmatprep.mubr.msk.f32.mxu1 %vm3593_vm12, %v3574_v33  ;;  %v3577_v49 = vmax.f32 %v3569_v62, 0.0 }
 0x580   :  { %4533 = vmatmul.mubr.msk.f32.vlgmr.msra.gmra.mxu1 %vm3593_vm12, %v3575_v42 }
 0x581   :  { %v3576_v27 = vmax.f32 %v3568_v36, 0.0  ;;  %4565 = vmatpush3.msra.mxu1 %v3882_v20  ;;  %v6309_v36 = vld [vmem:[#allocation5] sm:$0xff] }
 0x582   :  { %4566 = vmatprep.subr.mxu1 %v3881_v44  ;;  %v4090_v55 = vrot.slane %v6309_v36, %v5031_v12 }
 0x583   :  { %4535 = vmatprep.mubr.msk.f32.mxu1 %vm3593_vm12, %v3576_v27  ;;  %4567 = vmatpush3.msra.mxu1 %v3881_v44  ;;  %v4062_v27 = vrot.slane %v6309_v36, %v5012_v2  ;;  %v4097_v2 = vrot.slane %v6309_v36, %v5026_v9 }
 0x584   :  { %4536 = vmatmul.mubr.msk.f32.gmra.mxu1 %vm3593_vm12, %v3577_v49  ;;  %4568 = vmatprep.subr.mxu1 %v3880_v57  ;;  %v4069_v49 = vrot.slane %v6309_v36, %v5021_v5  ;;  %v4310_v5 = vld [vmem:[%s6374_s16] ss:$0 sm:$0xff] }
 0x585   :  { %4569 = vmatpush3.msra.mxu1 %v3880_v57  ;;  %4064 = vbcast.lane.b32.xlu1 %v4062_v27, 256 }
 0x586   :  { %4570 = vmatprep.subr.mxu1 %v3879_v63  ;;  %4071 = vbcast.lane.b32.xlu0 %v4069_v49, 256 }
 0x587   :  { %4571 = vmatpush3.msra.mxu1 %v3879_v63 }
 0x58a   :  { %4092 = vbcast.lane.b32.xlu0 %v4090_v55, 256 }
 0x5b2   :  { %v4520_v54 = vpop.f32.mrf.mxu0 }
 0x5b4   :  { %v3540_v6 = vpop.f32.mrf.mxu0 }
 0x5bf   :  { %v4523_v24 = vpop.f32.mrf.mxu0 }
 0x5c1   :  { %v3550_v25 = vpop.f32.mrf.mxu0 }
 0x5c5   :  { %v4504_v28 = vpop.f32.mrf.mxu1 }
 0x5c6   :  { %v3546_v43 = vadd.f32 %v4520_v54, %v4504_v28  ;;  %v4076_v54 = vrot.slane %v6309_v36, %v5015_v3  ;;  %v4083_v28 = vrot.slane %v6309_v36, %v5018_v4 }
 0x5c7   :  { %v3411_v8 = vpop.f32.mrf.mxu1 }
 0x5c8   :  { %v3541_v45 = vadd.f32 %v3540_v6, %v3411_v8  ;;  %v3571_v47 = vadd.f32 %v4300_v23, %v3546_v43  ;;  %4078 = vbcast.lane.b32.xlu1 %v4076_v54, 256 }
 0x5ca   :  { %v3570_v40 = vadd.f32 %v4300_v23, %v3541_v45  ;;  %v3579_v46 = vmax.f32 %v3571_v47, 0.0 }
 0x5cc   :  { %v3578_v48 = vmax.f32 %v3570_v40, 0.0  ;;  %4085 = vbcast.lane.b32.xlu1 %v4083_v28, 256  ;;  %v4111_v28 = vrot.slane %v6309_v36, %v5045_v18 }
 0x5ce   :  { %4538 = vmatprep.mubr.msk.f32.mxu1 %vm3593_vm12, %v3578_v48 }
 0x5cf   :  { %4539 = vmatmul.mubr.msk.f32.gmra.mxu1 %vm3593_vm12, %v3579_v46 }
 0x5d0   :  { %4099 = vbcast.lane.b32.xlu1 %v4097_v2, 256  ;;  %v4104_v2 = vrot.slane %v6309_v36, %v5048_v19 }
 0x5d1   :  { %v4507_v59 = vpop.f32.mrf.mxu1 }
 0x5d2   :  { %v3556_v16 = vadd.f32 %v4523_v24, %v4507_v59 }
 0x5d3   :  { %v3421_v56 = vpop.f32.mrf.mxu1 }
 0x5d4   :  { %v3551_v37 = vadd.f32 %v3550_v25, %v3421_v56  ;;  %v3573_v31 = vadd.f32 %v4300_v23, %v3556_v16 }
 0x5d6   :  { %v3572_v39 = vadd.f32 %v4300_v23, %v3551_v37  ;;  %v3581_v1 = vmax.f32 %v3573_v31, 0.0 }
 0x5d8   :  { %v3580_v52 = vmax.f32 %v3572_v39, 0.0 }
 0x5da   :  { %4541 = vmatprep.mubr.msk.f32.mxu1 %vm3593_vm12, %v3580_v52 }
 0x5db   :  { %4542 = vmatmul.mubr.msk.f32.gmra.mxu1 %vm3593_vm12, %v3581_v1  ;;  %v4319_v1 = vld [vmem:[%s6376_s18] ss:$0 sm:$0xff]  ;;  %s4872_s18 = smov [#allocation13]  }
 0x640   :  { %v4534_v61 = vpop.f32.mrf.mxu1 }
 0x641   :  { %v3690_v21 = vadd.f32 %v4534_v61, %v4301_v32  ;;  %v4328_v61 = vld [vmem:[%s6377_s19] ss:$0 sm:$0xff]  ;;  %s4227_s19 = sshll.u32 %s4872_s18, 4  ;;  %s4228_s19 = int_to_ptr.vmem [resolvable:$true] %s4227_s19 }
 0x642   :  { %v3684_v0 = vpop.f32.mrf.mxu1  ;;  %s4824_s10 = scalar_lea.vmem %s4228_s19, 16  ;;  %s4828_s11 = scalar_lea.vmem %s4228_s19, 32 }
 0x643   :  { %v3685_v26 = vadd.f32 %v4301_v32, %v3684_v0  ;;  %v3724_v15 = vmax.f32 %v3690_v21, 0.0  ;;  %p4825_p2 = scmp.ne.s32.totalorder %s4228_s19, %s4824_s10  ;;  %p4829_p3 = scmp.lt.s32.totalorder %s4228_s19, %s4228_s19 }
 0x644   :  { %v4537_v22 = vpop.f32.mrf.mxu1  ;;  %p4830_p4 = scmp.lt.s32.totalorder %s4828_s11, %s4824_s10 }
 0x645   :  { %v3723_v60 = vmax.f32 %v3685_v26, 0.0  ;;  %v3700_v13 = vadd.f32 %v4537_v22, %v4301_v32 }
 0x646   :  { %v3694_v34 = vpop.f32.mrf.mxu1  ;;  %p4831_p5 = por %p4830_p4, %p4829_p3 }
 0x647   :  { %v3695_v10 = vadd.f32 %v4301_v32, %v3694_v34  ;;  %4552 = vmatprep.mubr.msk.f32.mxu0 %vm3593_vm12, %v3723_v60  ;;  %v3726_v41 = vmax.f32 %v3700_v13, 0.0 }
 0x648   :  { %4553 = vmatmul.mubr.msk.f32.vlgmr.msra.gmra.mxu0 %vm3593_vm12, %v3724_v15  ;;  %p4832_p6 = pnand %p4831_p5, %p4825_p2 }
 0x649   :  { %v3725_v51 = vmax.f32 %v3695_v10, 0.0 }
 0x64b   :  { %4555 = vmatprep.mubr.msk.f32.mxu0 %vm3593_vm12, %v3725_v51 }
 0x64c   :  { %4556 = vmatmul.mubr.msk.f32.gmra.mxu0 %vm3593_vm12, %v3726_v41 }
 0x68f   :  { %v4540_v11 = vpop.f32.mrf.mxu1 }
 0x690   :  { %v3710_v23 = vadd.f32 %v4540_v11, %v4301_v32 }
 0x691   :  { %v3704_v14 = vpop.f32.mrf.mxu1 }
 0x692   :  { %v3705_v35 = vadd.f32 %v4301_v32, %v3704_v14  ;;  %v3728_v30 = vmax.f32 %v3710_v23, 0.0 }
 0x694   :  { %v3727_v17 = vmax.f32 %v3705_v35, 0.0 }
 0x696   :  { %4558 = vmatprep.mubr.msk.f32.mxu0 %vm3593_vm12, %v3727_v17 }
 0x697   :  { %4559 = vmatmul.mubr.msk.f32.gmra.mxu0 %vm3593_vm12, %v3728_v30 }
 0x69b   :  { %v4543_v7 = vpop.f32.mrf.mxu1 }
 0x69c   :  { %v3720_v58 = vadd.f32 %v4543_v7, %v4301_v32 }
 0x69d   :  { %v3714_v33 = vpop.f32.mrf.mxu1 }
 0x69e   :  { %v3715_v38 = vadd.f32 %v4301_v32, %v3714_v33  ;;  %v3730_v62 = vmax.f32 %v3720_v58, 0.0 }
 0x6a0   :  { %v3729_v42 = vmax.f32 %v3715_v38, 0.0 }
 0x6a2   :  { %4561 = vmatprep.mubr.msk.f32.mxu0 %vm3593_vm12, %v3729_v42 }
 0x6a3   :  { %4562 = vmatmul.mubr.msk.f32.gmra.mxu0 %vm3593_vm12, %v3730_v62 }
 0x708   :  { %v4554_v29 = vpop.f32.mrf.mxu0 }
 0x709   :  { %v3838_v3 = vadd.f32 %v4554_v29, %v4310_v5 }
 0x70a   :  { %v3832_v43 = vpop.f32.mrf.mxu0 }
 0x70b   :  { %v3833_v6 = vadd.f32 %v4310_v5, %v3832_v43  ;;  %v3872_v50 = vmax.f32 %v3838_v3, 0.0  ;;  %v4072_v43 = vpop.permute.xlu0 %4071 }
 0x70c   :  { %v4557_v8 = vpop.f32.mrf.mxu0 }
 0x70d   :  { %v3871_v12 = vmax.f32 %v3833_v6, 0.0  ;;  %v3848_v45 = vadd.f32 %v4557_v8, %v4310_v5 }
 0x70e   :  { %v3842_v47 = vpop.f32.mrf.mxu0 }
 0x70f   :  { %v3843_v4 = vadd.f32 %v4310_v5, %v3842_v47  ;;  %4572 = vmatprep.mubr.msk.f32.mxu1 %vm3593_vm12, %v3871_v12  ;;  %v3874_v53 = vmax.f32 %v3848_v45, 0.0  ;;  %v4093_v8 = vpop.permute.xlu0 %4092 }
 0x710   :  { %4573 = vmatmul.mubr.msk.f32.vlgmr.msra.gmra.mxu1 %vm3593_vm12, %v3872_v50 }
 0x711   :  { %v3873_v9 = vmax.f32 %v3843_v4, 0.0 }
 0x713   :  { %4575 = vmatprep.mubr.msk.f32.mxu1 %vm3593_vm12, %v3873_v9 }
 0x714   :  { %4576 = vmatmul.mubr.msk.f32.gmra.mxu1 %vm3593_vm12, %v3874_v53 }
 0x757   :  { %v4560_v40 = vpop.f32.mrf.mxu0 }
 0x758   :  { %v3858_v48 = vadd.f32 %v4560_v40, %v4310_v5 }
 0x759   :  { %v3852_v46 = vpop.f32.mrf.mxu0 }
 0x75a   :  { %v3853_v24 = vadd.f32 %v4310_v5, %v3852_v46  ;;  %v3876_v16 = vmax.f32 %v3858_v48, 0.0 }
 0x75c   :  { %v3875_v59 = vmax.f32 %v3853_v24, 0.0 }
 0x75e   :  { %4578 = vmatprep.mubr.msk.f32.mxu1 %vm3593_vm12, %v3875_v59 }
 0x75f   :  { %4579 = vmatmul.mubr.msk.f32.gmra.mxu1 %vm3593_vm12, %v3876_v16 }
 0x763   :  { %v4563_v25 = vpop.f32.mrf.mxu0 }
 0x764   :  { %v3868_v56 = vadd.f32 %v4563_v25, %v4310_v5 }
 0x765   :  { %v3862_v37 = vpop.f32.mrf.mxu0 }
 0x766   :  { %v3863_v31 = vadd.f32 %v4310_v5, %v3862_v37  ;;  %v3878_v52 = vmax.f32 %v3868_v56, 0.0  ;;  %v4065_v5 = vpop.permute.xlu1 %4064 }
 0x768   :  { %v3877_v39 = vmax.f32 %v3863_v31, 0.0 }
 0x76a   :  { %4581 = vmatprep.mubr.msk.f32.mxu1 %vm3593_vm12, %v3877_v39  ;;  %v4079_v29 = vpop.permute.xlu1 %4078  ;;  %v6660_v39 = vld [vmem:[#allocation19_spill] sm:$0xff] }
 0x76b   :  { %4582 = vmatmul.mubr.msk.f32.gmra.mxu1 %vm3593_vm12, %v3878_v52  ;;  %v6661_v52 = vld [vmem:[#allocation20_spill] sm:$0xff] }
 0x76e   :  { %v4086_v3 = vpop.permute.xlu1 %4085 }
 0x772   :  { %v4100_v6 = vpop.permute.xlu1 %4099 }
 0x7d0   :  { %v4574_v32 = vpop.f32.mrf.mxu1 }
 0x7d1   :  { %v3986_v21 = vadd.f32 %v4574_v32, %v4319_v1 }
 0x7d2   :  { %v3980_v0 = vpop.f32.mrf.mxu1 }
 0x7d3   :  { %v4027_v26 = vmul.f32 %v4328_v61, %v3986_v21  ;;  %v3981_v22 = vadd.f32 %v4319_v1, %v3980_v0 }
 0x7d4   :  { %v4577_v60 = vpop.f32.mrf.mxu1 }
 0x7d5   :  { %v3996_v15 = vadd.f32 %v4577_v60, %v4319_v1  ;;  %v4037_v13 = vsel %vm3593_vm12, %v4027_v26, 0.0  ;;  %v4026_v34 = vmul.f32 %v4328_v61, %v3981_v22 }
 0x7d6   :  { %4038 = vadd.xlane.f32.xlu1 %v4037_v13  ;;  %v3990_v10 = vpop.f32.mrf.mxu1 }
 0x7d7   :  { %v3991_v51 = vadd.f32 %v4319_v1, %v3990_v10  ;;  %v4034_v41 = vsel %vm3593_vm12, %v4026_v34, 0.0  ;;  %v4029_v20 = vmul.f32 %v4328_v61, %v3996_v15 }
 0x7d8   :  { %4035 = vadd.xlane.f32.xlu0 %v4034_v41 }
 0x7d9   :  { %v4043_v44 = vsel %vm3593_vm12, %v4029_v20, 0.0  ;;  %v4028_v11 = vmul.f32 %v4328_v61, %v3991_v51 }
 0x7db   :  { %v4040_v57 = vsel %vm3593_vm12, %v4028_v11, 0.0 }
 0x7dc   :  { %4044 = vadd.xlane.f32.xlu0 %v4043_v44 }
 0x7e0   :  { %4041 = vadd.xlane.f32.xlu0 %v4040_v57 }
 0x81f   :  { %v4580_v23 = vpop.f32.mrf.mxu1 }
 0x820   :  { %v4006_v14 = vadd.f32 %v4580_v23, %v4319_v1 }
 0x821   :  { %v4000_v63 = vpop.f32.mrf.mxu1 }
 0x822   :  { %v4001_v35 = vadd.f32 %v4319_v1, %v4000_v63  ;;  %v4031_v17 = vmul.f32 %v4328_v61, %v4006_v14 }
 0x824   :  { %v4030_v30 = vmul.f32 %v4328_v61, %v4001_v35  ;;  %v4049_v7 = vsel %vm3593_vm12, %v4031_v17, 0.0 }
 0x825   :  { %4050 = vadd.xlane.f32.xlu0 %v4049_v7 }
 0x826   :  { %v4046_v58 = vsel %vm3593_vm12, %v4030_v30, 0.0 }
 0x827   :  { %4047 = vadd.xlane.f32.xlu1 %v4046_v58 }
 0x82b   :  { %v4583_v33 = vpop.f32.mrf.mxu1 }
 0x82c   :  { %v4016_v38 = vadd.f32 %v4583_v33, %v4319_v1 }
 0x82d   :  { %v4010_v42 = vpop.f32.mrf.mxu1 }
 0x82e   :  { %v4033_v62 = vmul.f32 %v4328_v61, %v4016_v38  ;;  %v4011_v27 = vadd.f32 %v4319_v1, %v4010_v42  ;;  %v4165_v1 = vsub.s32 %v6661_v52, %v6660_v39 }
 0x830   :  { %v4032_v49 = vmul.f32 %v4328_v61, %v4011_v27  ;;  %v4055_v54 = vsel %vm3593_vm12, %v4033_v62, 0.0 }
 0x831   :  { %4056 = vadd.xlane.f32.xlu0 %v4055_v54 }
 0x832   :  { %v4052_v55 = vsel %vm3593_vm12, %v4032_v49, 0.0 }
 0x833   :  { %4053 = vadd.xlane.f32.xlu1 %v4052_v55 }
 0x844   :  { %4113 = vbcast.lane.b32.xlu1 %v4111_v28, 256 }
 0x847   :  { %4106 = vbcast.lane.b32.xlu0 %v4104_v2, 256 }
 0x85f   :  { %v4039_v12 = vpop.xlane.xlu1 %4038 }
 0x860   :  { %v4124_v50 = vmul.f32 %v4072_v43, %v4039_v12 }
 0x861   :  { %v4036_v45 = vpop.xlane.xlu0 %4035 }
 0x862   :  { %v4123_v47 = vmul.f32 %v4065_v5, %v4036_v45  ;;  %4143 = vperm.xlu1 %4669, %v4124_v50  }
 0x864   :  { %4140 = vperm.xlu0 %4670, %v4123_v47  }
 0x865   :  { %v4045_v4 = vpop.xlane.xlu0 %4044 }
 0x866   :  { %v4126_v9 = vmul.f32 %v4086_v3, %v4045_v4 }
 0x868   :  { %4149 = vperm.xlu0 %4670, %v4126_v9  }
 0x869   :  { %v4042_v18 = vpop.xlane.xlu0 %4041 }
 0x86a   :  { %v4125_v53 = vmul.f32 %v4079_v29, %v4042_v18 }
 0x86c   :  { %4146 = vperm.xlu1 %4669, %v4125_v53  }
 0x8ae   :  { %v4051_v19 = vpop.xlane.xlu0 %4050 }
 0x8af   :  { %v4128_v36 = vmul.f32 %v4100_v6, %v4051_v19 }
 0x8b0   :  { %v4048_v40 = vpop.xlane.xlu1 %4047 }
 0x8b1   :  { %v4127_v48 = vmul.f32 %v4093_v8, %v4048_v40  ;;  %4155 = vperm.xlu0 %4670, %v4128_v36  }
 0x8b3   :  { %4152 = vperm.xlu1 %4669, %v4127_v48  }
 0x8ba   :  { %v4057_v46 = vpop.xlane.xlu0 %4056 }
 0x8bc   :  { %v4054_v24 = vpop.xlane.xlu1 %4053 }
 0x8be   :  { %v4107_v59 = vpop.permute.xlu0 %4106 }
 0x8bf   :  { %v4129_v16 = vmul.f32 %v4107_v59, %v4054_v24 }
 0x8c0   :  { %v4114_v25 = vpop.permute.xlu1 %4113 }
 0x8c1   :  { %v4130_v56 = vmul.f32 %v4114_v25, %v4057_v46  ;;  %4158 = vperm.xlu1 %4669, %v4129_v16  }
 0x8c3   :  { %4161 = vperm.xlu0 %4670, %v4130_v56  }
 0x8dd   :  { %v4144_v37 = vpop.permute.xlu1 %4143 }
 0x8de   :  { %v4170_v0 = vrot.slane %v4144_v37, %v4165_v1 }
 0x8df   :  { %v4141_v31 = vpop.permute.xlu0 %4140 }
 0x8e0   :  { %v4166_v61 = vrot.slane %v4141_v31, %v4165_v1 }
 0x8e2   :  { %v4196_v60 = vsel %vm4195_vm13, %v4170_v0, %v4166_v61 }
 0x8e3   :  { %v4150_v22 = vpop.permute.xlu0 %4149 }
 0x8e4   :  { %v4178_v34 = vrot.slane %v4150_v22, %v4165_v1 }
 0x8e7   :  { %v4147_v32 = vpop.permute.xlu1 %4146 }
 0x8e8   :  { %v4174_v21 = vrot.slane %v4147_v32, %v4165_v1 }
 0x8ea   :  { %v4198_v15 = vsel %vm4197_vm14, %v4174_v21, %v4196_v60 }
 0x8eb   :  { %v4200_v51 = vsel %vm4199_vm15, %v4178_v34, %v4198_v15 }
 0x92c   :  { %v4156_v10 = vpop.permute.xlu0 %4155 }
 0x92d   :  { %v4186_v20 = vrot.slane %v4156_v10, %v4165_v1 }
 0x92e   :  { %v4153_v26 = vpop.permute.xlu1 %4152 }
 0x92f   :  { %v4182_v13 = vrot.slane %v4153_v26, %v4165_v1 }
 0x931   :  { %v4202_v41 = vsel %vm4201_vm0, %v4182_v13, %v4200_v51 }
 0x932   :  { %v4204_v23 = vsel %vm4203_vm1, %v4186_v20, %v4202_v41 }
 0x93c   :  { %v4159_v44 = vpop.permute.xlu1 %4158 }
 0x93d   :  { %v4190_v11 = vrot.slane %v4159_v44, %v4165_v1 }
 0x93e   :  { %v4162_v57 = vpop.permute.xlu0 %4161 }
 0x93f   :  { %v4194_v14 = vrot.slane %v4162_v57, %v4165_v1  ;;  %v4206_v63 = vsel %vm4205_vm2, %v4190_v11, %v4204_v23 }
 0x941   :  { %v4208_v35 = vsel %vm4207_vm3, %v4194_v14, %v4206_v63 }
 0x942   :  { %v4210_v17 = vsel %vm1017_vm10, %v4208_v35, 0.0 }
 0x943   :  { %4211 = vadd.xlane.f32.xlu1 %v4210_v17 }
 0x9cc   :  { %v4212_v30 = vpop.xlane.xlu1 %4211 }
 0x9cd   :  { %v4217_v7 = vrot.slane %v4212_v30, %v4165_v1 }
 0x9cf   :  { %4220 = vst.msk [vmem:[#allocation13] sm:$0x1] %vm4219_vm4, %v4217_v7 }
 0x9d0   :  { %4835 = shalt.err (!%p4832_p6)
}
 0x9d1   :  { %4230 = dma.vmem_to_hbm [thread:$0]  %s4228_s19, 16, %s6378_s20, [#allocation4]  }
 0x9d2   :  { %4852 = dma.done.wait [#allocation4], 16  }
 0x9d3   :  { %4853 = vsyncadd [#allocation4], 4294967280 }
 0x9d4   :  { %4234 = vsyncpa [#allocation3], 1 }
 0x9d5   :  { %4235 = vsyncpa [#allocation6], 1 }
 0x9d6   :  { %4236 = vsyncpa [#allocation9], 1 }
 0x9d7   :  { %4237 = vsyncpa [#allocation12], 1 }
 0x9d8   :  { %4238 = vsyncpa [#allocation4], 1 }

</bundles_post_ra>
